<compile_context>
chip_gen: v5e
topology: v5e:2x2
jax: 0.10.0
libtpu: 0.0.40
codegen_flags: <defaults>
</compile_context>

<pallas_src>
import numpy as np
import jax
import jax.numpy as jnp
from jax import lax
from jax.experimental import pallas as pl
from jax.experimental.pallas import tpu as pltpu

H_DIM = 64                 # h_dim
GRID_SIZE = 8              # grid_size
NEIGHBORHOOD = 2.0         # neighborhood_size
GS2 = GRID_SIZE * GRID_SIZE
BN_EPS = 1e-5


def _social_pool_linear_kernel(nped_ref, pos_ref, post_ref, h_ref, w3_ref, out_ref):
    """One sequence per grid step.

    torch's scatter_add pooling becomes a batched (over the GS2 grid cells)
    one-hot-mask matmul, and the mlp_pool Linear is fused as a second batched
    matmul + sum over cells, so the (P, GS2*H) intermediate never needs an
    in-kernel lane reshape.  Both matmuls run at default (1-pass) MXU precision.
    """
    s = pl.program_id(0)
    n = nped_ref[s]                           # real pedestrians in this sequence
    max_ped = pos_ref.shape[0]
    half = NEIGHBORHOOD / 2.0

    xi = pos_ref[:, 0:1]                      # (MP, 1)  focal ped i
    yi = pos_ref[:, 1:2]
    xj = post_ref[0:1, :]                     # (1, MP)  other ped j
    yj = post_ref[1:2, :]

    tl_x = xi - half
    tl_y = yi + half
    br_x = xi + half
    br_y = yi - half

    # get_grid_locations (same op order as the torch code)
    cell_x = jnp.floor((xj - tl_x) / NEIGHBORHOOD * GRID_SIZE)
    cell_y = jnp.floor((tl_y - yj) / NEIGHBORHOOD * GRID_SIZE)

    # out-of-bound checks (torch's x_bound / y_bound, True == outside)
    oob_x = (xj >= br_x) | (xj <= tl_x)
    oob_y = (yj >= tl_y) | (yj <= br_y)

    ii = lax.broadcasted_iota(jnp.int32, (max_ped, max_ped), 0)   # focal index
    jj = lax.broadcasted_iota(jnp.int32, (max_ped, max_ped), 1)   # other index
    valid = (~oob_x) & (~oob_y) & (ii != jj) & (ii < n) & (jj < n)

    # cell in [0, GS2-1] for valid pairs, -1 otherwise (torch routes these to
    # the trash slot which is dropped afterwards).
    cell = jnp.where(valid, cell_x + cell_y * GRID_SIZE, -1.0).astype(jnp.int32)

    # One-hot cell masks, built once (hoisted): mask3[c, i, j] = [cell[i, j] == c].
    c_iota = lax.broadcasted_iota(jnp.int32, (GS2, max_ped, max_ped), 0)
    mask3 = jnp.where(cell[None, :, :] == c_iota, 1.0, 0.0).astype(jnp.bfloat16)

    # scatter_add  ->  batched masked matmul on the MXU (bf16 in, f32 accumulate).
    h_b = jnp.broadcast_to(h_ref[...].astype(jnp.bfloat16)[None],
                           (GS2, max_ped, H_DIM))
    pooled = jnp.einsum('cij,cjd->cid', mask3, h_b,
                        preferred_element_type=jnp.float32)        # (GS2, MP, H)

    # mlp_pool Linear, fused: per-cell weight slice, batched matmul + sum over cells.
    out3 = jnp.einsum('cpd,cdo->cpo', pooled, w3_ref[...],
                      preferred_element_type=jnp.float32)          # (GS2, MP, H)
    # Linear bias dropped: it cancels exactly in the training-mode BatchNorm below.
    out_ref[...] = jnp.sum(out3, axis=0)


def social_pooling_forward(h_states, seq_start_end, end_pos, params):
    """h_states: (num_layers, batch, H_DIM); seq_start_end: static list of (start, end);
    end_pos: (batch, 2).  Returns (batch, H_DIM)."""
    W = params["w"]                                # Linear weight: (H_DIM, GS2*H_DIM)
    gamma, beta = params["gamma"], params["beta"]  # BatchNorm1d params
    # NOTE: params["b"] is intentionally unused — (x + b) - mean(x + b) == x - mean(x),
    # so the Linear bias is a no-op through the training-mode BatchNorm that follows.

    h_flat = h_states.reshape(-1, H_DIM).astype(jnp.float32)
    num_seq = len(seq_start_end)
    lens = [int(e) - int(s) for (s, e) in seq_start_end]
    max_ped = max(lens)
    MAX_PED = max(8, ((max_ped + 7) // 8) * 8)

    # Static gather plans (host-side numpy): one gather to pad, one gather to un-pad.
    gather_idx = np.zeros((num_seq, MAX_PED), np.int32)
    valid_np = np.zeros((num_seq, MAX_PED), bool)
    for si, (s, e) in enumerate(seq_start_end):
        gather_idx[si, : lens[si]] = np.arange(int(s), int(e), dtype=np.int32)
        valid_np[si, : lens[si]] = True
    valid_flat_idx = jnp.asarray(np.nonzero(valid_np.reshape(-1))[0].astype(np.int32))

    gidx = jnp.asarray(gather_idx)
    h_pad = h_flat[gidx]                                   # (num_seq, MAX_PED, H_DIM)
    pos_pad = end_pos.astype(jnp.float32)[gidx]            # (num_seq, MAX_PED, 2)
    pos_t_pad = jnp.transpose(pos_pad, (0, 2, 1))          # (num_seq, 2, MAX_PED)
    nped = jnp.asarray(lens, jnp.int32)

    # Re-pack the Linear weight per grid cell: w3[c, d, o] = W[o, c*H_DIM + d]
    w3 = jnp.transpose(W.reshape(H_DIM, GS2, H_DIM), (1, 2, 0)).astype(jnp.float32)

    grid_spec = pltpu.PrefetchScalarGridSpec(
        num_scalar_prefetch=1,
        grid=(num_seq,),
        in_specs=[
            pl.BlockSpec((None, MAX_PED, 2), lambda s, nref: (s, 0, 0)),      # pos
            pl.BlockSpec((None, 2, MAX_PED), lambda s, nref: (s, 0, 0)),      # pos^T
            pl.BlockSpec((None, MAX_PED, H_DIM), lambda s, nref: (s, 0, 0)),  # hidden
            pl.BlockSpec((GS2, H_DIM, H_DIM), lambda s, nref: (0, 0, 0)),     # W3 (grid-invariant)
        ],
        out_specs=pl.BlockSpec((None, MAX_PED, H_DIM), lambda s, nref: (s, 0, 0)),
    )
    lin_out = pl.pallas_call(
        _social_pool_linear_kernel,
        out_shape=jax.ShapeDtypeStruct((num_seq, MAX_PED, H_DIM), jnp.float32),
        grid_spec=grid_spec,
        compiler_params=pltpu.CompilerParams(dimension_semantics=("parallel",)),
    )(nped, pos_pad, pos_t_pad, h_pad, w3)

    # Un-pad with one static gather (no per-sequence slicing / concat), then
    # BatchNorm1d (training-mode batch stats, biased variance) + ReLU in plain jnp:
    # a (batch, 64) elementwise op is glue, not worth a dedicated pallas_call.
    rows = lin_out.reshape(num_seq * MAX_PED, H_DIM)[valid_flat_idx]
    mean = jnp.mean(rows, axis=0, keepdims=True)
    var = jnp.mean((rows - mean) ** 2, axis=0, keepdims=True)
    y = (rows - mean) * lax.rsqrt(var + BN_EPS) * gamma.reshape(1, H_DIM).astype(jnp.float32) \
        + beta.reshape(1, H_DIM).astype(jnp.float32)
    return jnp.maximum(y, 0.0)


def reference_forward(h_states, seq_start_end, end_pos, params):
    """Pure numpy re-implementation of the torch forward (training-mode BN)."""
    W = np.asarray(params["w"], np.float32)
    b = np.asarray(params["b"], np.float32)
    gamma = np.asarray(params["gamma"], np.float32)
    beta = np.asarray(params["beta"], np.float32)
    h = np.asarray(h_states, np.float32).reshape(-1, H_DIM)
    pos = np.asarray(end_pos, np.float32)
    ns, gs = NEIGHBORHOOD, GRID_SIZE
    pools = []
    for (s, e) in seq_start_end:
        P = e - s
        ch, cp = h[s:e], pos[s:e]
        pool = np.zeros((P, gs * gs, H_DIM), np.float32)
        for i in range(P):
            tlx, tly = cp[i, 0] - ns / 2, cp[i, 1] + ns / 2
            brx, bry = cp[i, 0] + ns / 2, cp[i, 1] - ns / 2
            for j in range(P):
                if i == j:
                    continue
                xj, yj = cp[j, 0], cp[j, 1]
                if xj >= brx or xj <= tlx or yj >= tly or yj <= bry:
                    continue
                cx = int(np.floor((xj - tlx) / ns * gs))
                cy = int(np.floor((tly - yj) / ns * gs))
                pool[i, cx + cy * gs] += ch[j]
        pools.append(pool.reshape(P, -1))
    pf = np.concatenate(pools, 0)
    lin = pf @ W.T + b
    mean, var = lin.mean(0), lin.var(0)
    y = (lin - mean) / np.sqrt(var + BN_EPS) * gamma + beta
    return np.maximum(y, 0.0)


if __name__ == "__main__":
    key = jax.random.PRNGKey(0)
    k1, k2, k3, k4, k5, k6 = jax.random.split(key, 6)

    batch = 8
    num_layers = 1
    seq_start_end = [(0, 3), (3, 8)]   # two sequences: 3 and 5 pedestrians

    h_states = jax.random.normal(k1, (num_layers, batch, H_DIM), jnp.float32)
    end_pos = jax.random.uniform(k2, (batch, 2), jnp.float32, minval=-1.2, maxval=1.2)

    fan_in = GS2 * H_DIM
    params = {
        "w": jax.random.normal(k3, (H_DIM, fan_in), jnp.float32) / np.sqrt(fan_in),
        "b": 0.1 * jax.random.normal(k4, (H_DIM,), jnp.float32),
        "gamma": 1.0 + 0.1 * jax.random.normal(k5, (H_DIM,), jnp.float32),
        "beta": 0.1 * jax.random.normal(k6, (H_DIM,), jnp.float32),
    }
    # TODO(synk): dropout omitted (module default p=0.0, identity in this config).

    out = social_pooling_forward(h_states, seq_start_end, end_pos, params)
    out = jax.block_until_ready(out)

    assert out.shape == (batch, H_DIM)
    ref = reference_forward(h_states, seq_start_end, end_pos, params)
    np.testing.assert_allclose(np.asarray(out), ref, rtol=2e-2, atol=2e-2)
    print("KERNEL_OK")
</pallas_src>

<mosaic_0001>
module attributes {stable_mosaic.version = 11 : i64} {
  func.func @_social_pool_linear_kernel(%arg0: i32, %arg1: memref<2xi32, #tpu.memory_space<smem>>, %arg2: memref<1x8x2xf32, #tpu.memory_space<vmem>>, %arg3: memref<1x2x8xf32, #tpu.memory_space<vmem>>, %arg4: memref<1x8x64xf32, #tpu.memory_space<vmem>>, %arg5: memref<64x64x64xf32, #tpu.memory_space<vmem>>, %arg6: memref<1x8x64xf32, #tpu.memory_space<vmem>>) attributes {dimension_semantics = [#tpu.dimension_semantics<parallel>], iteration_bounds = array<i64: 2>, scalar_prefetch = 1 : i64, scratch_operands = 0 : i64, tpu.core_type = #tpu.core_type<tc>, window_params = [{transform_indices = @transform_0, window_bounds = array<i64: 1, 8, 2>}, {transform_indices = @transform_1, window_bounds = array<i64: 1, 2, 8>}, {transform_indices = @transform_2, window_bounds = array<i64: 1, 8, 64>}, {pipeline_mode = #tpu.pipeline_mode<synchronous>, transform_indices = @transform_3, window_bounds = array<i64: 64, 64, 64>}, {transform_indices = @transform_4, window_bounds = array<i64: 1, 8, 64>}]} {
    %0 = arith.index_cast %arg0 : i32 to index
    %1 = memref.load %arg1[%0] : memref<2xi32, #tpu.memory_space<smem>>
    %c0 = arith.constant 0 : index
    %c0_0 = arith.constant 0 : index
    %c0_1 = arith.constant 0 : index
    %2 = vector.load %arg2[%c0, %c0_0, %c0_1] : memref<1x8x2xf32, #tpu.memory_space<vmem>>, vector<1x8x1xf32>
    %3 = vector.shape_cast %2 : vector<1x8x1xf32> to vector<8x1xf32>
    %c0_2 = arith.constant 0 : index
    %c0_3 = arith.constant 0 : index
    %c1 = arith.constant 1 : index
    %4 = vector.load %arg2[%c0_2, %c0_3, %c1] : memref<1x8x2xf32, #tpu.memory_space<vmem>>, vector<1x8x1xf32>
    %5 = vector.shape_cast %4 : vector<1x8x1xf32> to vector<8x1xf32>
    %c0_4 = arith.constant 0 : index
    %c0_5 = arith.constant 0 : index
    %c0_6 = arith.constant 0 : index
    %6 = vector.load %arg3[%c0_4, %c0_5, %c0_6] : memref<1x2x8xf32, #tpu.memory_space<vmem>>, vector<1x1x8xf32>
    %7 = vector.shape_cast %6 : vector<1x1x8xf32> to vector<1x8xf32>
    %c0_7 = arith.constant 0 : index
    %c1_8 = arith.constant 1 : index
    %c0_9 = arith.constant 0 : index
    %8 = vector.load %arg3[%c0_7, %c1_8, %c0_9] : memref<1x2x8xf32, #tpu.memory_space<vmem>>, vector<1x1x8xf32>
    %9 = vector.shape_cast %8 : vector<1x1x8xf32> to vector<1x8xf32>
    %cst = arith.constant 1.000000e+00 : f32
    %10 = vector.broadcast %cst : f32 to vector<8x1xf32>
    %11 = arith.subf %3, %10 : vector<8x1xf32>
    %cst_10 = arith.constant 1.000000e+00 : f32
    %12 = vector.broadcast %cst_10 : f32 to vector<8x1xf32>
    %13 = arith.addf %5, %12 : vector<8x1xf32>
    %cst_11 = arith.constant 1.000000e+00 : f32
    %14 = vector.broadcast %cst_11 : f32 to vector<8x1xf32>
    %15 = arith.addf %3, %14 : vector<8x1xf32>
    %cst_12 = arith.constant 1.000000e+00 : f32
    %16 = vector.broadcast %cst_12 : f32 to vector<8x1xf32>
    %17 = arith.subf %5, %16 : vector<8x1xf32>
    %18 = vector.broadcast %7 : vector<1x8xf32> to vector<8x8xf32>
    %19 = vector.broadcast %11 : vector<8x1xf32> to vector<8x8xf32>
    %20 = arith.subf %18, %19 : vector<8x8xf32>
    %cst_13 = arith.constant 2.000000e+00 : f32
    %21 = vector.broadcast %cst_13 : f32 to vector<8x8xf32>
    %22 = arith.divf %20, %21 : vector<8x8xf32>
    %cst_14 = arith.constant 8.000000e+00 : f32
    %23 = vector.broadcast %cst_14 : f32 to vector<8x8xf32>
    %24 = arith.mulf %22, %23 : vector<8x8xf32>
    %25 = math.floor %24 : vector<8x8xf32>
    %26 = vector.broadcast %13 : vector<8x1xf32> to vector<8x8xf32>
    %27 = vector.broadcast %9 : vector<1x8xf32> to vector<8x8xf32>
    %28 = arith.subf %26, %27 : vector<8x8xf32>
    %cst_15 = arith.constant 2.000000e+00 : f32
    %29 = vector.broadcast %cst_15 : f32 to vector<8x8xf32>
    %30 = arith.divf %28, %29 : vector<8x8xf32>
    %cst_16 = arith.constant 8.000000e+00 : f32
    %31 = vector.broadcast %cst_16 : f32 to vector<8x8xf32>
    %32 = arith.mulf %30, %31 : vector<8x8xf32>
    %33 = math.floor %32 : vector<8x8xf32>
    %34 = vector.broadcast %7 : vector<1x8xf32> to vector<8x8xf32>
    %35 = vector.broadcast %15 : vector<8x1xf32> to vector<8x8xf32>
    %36 = arith.cmpf oge, %34, %35 : vector<8x8xf32>
    %37 = vector.broadcast %7 : vector<1x8xf32> to vector<8x8xf32>
    %38 = vector.broadcast %11 : vector<8x1xf32> to vector<8x8xf32>
    %39 = arith.cmpf ole, %37, %38 : vector<8x8xf32>
    %40 = arith.ori %36, %39 : vector<8x8xi1>
    %41 = vector.broadcast %9 : vector<1x8xf32> to vector<8x8xf32>
    %42 = vector.broadcast %13 : vector<8x1xf32> to vector<8x8xf32>
    %43 = arith.cmpf oge, %41, %42 : vector<8x8xf32>
    %44 = vector.broadcast %9 : vector<1x8xf32> to vector<8x8xf32>
    %45 = vector.broadcast %17 : vector<8x1xf32> to vector<8x8xf32>
    %46 = arith.cmpf ole, %44, %45 : vector<8x8xf32>
    %47 = arith.ori %43, %46 : vector<8x8xi1>
    %48 = tpu.iota {dimensions = array<i32: 0>} : vector<8x8xi32>
    %49 = tpu.iota {dimensions = array<i32: 1>} : vector<8x8xi32>
    %cst_17 = arith.constant dense<true> : vector<8x8xi1>
    %50 = arith.xori %40, %cst_17 : vector<8x8xi1>
    %cst_18 = arith.constant dense<true> : vector<8x8xi1>
    %51 = arith.xori %47, %cst_18 : vector<8x8xi1>
    %52 = arith.andi %50, %51 : vector<8x8xi1>
    %53 = arith.cmpi ne, %48, %49 : vector<8x8xi32>
    %54 = arith.andi %52, %53 : vector<8x8xi1>
    %55 = vector.broadcast %1 : i32 to vector<8x8xi32>
    %56 = arith.cmpi slt, %48, %55 : vector<8x8xi32>
    %57 = arith.andi %54, %56 : vector<8x8xi1>
    %58 = vector.broadcast %1 : i32 to vector<8x8xi32>
    %59 = arith.cmpi slt, %49, %58 : vector<8x8xi32>
    %60 = arith.andi %57, %59 : vector<8x8xi1>
    %cst_19 = arith.constant 8.000000e+00 : f32
    %61 = vector.broadcast %cst_19 : f32 to vector<8x8xf32>
    %62 = arith.mulf %33, %61 : vector<8x8xf32>
    %63 = arith.addf %25, %62 : vector<8x8xf32>
    %cst_20 = arith.constant -1.000000e+00 : f32
    %64 = vector.broadcast %cst_20 : f32 to vector<8x8xf32>
    %65 = arith.select %60, %63, %64 : vector<8x8xi1>, vector<8x8xf32>
    %66 = arith.fptosi %65 : vector<8x8xf32> to vector<8x8xi32>
    %67 = tpu.iota {dimensions = array<i32: 0>} : vector<64x8x8xi32>
    %68 = vector.shape_cast %66 : vector<8x8xi32> to vector<1x8x8xi32>
    %69 = vector.broadcast %68 : vector<1x8x8xi32> to vector<64x8x8xi32>
    %70 = arith.cmpi eq, %69, %67 : vector<64x8x8xi32>
    %cst_21 = arith.constant 1.000000e+00 : f32
    %cst_22 = arith.constant 0.000000e+00 : f32
    %71 = vector.broadcast %cst_21 : f32 to vector<64x8x8xf32>
    %72 = vector.broadcast %cst_22 : f32 to vector<64x8x8xf32>
    %73 = arith.select %70, %71, %72 : vector<64x8x8xi1>, vector<64x8x8xf32>
    %74 = arith.truncf %73 : vector<64x8x8xf32> to vector<64x8x8xbf16>
    %c0_23 = arith.constant 0 : index
    %c0_24 = arith.constant 0 : index
    %c0_25 = arith.constant 0 : index
    %75 = vector.load %arg4[%c0_23, %c0_24, %c0_25] : memref<1x8x64xf32, #tpu.memory_space<vmem>>, vector<1x8x64xf32>
    %76 = vector.shape_cast %75 : vector<1x8x64xf32> to vector<8x64xf32>
    %77 = arith.truncf %76 : vector<8x64xf32> to vector<8x64xbf16>
    %78 = vector.shape_cast %77 : vector<8x64xbf16> to vector<1x8x64xbf16>
    %79 = vector.shape_cast %78 : vector<1x8x64xbf16> to vector<1x8x64xbf16>
    %80 = vector.broadcast %79 : vector<1x8x64xbf16> to vector<64x8x64xbf16>
    "tpu.trace_start"() <{level = 10 : i32, message = "cij,cjd->cid"}> : () -> ()
    %cst_26 = arith.constant dense<0.000000e+00> : vector<64x8x64xf32>
    %81 = tpu.matmul %74, %80, %cst_26 {dimension_numbers = #tpu.dot_dimension_numbers<[2], [1], [1], [2], [0, 0, 0, 1, 1, 2], [0], [0]>} : vector<64x8x8xbf16>, vector<64x8x64xbf16>, vector<64x8x64xf32> -> vector<64x8x64xf32>
    "tpu.trace_stop"() : () -> ()
    %c0_27 = arith.constant 0 : index
    %c0_28 = arith.constant 0 : index
    %c0_29 = arith.constant 0 : index
    %82 = vector.load %arg5[%c0_27, %c0_28, %c0_29] : memref<64x64x64xf32, #tpu.memory_space<vmem>>, vector<64x64x64xf32>
    "tpu.trace_start"() <{level = 10 : i32, message = "cpd,cdo->cpo"}> : () -> ()
    %cst_30 = arith.constant dense<0.000000e+00> : vector<64x8x64xf32>
    %83 = tpu.matmul %81, %82, %cst_30 {dimension_numbers = #tpu.dot_dimension_numbers<[2], [1], [1], [2], [0, 0, 0, 1, 1, 2], [0], [0]>} : vector<64x8x64xf32>, vector<64x64x64xf32>, vector<64x8x64xf32> -> vector<64x8x64xf32>
    "tpu.trace_stop"() : () -> ()
    %cst_31 = arith.constant dense<0.000000e+00> : vector<8x64xf32>
    %84 = vector.multi_reduction <add>, %83, %cst_31 [0] : vector<64x8x64xf32> to vector<8x64xf32>
    %c0_32 = arith.constant 0 : index
    %c0_33 = arith.constant 0 : index
    %c0_34 = arith.constant 0 : index
    %85 = vector.load %arg6[%c0_32, %c0_33, %c0_34] : memref<1x8x64xf32, #tpu.memory_space<vmem>>, vector<1x8x64xf32>
    %86 = vector.shape_cast %85 : vector<1x8x64xf32> to vector<8x64xf32>
    %87 = vector.shape_cast %84 : vector<8x64xf32> to vector<1x8x64xf32>
    tpu.vector_store %arg6[%c0_32, %c0_33, %c0_34], %87 {strides = array<i32>} : memref<1x8x64xf32, #tpu.memory_space<vmem>>, vector<1x8x64xf32>,
    return
  }
  func.func @transform_0(%arg0: i32, %arg1: memref<2xi32, #tpu.memory_space<smem>>) -> (i32, i32, i32) {
    %c0_i32 = arith.constant 0 : i32
    %c0_i32_0 = arith.constant 0 : i32
    %c0_i32_1 = arith.constant 0 : i32
    return %arg0, %c0_i32, %c0_i32_0 : i32, i32, i32
  }
  func.func @transform_1(%arg0: i32, %arg1: memref<2xi32, #tpu.memory_space<smem>>) -> (i32, i32, i32) {
    %c0_i32 = arith.constant 0 : i32
    %c0_i32_0 = arith.constant 0 : i32
    %c0_i32_1 = arith.constant 0 : i32
    return %arg0, %c0_i32, %c0_i32_0 : i32, i32, i32
  }
  func.func @transform_2(%arg0: i32, %arg1: memref<2xi32, #tpu.memory_space<smem>>) -> (i32, i32, i32) {
    %c0_i32 = arith.constant 0 : i32
    %c0_i32_0 = arith.constant 0 : i32
    %c0_i32_1 = arith.constant 0 : i32
    return %arg0, %c0_i32, %c0_i32_0 : i32, i32, i32
  }
  func.func @transform_3(%arg0: i32, %arg1: memref<2xi32, #tpu.memory_space<smem>>) -> (i32, i32, i32) {
    %c0_i32 = arith.constant 0 : i32
    %c0_i32_0 = arith.constant 0 : i32
    %c0_i32_1 = arith.constant 0 : i32
    %c0_i32_2 = arith.constant 0 : i32
    return %c0_i32, %c0_i32_0, %c0_i32_1 : i32, i32, i32
  }
  func.func @transform_4(%arg0: i32, %arg1: memref<2xi32, #tpu.memory_space<smem>>) -> (i32, i32, i32) {
    %c0_i32 = arith.constant 0 : i32
    %c0_i32_0 = arith.constant 0 : i32
    %c0_i32_1 = arith.constant 0 : i32
    return %arg0, %c0_i32, %c0_i32_0 : i32, i32, i32
  }
}

</mosaic_0001>

<bundles_post_ra>
// kernel: tpu_custom_call.1
= control target key start
LH: loop header
LB: loop body
LE: loop exit
PB: predicated region body
PF: predicated region fallthrough
CT: control target
= control target key end

     0   :  { %s4239_s21 = smov [#allocation3]   ;;  %s5240_s0 = inlined_call_operand.hbm [shape: s32[2], index: 0, kind: input, shape index: {}]   ;;  %s5241_s1 = inlined_call_operand.vmem [shape: f32[2,8,2], index: 1, kind: input, shape index: {}]   ;;  %s5242_s2 = inlined_call_operand.hbm [shape: f32[2,2,8], index: 2, kind: input, shape index: {}]   ;;  %s5243_s3 = inlined_call_operand.hbm [shape: f32[2,8,64], index: 3, kind: input, shape index: {}]   ;;  %s5244_s4 = inlined_call_operand.hbm [shape: f32[64,64,64], index: 4, kind: input, shape index: {}]   ;;  %s5245_s5 = inlined_call_operand.hbm [shape: f32[2,8,64], index: 5, kind: output, shape index: {}]  }
   0x1   :  { %5247 = sst [smem:[#allocation18_spill]] %s5244_s4  ;;  %s11_s20 = sshll.u32 %s5240_s0, 4  ;;  %s12_s20 = int_to_ptr.hbm [resolvable:$true] %s11_s20 }
   0x2   :  { %14 = dma.hbm_to_smem %s12_s20, 16, %s4239_s21, [#allocation2] }
   0x3   :  { %4205 = dma.done.wait [#allocation2], 16 }
   0x4   :  { %4206 = vsyncadd [#allocation2], 4294967280 }
   0x5   :  { %17 = sfence }
   0x6   :  { %18 = vsyncpa [#allocation5], 0 }
   0x7   :  { %20 = vsyncpa [#allocation5 + $0x1], 0 }
   0x8   :  { %21 = vsyncpa [#allocation8], 0 }
   0x9   :  { %23 = vsyncpa [#allocation8 + $0x1], 0 }
   0xa   :  { %24 = vsyncpa [#allocation6], 0 }
   0xb   :  { %26 = vsyncpa [#allocation6 + $0x1], 0  ;;  %s4281_s22 = smov 0   ;;  %s4283_s23 = smov 0  }
   0xc   :  { %s4285_s24 = smov 0   ;;  %s4287_s25 = smov 0  }
   0xd LB: > { %5248 = sst [smem:[#allocation16_spill]] %s4233_s24  ;;  %s4305_s28 = sadd.s32 4294967295, %s4237_s25   ;;  %s4237_s25 = sphi %s4287_s25, %s5262_s25   ;;  %s4233_s24 = sphi %s4285_s24, %s5259_s24   ;;  %s4229_s23 = sphi %s4283_s23, %s5261_s23   ;;  %s4225_s22 = sphi %s4281_s22, %s5260_s22  }
   0xe   : > { %s5249_s4 = sld [smem:[#allocation18_spill]]  ;;  %p3829_p0 = scmp.ge.s32.totalorder %s4237_s25, 1 }
   0xf   : > { %p79_p1 = scmp.eq.s32.totalorder %s4305_s28, 0  ;;  %p162_p2 = scmp.lt.s32.totalorder %s4237_s25, 3 }
  0x10   : > { %s4240_s30 = smov [#allocation9]   ;;  %s4241_s7 = smov 128  }
  0x11   : > { %p4310_p3 = pnand %p3829_p0, %p162_p2  ;;  %s175_s6 = sshll.u32 %s4240_s30, 4  ;;  %s176_s6 = int_to_ptr.vmem [resolvable:$true] %s175_s6 }
  0x12   : > { %s4242_s8 = smov 8   ;;  %s3828_s9 = sadd.s32 4294967294, %s4237_s25  }
  0x13   : > { %p3990_p4 = pneg %p4310_p3  ;;  %s4321_s10 = sadd.s32 1, %s4237_s25  }
  0x14   : > { %s173_s27 = sshll.u32 %s5249_s4, 4  ;;  %s65_s11 = sadd.s32 1, %s4233_s24  ;;  %s174_s27 = int_to_ptr.hbm [resolvable:$true] %s173_s27 }
  0x15   : > { %p3991_p6 = pnand %p3990_p4, %p79_p1  ;;  %s62_s12 = ssub.s32 %s4237_s25, %s4321_s10 }
  0x16   : > { %p72_p7 = scmp.ne.s32.totalorder %s4233_s24, %s4229_s23  ;;  %p63_p8 = scmp.eq.s32.totalorder %s62_s12, 0 }
  0x17   : > { %3993 = dma.hbm_to_vmem [thread:$0]  (!%p3991_p6), %s174_s27, 65536, %s176_s6, [#allocation8], %s4241_s7, %s4241_s7, %s4242_s8  }
  0x18   : > { %p73_p9 = scmp.eq.s32.totalorder %s4237_s25, 0  ;;  %p78_p10 = scmp.ne.s32.totalorder %s4229_s23, %s4225_s22 }
  0x19   : > { %p149_p11 = scmp.eq.s32.totalorder %s4305_s28, 1  ;;  %p155_p2 = scmp.eq.s32.totalorder %s3828_s9, 1 }
  0x1a   : > { %s4333_s13 = scalar_select %p63_p8, %s4233_s24, %s65_s11  }
  0x1b   : > { %p4335_p12 = por %p73_p9, %p72_p7  ;;  %p4341_p13 = por %p79_p1, %p78_p10 }
  0x1c   : > { %5251 = sst [smem:[#allocation17_spill]] %s4333_s13  ;;  %p4345_p0 = por %p149_p11, %p72_p7 }
  0x1d   : > { %p4006_p4 = scmp.lt.s32.totalorder %s4237_s25, 2  ;;  %s4351_s17 = sand.u32 1, %s4233_s24  }
  0x1e   : > { %p4353_p6 = por %p155_p2, %p78_p10  ;;  %s3832_s19 = sshll.u32 %s4351_s17, 1 }
  0x1f   : > { %s3833_s20 = sshll.u32 %s4237_s25, 1  ;;  %s200_s30 = scalar_lea.vmem [#allocation4], %s3832_s19 }
  0x20   : > { %s204_s26 = scalar_lea.hbm %s5242_s2, %s3833_s20  ;;  %s208_s6 = sshll.u32 %s200_s30, 4  ;;  %s209_s6 = int_to_ptr.vmem [resolvable:$true] %s208_s6 }
  0x21   : > { %s206_s27 = sshll.u32 %s204_s26, 4  ;;  %p4364_p7 = pnand %p4006_p4, %p4335_p12  ;;  %s207_s27 = int_to_ptr.hbm [resolvable:$true] %s206_s27 }
  0x22   : > { %s215_s8 = sand.u32 1, %s4237_s25   ;;  %s3834_s9 = sshll.u32 %s4351_s17, 3 }
  0x23   : > { %s197_s11 = scalar_lea.sflag [#allocation5], %s4351_s17  ;;  %s4101_s12 = sshra.s32 %s207_s27, 4  ;;  %s4102_s12 = int_to_ptr.hbm [resolvable:$true] %s4101_s12 }
  0x24   : > { %s4103_s4 = scalar_lea.hbm %s4102_s12, 2  ;;  %p4105_p9 = pneg %p4364_p7 }
  0x25   : > { %p4104_p8 = scmp.ne.s32.totalorder %s4102_s12, %s4103_s4  ;;  %s4108_s20 = scalar_lea.hbm %s5242_s2, 4 }
  0x26   : > { %p4109_p12 = scmp.lt.s32.totalorder %s4102_s12, %s5242_s2  ;;  %p4110_p2 = scmp.lt.s32.totalorder %s4108_s20, %s4103_s4 }
  0x27   : > { %p4106_p10 = pnand %p4105_p9, %p4104_p8 }
  0x28   : > { %p4111_p4 = por %p4110_p2, %p4109_p12 }
  0x29   : > { %p4107_p11 = pneg %p4106_p10 }
  0x2b   : > { %p4112_p5 = pnand %p4111_p4, %p4107_p11 }
  0x2d   : > { %4115 = shalt.err (!%p4112_p5)
}
  0x2e   : > { %3997 = dma.hbm_to_vmem [thread:$0]  (!%p4364_p7), %s207_s27, 32, %s209_s6, %s197_s11  }
  0x2f   : > { %s3835_s17 = sshll.u32 %s4237_s25, 3  ;;  %s219_s26 = scalar_lea.vmem [#allocation7], %s3834_s9 }
  0x30   : > { %s227_s30 = sshll.u32 %s219_s26, 4  ;;  %s223_s14 = scalar_lea.hbm %s5243_s3, %s3835_s17  ;;  %s228_s30 = int_to_ptr.vmem [resolvable:$true] %s227_s30 }
  0x31   : > { %s225_s19 = sshll.u32 %s223_s14, 4  ;;  %s216_s12 = scalar_lea.sflag [#allocation8], %s215_s8  ;;  %s226_s19 = int_to_ptr.hbm [resolvable:$true] %s225_s19 }
  0x32   : > { %s4131_s4 = sshra.s32 %s226_s19, 4  ;;  %s4138_s9 = scalar_lea.hbm %s5243_s3, 16  ;;  %s4132_s4 = int_to_ptr.hbm [resolvable:$true] %s4131_s4 }
  0x33   : > { %s4133_s20 = scalar_lea.hbm %s4132_s4, 8  ;;  %p4139_p11 = scmp.lt.s32.totalorder %s4132_s4, %s5243_s3 }
  0x34   : > { %p4134_p5 = scmp.ne.s32.totalorder %s4132_s4, %s4133_s20  ;;  %p4140_p12 = scmp.lt.s32.totalorder %s4138_s9, %s4133_s20 }
  0x36   : > { %p4136_p8 = pnand %p4134_p5, %p4105_p9  ;;  %p4141_p2 = por %p4140_p12, %p4139_p11 }
  0x38   : > { %p4137_p10 = pneg %p4136_p8 }
  0x3a   : > { %p4142_p4 = pnand %p4141_p2, %p4137_p10 }
  0x3c   : > { %4145 = shalt.err (!%p4142_p4)
}
  0x3d   : > { %4000 = dma.hbm_to_vmem [thread:$0]  (!%p4364_p7), %s226_s19, 128, %s228_s30, %s216_s12  }
  0x3e   : > { %236 = sbr.rel (%p4310_p3) target bundleno = 881 (0x371), region = 36  ;;  %s4402_s24 = sand.u32 (!%p4310_p3), 1, %s4229_s23  }
  0x3f   : > { %s3837_s13 = sshll.u32 (!%p4310_p3), %s4402_s24, 1  ;;  %s239_s8 = scalar_lea.sflag (!%p4310_p3), [#allocation5], %s4402_s24 }
  0x40   : > { %s4406_s0 = scalar_lea.vmem (!%p4310_p3), [#allocation4], %s3837_s13 }
  0x43   : > { %4208 = dma.done.wait (%p4341_p13), %s239_s8, 32  }
  0x44   : > { %4210 = vsyncadd (%p4341_p13), %s239_s8, 4294967264  ;;  %s248_s29 = sand.u32 1, %s4305_s28   ;;  %s3838_s7 = sshll.u32 %s4402_s24, 3 }
  0x45   : > { %s249_s17 = scalar_lea.sflag [#allocation8], %s248_s29  ;;  %s252_s26 = scalar_lea.vmem [#allocation7], %s3838_s7 }
  0x46   : > { %4212 = dma.done.wait (%p4341_p13), %s249_s17, 128  }
  0x47   : > { %4214 = vsyncadd (%p4341_p13), %s249_s17, 4294967168 }
  0x48   : > { %4216 = dma.done.wait (%p79_p1), [#allocation8], 65536  }
  0x49   : > { %4218 = vsyncadd (%p79_p1), [#allocation8], 4294901760  ;;  %p292_p3 = scmp.lt.s32.totalorder %s4305_s28, 1  ;;  %v4243_v0 = vmov 1   ;;  %v4244_v1 = vmov 0   ;;  %v4245_v5 = vmov 2.0   ;;  %v344_v20 = vlaneseq }
  0x4a   : > { %4050 = vset.pattern.permute.xlu0 %v4243_v0  ;;  %4052 = vset.pattern.permute.xlu1 %v4244_v1  ;;  %4057 = vrcp.f32 %v4245_v5  ;;  %v554_v9 = vld [vmem:[%s252_s26] sm:$0xff]  ;;  %vm560_vm0 = vcmask 1043456   ;;  %v4055_v13 = vld [vmem:[%s4406_s0 + $0x1] ss:$0 sm:$0xff]  ;;  %s297_s4 = sld [smem:[#allocation3 + %s4305_s28]]  ;;  %vm4246_vm7 = vmmov 1  }
  0x4b   : > { %s293_s30 = scalar_select %p292_p3, %s4305_s28, 1  ;;  %v555_v11 = vpack.c.bf16 %v554_v9, %v554_v9  ;;  %v4056_v21 = vld [vmem:[%s4406_s0] ss:$0 sm:$0xff]  ;;  %v345_v24 = vshrl.u32 %v344_v20, 7  ;;  %v347_v25 = vand.u32 127, %v344_v20  ;;  %v4247_v40 = vmov 0.0  }
  0x4c   : > { %s3972_s20 = sshll.u32 %s4305_s28, 3  ;;  %s291_s11 = scalar_lea.vmem [#allocation10], %s3838_s7 }
  0x4d   : > { %s3841_s14 = sshll.u32 %s293_s30, 3  ;;  %v4429_v12 = vsel %vm560_vm0, %v555_v11, 0  ;;  %vm351_vm9 = vcmp.ne.s32.totalorder %v345_v24, %v347_v25  ;;  %s3709_s9 = scalar_lea.hbm %s5245_s5, %s3972_s20 }
  0x4e   : > { %s295_s15 = scalar_lea.vmem %s5241_s1, %s3841_s14  ;;  %571 = vmatpush.bf16.msra.mxu0 %v4429_v12  ;;  %587 = vmatpush.bf16.msra.mxu1 %v4429_v12  ;;  %s3711_s21 = sshll.u32 %s291_s11, 4  ;;  %s3712_s21 = int_to_ptr.vmem [resolvable:$true] %s3711_s21 }
  0x4f   : > { %v298_v2 = vld [vmem:[%s295_s15] sm:$0xff]  ;;  %603 = vmatpush.bf16.msra.mxu2 %v4429_v12  ;;  %619 = vmatpush.bf16.msra.mxu3 %v4429_v12  ;;  %s3713_s13 = sshll.u32 %s3709_s9, 4  ;;  %s3699_s28 = scalar_lea.sflag [#allocation6], %s4402_s24  ;;  %s3714_s13 = int_to_ptr.hbm [resolvable:$true] %s3713_s13 }
  0x50   : > { %v302_v3 = vadd.f32 1.0, %v298_v2  ;;  %v3842_v4 = vadd.f32 -1.0, %v298_v2  ;;  %v4058_v6 = vpop.eup %4057  ;;  %v353_v28 = vstv %s297_s4  ;;  %s4175_s8 = sshra.s32 %s3714_s13, 4  ;;  %s4181_s17 = scalar_lea.hbm %s5245_s5, 16  ;;  %s4176_s8 = int_to_ptr.hbm [resolvable:$true] %s4175_s8 }
  0x51   : > { %v311_v7 = vmul.f32 2.0, %v4058_v6  ;;  %vm315_vm1 = vweird.f32 %v4058_v6  ;;  %vm354_vm12 = vcmp.lt.s32.totalorder %v345_v24, %v353_v28  ;;  %vm356_vm15 = vcmp.lt.s32.totalorder %v347_v25, %v353_v28  ;;  %s4177_s0 = scalar_lea.hbm %s4176_s8, 8  ;;  %p4182_p9 = scmp.lt.s32.totalorder %s4176_s8, %s5245_s5 }
  0x52   : > { %331 = vperm.xlu1 %4052, %v302_v3   ;;  %322 = vperm.xlu0 %4050, %v302_v3   ;;  %p4178_p1 = scmp.ne.s32.totalorder %s4176_s8, %s4177_s0  ;;  %p4183_p5 = scmp.lt.s32.totalorder %s4181_s17, %s4177_s0 }
  0x53   : > { %v312_v8 = vsub.f32 1.0, %v311_v7  ;;  %635 = vmatpush.bf16.msrb.mxu0 %v4429_v12  ;;  %651 = vmatpush.bf16.msrb.mxu1 %v4429_v12 }
  0x54   : > { %667 = vmatpush.bf16.msrb.mxu2 %v4429_v12  ;;  %683 = vmatpush.bf16.msrb.mxu3 %v4429_v12  ;;  %p4179_p13 = pnand %p4178_p1, %p4345_p0  ;;  %p4184_p8 = por %p4183_p5, %p4182_p9 }
  0x55   : > { %v313_v10 = vmul.f32 %v4058_v6, %v312_v8 }
  0x56   : > { %p4180_p7 = pneg %p4179_p13 }
  0x57   : > { %v314_v14 = vadd.f32 %v4058_v6, %v313_v10 }
  0x58   : > { %p4185_p10 = pnand %p4184_p8, %p4180_p7 }
  0x59   : > { %v316_v18 = vsel %vm315_vm1, %v4058_v6, %v314_v14 }
  0x5a   : > { %4053 = vset.pattern.permute.xlu1 %v4243_v0  ;;  %4051 = vset.pattern.permute.xlu0 %v4244_v1 }
  0x5b   : > { %339 = vperm.xlu1 %4053, %v3842_v4   ;;  %306 = vperm.xlu0 %4051, %v3842_v4  }
  0x63   : > { %4054 = vset.pattern.permute.xlu0 %v4243_v0 }
  0xc4   : > { %v323_v15 = vpop.permute.xlu0 %322  ;;  %v332_v16 = vpop.permute.xlu1 %331 }
  0xc5   : > { %v326_v17 = vsub.f32 %v323_v15, %v4055_v13  ;;  %vm337_vm2 = vcmp.ge.f32.partialorder %v4055_v13, %v323_v15  ;;  %vm334_vm6 = vcmp.ge.f32.partialorder %v4056_v21, %v332_v16 }
  0xc7   : > { %v327_v19 = vmul.f32 %v326_v17, %v316_v18 }
  0xc9   : > { %v328_v22 = vmul.f32 8.0, %v327_v19 }
  0xcb   : > { %v329_v29 = vfloor.f32 %v328_v22 }
  0xcd   : > { %v340_v23 = vpop.permute.xlu1 %339  ;;  %v307_v26 = vpop.permute.xlu0 %306  ;;  %v358_v32 = vmul.f32 8.0, %v329_v29 }
  0xce   : > { %vm342_vm3 = vcmp.le.f32.partialorder %v4055_v13, %v340_v23  ;;  %v309_v27 = vsub.f32 %v4056_v21, %v307_v26  ;;  %vm335_vm4 = vcmp.le.f32.partialorder %v4056_v21, %v307_v26 }
  0xcf   : > { %vm343_vm5 = vmor %vm337_vm2, %vm342_vm3  ;;  %vm556_vm3 = vcmask 64512  }
  0xd0   : > { %vm349_vm8 = vmxor %vm343_vm5, %vm4246_vm7  ;;  %v317_v30 = vmul.f32 %v316_v18, %v309_v27 }
  0xd1   : > { %vm336_vm10 = vmor %vm334_vm6, %vm335_vm4 }
  0xd2   : > { %v318_v31 = vmul.f32 8.0, %v317_v30  ;;  %vm348_vm11 = vmxor %vm336_vm10, %vm4246_vm7 }
  0xd3   : > { %vm350_vm13 = vmand %vm348_vm11, %vm349_vm8 }
  0xd4   : > { %v319_v33 = vfloor.f32 %v318_v31  ;;  %vm352_vm14 = vmand %vm350_vm13, %vm351_vm9 }
  0xd5   : > { %vm355_vm0 = vmand %vm352_vm14, %vm354_vm12 }
  0xd6   : > { %v359_v34 = vadd.f32 %v358_v32, %v319_v33  ;;  %vm357_vm1 = vmand %vm355_vm0, %vm356_vm15 }
  0xd8   : > { %v360_v35 = vsel %vm357_vm1, %v359_v34, -1.0 }
  0xd9   : > { %vm3975_vm2 = vcmp.lt.s32.totalorder %v360_v35, 0  ;;  %v3976_v36 = vceil.f32 %v360_v35  ;;  %v3977_v37 = vfloor.f32 %v360_v35 }
  0xdb   : > { %v3978_v38 = vsel %vm3975_vm2, %v3976_v36, %v3977_v37 }
  0xdc   : > { %v4442_v39 = vcvt.f32.s32 %v3978_v38 }
  0xde   : > { %vm362_vm4 = vcmp.eq.s32.totalorder %v4442_v39, 0  ;;  %vm363_vm5 = vcmp.eq.s32.totalorder %v4442_v39, 1  ;;  %vm364_vm6 = vcmp.eq.s32.totalorder %v4442_v39, 2  ;;  %vm365_vm7 = vcmp.eq.s32.totalorder %v4442_v39, 3 }
  0xdf   : > { %v426_v41 = vsel %vm362_vm4, 1.0, %v4247_v40  ;;  %v427_v42 = vsel %vm363_vm5, 1.0, %v4247_v40  ;;  %v428_v43 = vsel %vm364_vm6, 1.0, %v4247_v40  ;;  %v429_v44 = vsel %vm365_vm7, 1.0, %v4247_v40 }
  0xe0   : > { %v490_v45 = vpack.c.bf16 %v426_v41, %v426_v41  ;;  %v491_v46 = vpack.c.bf16 %v427_v42, %v427_v42  ;;  %v492_v47 = vpack.c.bf16 %v428_v43, %v428_v43  ;;  %v493_v48 = vpack.c.bf16 %v429_v44, %v429_v44 }
  0xe1   : > { %vm366_vm8 = vcmp.eq.s32.totalorder %v4442_v39, 4  ;;  %vm367_vm9 = vcmp.eq.s32.totalorder %v4442_v39, 5  ;;  %vm378_vm10 = vcmp.eq.s32.totalorder %v4442_v39, 16  ;;  %vm368_vm11 = vcmp.eq.s32.totalorder %v4442_v39, 6 }
  0xe2   : > { %3843 = vmatmul.msk.bf16.vlgmr.msra.gmra.mxu0 %vm556_vm3, %v490_v45  ;;  %3844 = vmatmul.msk.bf16.vlgmr.msra.gmra.mxu1 %vm556_vm3, %v491_v46  ;;  %v4465_v49 = vsel %vm378_vm10, 1.0, %v4247_v40  ;;  %vm379_vm12 = vcmp.eq.s32.totalorder %v4442_v39, 17  ;;  %vm380_vm13 = vcmp.eq.s32.totalorder %v4442_v39, 18  ;;  %vm369_vm14 = vcmp.eq.s32.totalorder %v4442_v39, 7 }
  0xe3   : > { %3845 = vmatmul.msk.bf16.vlgmr.msra.gmra.mxu2 %vm556_vm3, %v492_v47  ;;  %3846 = vmatmul.msk.bf16.vlgmr.msra.gmra.mxu3 %vm556_vm3, %v493_v48  ;;  %v4471_v50 = vsel %vm379_vm12, 1.0, %v4247_v40  ;;  %v4474_v51 = vsel %vm380_vm13, 1.0, %v4247_v40  ;;  %vm381_vm15 = vcmp.eq.s32.totalorder %v4442_v39, 19  ;;  %v430_v52 = vsel %vm366_vm8, 1.0, %v4247_v40 }
  0xe4   : > { %699 = vmatpush.bf16.msra.mxu0 %v4429_v12  ;;  %715 = vmatpush.bf16.msra.mxu1 %v4429_v12  ;;  %v431_v53 = vsel %vm367_vm9, 1.0, %v4247_v40  ;;  %v4480_v54 = vsel %vm381_vm15, 1.0, %v4247_v40  ;;  %vm382_vm0 = vcmp.eq.s32.totalorder %v4442_v39, 20  ;;  %v432_v55 = vsel %vm368_vm11, 1.0, %v4247_v40 }
  0xe5   : > { %731 = vmatpush.bf16.msra.mxu2 %v4429_v12  ;;  %747 = vmatpush.bf16.msra.mxu3 %v4429_v12  ;;  %v4485_v56 = vsel %vm382_vm0, 1.0, %v4247_v40  ;;  %vm383_vm1 = vcmp.eq.s32.totalorder %v4442_v39, 21  ;;  %vm384_vm2 = vcmp.eq.s32.totalorder %v4442_v39, 22  ;;  %v433_v57 = vsel %vm369_vm14, 1.0, %v4247_v40 }
  0xe6   : > { %v4491_v58 = vsel %vm383_vm1, 1.0, %v4247_v40  ;;  %v4494_v59 = vsel %vm384_vm2, 1.0, %v4247_v40  ;;  %vm385_vm4 = vcmp.eq.s32.totalorder %v4442_v39, 23  ;;  %v494_v60 = vpack.c.bf16 %v430_v52, %v430_v52 }
  0xe7   : > { %v495_v61 = vpack.c.bf16 %v431_v53, %v431_v53  ;;  %v4498_v62 = vsel %vm385_vm4, 1.0, %v4247_v40  ;;  %vm386_vm5 = vcmp.eq.s32.totalorder %v4442_v39, 24  ;;  %v496_v63 = vpack.c.bf16 %v432_v55, %v432_v55 }
  0xe8   : > { %v4502_v0 = vsel %vm386_vm5, 1.0, %v4247_v40  ;;  %vm387_vm6 = vcmp.eq.s32.totalorder %v4442_v39, 25  ;;  %vm388_vm7 = vcmp.eq.s32.totalorder %v4442_v39, 26  ;;  %v497_v1 = vpack.c.bf16 %v433_v57, %v433_v57 }
  0xe9   : > { %v4507_v2 = vsel %vm387_vm6, 1.0, %v4247_v40  ;;  %v4510_v3 = vsel %vm388_vm7, 1.0, %v4247_v40  ;;  %vm389_vm8 = vcmp.eq.s32.totalorder %v4442_v39, 27  ;;  %vm390_vm9 = vcmp.eq.s32.totalorder %v4442_v39, 28 }
  0xea   : > { %v4516_v4 = vsel %vm389_vm8, 1.0, %v4247_v40  ;;  %v4522_v5 = vsel %vm390_vm9, 1.0, %v4247_v40  ;;  %vm391_vm10 = vcmp.eq.s32.totalorder %v4442_v39, 29  ;;  %vm392_vm11 = vcmp.eq.s32.totalorder %v4442_v39, 30 }
  0xeb   : > { %v4529_v6 = vsel %vm391_vm10, 1.0, %v4247_v40  ;;  %v4532_v7 = vsel %vm392_vm11, 1.0, %v4247_v40  ;;  %vm393_vm12 = vcmp.eq.s32.totalorder %v4442_v39, 31  ;;  %vm394_vm13 = vcmp.eq.s32.totalorder %v4442_v39, 32 }
  0xec   : > { %v4538_v8 = vsel %vm393_vm12, 1.0, %v4247_v40  ;;  %v4542_v9 = vsel %vm394_vm13, 1.0, %v4247_v40  ;;  %vm395_vm14 = vcmp.eq.s32.totalorder %v4442_v39, 33  ;;  %vm396_vm15 = vcmp.eq.s32.totalorder %v4442_v39, 34 }
  0xed   : > { %v4547_v10 = vsel %vm395_vm14, 1.0, %v4247_v40  ;;  %v4550_v11 = vsel %vm396_vm15, 1.0, %v4247_v40  ;;  %vm397_vm0 = vcmp.eq.s32.totalorder %v4442_v39, 35  ;;  %vm398_vm1 = vcmp.eq.s32.totalorder %v4442_v39, 36 }
  0xee   : > { %v4554_v13 = vsel %vm397_vm0, 1.0, %v4247_v40  ;;  %vm370_vm2 = vcmp.eq.s32.totalorder %v4442_v39, 8  ;;  %v4559_v14 = vsel %vm398_vm1, 1.0, %v4247_v40  ;;  %vm399_vm4 = vcmp.eq.s32.totalorder %v4442_v39, 37 }
  0xef   : > { %vm400_vm5 = vcmp.eq.s32.totalorder %v4442_v39, 38  ;;  %vm371_vm6 = vcmp.eq.s32.totalorder %v4442_v39, 9  ;;  %v4565_v15 = vsel %vm399_vm4, 1.0, %v4247_v40  ;;  %vm401_vm7 = vcmp.eq.s32.totalorder %v4442_v39, 39 }
  0xf0   : > { %v4568_v16 = vsel %vm400_vm5, 1.0, %v4247_v40  ;;  %vm372_vm8 = vcmp.eq.s32.totalorder %v4442_v39, 10  ;;  %vm373_vm9 = vcmp.eq.s32.totalorder %v4442_v39, 11  ;;  %v4574_v17 = vsel %vm401_vm7, 1.0, %v4247_v40 }
  0xf1   : > { %vm402_vm10 = vcmp.eq.s32.totalorder %v4442_v39, 40  ;;  %v434_v18 = vsel %vm370_vm2, 1.0, %v4247_v40  ;;  %vm403_vm11 = vcmp.eq.s32.totalorder %v4442_v39, 41  ;;  %vm404_vm12 = vcmp.eq.s32.totalorder %v4442_v39, 42 }
  0xf2   : > { %3847 = vmatmul.msk.bf16.vlgmr.msrb.gmra.mxu0 %vm556_vm3, %v494_v60  ;;  %3848 = vmatmul.msk.bf16.vlgmr.msrb.gmra.mxu1 %vm556_vm3, %v495_v61  ;;  %v4579_v19 = vsel %vm402_vm10, 1.0, %v4247_v40  ;;  %v435_v20 = vsel %vm371_vm6, 1.0, %v4247_v40  ;;  %v4585_v21 = vsel %vm403_vm11, 1.0, %v4247_v40  ;;  %v4588_v22 = vsel %vm404_vm12, 1.0, %v4247_v40 }
  0xf3   : > { %3849 = vmatmul.msk.bf16.vlgmr.msrb.gmra.mxu2 %vm556_vm3, %v496_v63  ;;  %3850 = vmatmul.msk.bf16.vlgmr.msrb.gmra.mxu3 %vm556_vm3, %v497_v1  ;;  %vm405_vm13 = vcmp.eq.s32.totalorder %v4442_v39, 43  ;;  %v436_v23 = vsel %vm372_vm8, 1.0, %v4247_v40  ;;  %v437_v24 = vsel %vm373_vm9, 1.0, %v4247_v40  ;;  %vm406_vm14 = vcmp.eq.s32.totalorder %v4442_v39, 44 }
  0xf4   : > { %763 = vmatpush.bf16.msrb.mxu0 %v4429_v12  ;;  %779 = vmatpush.bf16.msrb.mxu1 %v4429_v12  ;;  %v4594_v25 = vsel %vm405_vm13, 1.0, %v4247_v40  ;;  %v498_v26 = vpack.c.bf16 %v434_v18, %v434_v18  ;;  %v4598_v27 = vsel %vm406_vm14, 1.0, %v4247_v40  ;;  %vm407_vm15 = vcmp.eq.s32.totalorder %v4442_v39, 45 }
  0xf5   : > { %795 = vmatpush.bf16.msrb.mxu2 %v4429_v12  ;;  %811 = vmatpush.bf16.msrb.mxu3 %v4429_v12  ;;  %vm408_vm0 = vcmp.eq.s32.totalorder %v4442_v39, 46  ;;  %v499_v28 = vpack.c.bf16 %v435_v20, %v435_v20  ;;  %v4603_v29 = vsel %vm407_vm15, 1.0, %v4247_v40  ;;  %vm409_vm1 = vcmp.eq.s32.totalorder %v4442_v39, 47 }
  0xf6   : > { %v4606_v30 = vsel %vm408_vm0, 1.0, %v4247_v40  ;;  %v500_v31 = vpack.c.bf16 %v436_v23, %v436_v23  ;;  %v501_v32 = vpack.c.bf16 %v437_v24, %v437_v24  ;;  %v4610_v33 = vsel %vm409_vm1, 1.0, %v4247_v40 }
  0xf7   : > { %vm410_vm2 = vcmp.eq.s32.totalorder %v4442_v39, 48  ;;  %vm411_vm4 = vcmp.eq.s32.totalorder %v4442_v39, 49  ;;  %vm412_vm5 = vcmp.eq.s32.totalorder %v4442_v39, 50  ;;  %vm413_vm6 = vcmp.eq.s32.totalorder %v4442_v39, 51 }
  0xf8   : > { %v4616_v34 = vsel %vm410_vm2, 1.0, %v4247_v40  ;;  %v4623_v35 = vsel %vm411_vm4, 1.0, %v4247_v40  ;;  %v4626_v36 = vsel %vm412_vm5, 1.0, %v4247_v40  ;;  %v4632_v37 = vsel %vm413_vm6, 1.0, %v4247_v40 }
  0xf9   : > { %vm414_vm7 = vcmp.eq.s32.totalorder %v4442_v39, 52  ;;  %vm415_vm8 = vcmp.eq.s32.totalorder %v4442_v39, 53  ;;  %vm416_vm9 = vcmp.eq.s32.totalorder %v4442_v39, 54  ;;  %vm417_vm10 = vcmp.eq.s32.totalorder %v4442_v39, 55 }
  0xfa   : > { %v4638_v38 = vsel %vm414_vm7, 1.0, %v4247_v40  ;;  %v4643_v41 = vsel %vm415_vm8, 1.0, %v4247_v40  ;;  %v4646_v42 = vsel %vm416_vm9, 1.0, %v4247_v40  ;;  %v4650_v43 = vsel %vm417_vm10, 1.0, %v4247_v40 }
  0xfb   : > { %vm418_vm11 = vcmp.eq.s32.totalorder %v4442_v39, 56  ;;  %vm419_vm12 = vcmp.eq.s32.totalorder %v4442_v39, 57  ;;  %vm420_vm13 = vcmp.eq.s32.totalorder %v4442_v39, 58  ;;  %vm374_vm14 = vcmp.eq.s32.totalorder %v4442_v39, 12 }
  0xfc   : > { %v4654_v44 = vsel %vm418_vm11, 1.0, %v4247_v40  ;;  %v4660_v45 = vsel %vm419_vm12, 1.0, %v4247_v40  ;;  %v4663_v46 = vsel %vm420_vm13, 1.0, %v4247_v40  ;;  %vm421_vm15 = vcmp.eq.s32.totalorder %v4442_v39, 59 }
  0xfd   : > { %vm375_vm0 = vcmp.eq.s32.totalorder %v4442_v39, 13  ;;  %vm376_vm1 = vcmp.eq.s32.totalorder %v4442_v39, 14  ;;  %v4669_v47 = vsel %vm421_vm15, 1.0, %v4247_v40  ;;  %vm422_vm2 = vcmp.eq.s32.totalorder %v4442_v39, 60 }
  0xfe   : > { %vm377_vm4 = vcmp.eq.s32.totalorder %v4442_v39, 15  ;;  %v4674_v48 = vsel %vm422_vm2, 1.0, %v4247_v40  ;;  %vm423_vm5 = vcmp.eq.s32.totalorder %v4442_v39, 61  ;;  %vm424_vm6 = vcmp.eq.s32.totalorder %v4442_v39, 62 }
  0xff   : > { %v4679_v52 = vsel %vm423_vm5, 1.0, %v4247_v40  ;;  %v4682_v53 = vsel %vm424_vm6, 1.0, %v4247_v40  ;;  %vm425_vm7 = vcmp.eq.s32.totalorder %v4442_v39, 63  ;;  %v438_v55 = vsel %vm374_vm14, 1.0, %v4247_v40 }
 0x100   : > { %v439_v57 = vsel %vm375_vm0, 1.0, %v4247_v40  ;;  %v4688_v60 = vsel %vm425_vm7, 1.0, %v4247_v40  ;;  %v440_v61 = vsel %vm376_vm1, 1.0, %v4247_v40  ;;  %v441_v63 = vsel %vm377_vm4, 1.0, %v4247_v40 }
 0x101   : > { %v502_v1 = vpack.c.bf16 %v438_v55, %v438_v55  ;;  %v503_v18 = vpack.c.bf16 %v439_v57, %v439_v57  ;;  %v504_v20 = vpack.c.bf16 %v440_v61, %v440_v61  ;;  %v505_v23 = vpack.c.bf16 %v441_v63, %v441_v63 }
 0x102   : > { %3851 = vmatmul.msk.bf16.vlgmr.msra.gmra.mxu0 %vm556_vm3, %v498_v26  ;;  %3852 = vmatmul.msk.bf16.vlgmr.msra.gmra.mxu1 %vm556_vm3, %v499_v28  ;;  %v506_v39 = vpack.c.bf16 %v4465_v49, %v4465_v49  ;;  %v507_v40 = vpack.c.bf16 %v4471_v50, %v4471_v50  ;;  %v508_v24 = vpack.c.bf16 %v4474_v51, %v4474_v51 }
 0x103   : > { %3853 = vmatmul.msk.bf16.vlgmr.msra.gmra.mxu2 %vm556_vm3, %v500_v31  ;;  %3854 = vmatmul.msk.bf16.vlgmr.msra.gmra.mxu3 %vm556_vm3, %v501_v32  ;;  %v509_v26 = vpack.c.bf16 %v4480_v54, %v4480_v54  ;;  %v510_v49 = vpack.c.bf16 %v4485_v56, %v4485_v56  ;;  %v511_v50 = vpack.c.bf16 %v4491_v58, %v4491_v58 }
 0x104   : > { %827 = vmatpush.bf16.msra.mxu0 %v4429_v12  ;;  %843 = vmatpush.bf16.msra.mxu1 %v4429_v12  ;;  %v512_v51 = vpack.c.bf16 %v4494_v59, %v4494_v59  ;;  %v513_v54 = vpack.c.bf16 %v4498_v62, %v4498_v62  ;;  %v514_v56 = vpack.c.bf16 %v4502_v0, %v4502_v0 }
 0x105   : > { %859 = vmatpush.bf16.msra.mxu2 %v4429_v12  ;;  %875 = vmatpush.bf16.msra.mxu3 %v4429_v12  ;;  %v515_v58 = vpack.c.bf16 %v4507_v2, %v4507_v2  ;;  %v516_v59 = vpack.c.bf16 %v4510_v3, %v4510_v3  ;;  %v517_v62 = vpack.c.bf16 %v4516_v4, %v4516_v4 }
 0x106   : > { %v518_v0 = vpack.c.bf16 %v4522_v5, %v4522_v5  ;;  %v519_v2 = vpack.c.bf16 %v4529_v6, %v4529_v6  ;;  %v520_v3 = vpack.c.bf16 %v4532_v7, %v4532_v7  ;;  %v521_v4 = vpack.c.bf16 %v4538_v8, %v4538_v8 }
 0x107   : > { %v522_v7 = vpack.c.bf16 %v4542_v9, %v4542_v9  ;;  %v523_v8 = vpack.c.bf16 %v4547_v10, %v4547_v10  ;;  %v524_v28 = vpack.c.bf16 %v4550_v11, %v4550_v11  ;;  %v525_v31 = vpack.c.bf16 %v4554_v13, %v4554_v13 }
 0x108   : > { %v526_v63 = vpack.c.bf16 %v4559_v14, %v4559_v14 }
 0x112   : > { %3855 = vmatmul.msk.bf16.vlgmr.msrb.gmra.mxu0 %vm556_vm3, %v502_v1  ;;  %3856 = vmatmul.msk.bf16.vlgmr.msrb.gmra.mxu1 %vm556_vm3, %v503_v18  ;;  %v527_v1 = vpack.c.bf16 %v4565_v15, %v4565_v15  ;;  %v528_v18 = vpack.c.bf16 %v4568_v16, %v4568_v16 }
 0x113   : > { %3857 = vmatmul.msk.bf16.vlgmr.msrb.gmra.mxu2 %vm556_vm3, %v504_v20  ;;  %3858 = vmatmul.msk.bf16.vlgmr.msrb.gmra.mxu3 %vm556_vm3, %v505_v23  ;;  %v529_v20 = vpack.c.bf16 %v4574_v17, %v4574_v17 }
 0x114   : > { %891 = vmatpush.bf16.msrb.mxu0 %v4429_v12  ;;  %907 = vmatpush.bf16.msrb.mxu1 %v4429_v12 }
 0x115   : > { %923 = vmatpush.bf16.msrb.mxu2 %v4429_v12  ;;  %939 = vmatpush.bf16.msrb.mxu3 %v4429_v12 }
 0x122   : > { %3859 = vmatmul.msk.bf16.vlgmr.msra.gmra.mxu0 %vm556_vm3, %v506_v39  ;;  %3860 = vmatmul.msk.bf16.vlgmr.msra.gmra.mxu1 %vm556_vm3, %v507_v40 }
 0x123   : > { %3861 = vmatmul.msk.bf16.vlgmr.msra.gmra.mxu2 %vm556_vm3, %v508_v24  ;;  %3862 = vmatmul.msk.bf16.vlgmr.msra.gmra.mxu3 %vm556_vm3, %v509_v26  ;;  %v530_v26 = vpack.c.bf16 %v4579_v19, %v4579_v19 }
 0x124   : > { %955 = vmatpush.bf16.msra.mxu0 %v4429_v12  ;;  %971 = vmatpush.bf16.msra.mxu1 %v4429_v12 }
 0x125   : > { %987 = vmatpush.bf16.msra.mxu2 %v4429_v12  ;;  %1003 = vmatpush.bf16.msra.mxu3 %v4429_v12 }
 0x132   : > { %3863 = vmatmul.msk.bf16.vlgmr.msrb.gmra.mxu0 %vm556_vm3, %v510_v49  ;;  %3864 = vmatmul.msk.bf16.vlgmr.msrb.gmra.mxu1 %vm556_vm3, %v511_v50  ;;  %v531_v49 = vpack.c.bf16 %v4585_v21, %v4585_v21  ;;  %v532_v50 = vpack.c.bf16 %v4588_v22, %v4588_v22 }
 0x133   : > { %3865 = vmatmul.msk.bf16.vlgmr.msrb.gmra.mxu2 %vm556_vm3, %v512_v51  ;;  %3866 = vmatmul.msk.bf16.vlgmr.msrb.gmra.mxu3 %vm556_vm3, %v513_v54  ;;  %v533_v51 = vpack.c.bf16 %v4594_v25, %v4594_v25 }
 0x134   : > { %1019 = vmatpush.bf16.msrb.mxu0 %v4429_v12  ;;  %1035 = vmatpush.bf16.msrb.mxu1 %v4429_v12 }
 0x135   : > { %1051 = vmatpush.bf16.msrb.mxu2 %v4429_v12  ;;  %1067 = vmatpush.bf16.msrb.mxu3 %v4429_v12 }
 0x142   : > { %3867 = vmatmul.msk.bf16.vlgmr.msra.gmra.mxu0 %vm556_vm3, %v514_v56  ;;  %3868 = vmatmul.msk.bf16.vlgmr.msra.gmra.mxu1 %vm556_vm3, %v515_v58 }
 0x143   : > { %3869 = vmatmul.msk.bf16.vlgmr.msra.gmra.mxu2 %vm556_vm3, %v516_v59  ;;  %3870 = vmatmul.msk.bf16.vlgmr.msra.gmra.mxu3 %vm556_vm3, %v517_v62  ;;  %v534_v62 = vpack.c.bf16 %v4598_v27, %v4598_v27 }
 0x144   : > { %1083 = vmatpush.bf16.msra.mxu0 %v4429_v12  ;;  %1099 = vmatpush.bf16.msra.mxu1 %v4429_v12 }
 0x145   : > { %1115 = vmatpush.bf16.msra.mxu2 %v4429_v12  ;;  %1131 = vmatpush.bf16.msra.mxu3 %v4429_v12 }
 0x152   : > { %3871 = vmatmul.msk.bf16.vlgmr.msrb.gmra.mxu0 %vm556_vm3, %v518_v0  ;;  %3872 = vmatmul.msk.bf16.vlgmr.msrb.gmra.mxu1 %vm556_vm3, %v519_v2  ;;  %v535_v0 = vpack.c.bf16 %v4603_v29, %v4603_v29  ;;  %v536_v2 = vpack.c.bf16 %v4606_v30, %v4606_v30 }
 0x153   : > { %3873 = vmatmul.msk.bf16.vlgmr.msrb.gmra.mxu2 %vm556_vm3, %v520_v3  ;;  %3874 = vmatmul.msk.bf16.vlgmr.msrb.gmra.mxu3 %vm556_vm3, %v521_v4  ;;  %v537_v3 = vpack.c.bf16 %v4610_v33, %v4610_v33 }
 0x154   : > { %1147 = vmatpush.bf16.msrb.mxu0 %v4429_v12  ;;  %1163 = vmatpush.bf16.msrb.mxu1 %v4429_v12 }
 0x155   : > { %1179 = vmatpush.bf16.msrb.mxu2 %v4429_v12  ;;  %1195 = vmatpush.bf16.msrb.mxu3 %v4429_v12 }
 0x15f   : > { %v4764_v5 = vpop.f32.mrf.mxu0  ;;  %v4766_v6 = vpop.f32.mrf.mxu1 }
 0x162   : > { %3875 = vmatmul.msk.bf16.vlgmr.msra.gmra.mxu0 %vm556_vm3, %v522_v7  ;;  %3876 = vmatmul.msk.bf16.vlgmr.msra.gmra.mxu1 %vm556_vm3, %v523_v8 }
 0x163   : > { %3877 = vmatmul.msk.bf16.vlgmr.msra.gmra.mxu2 %vm556_vm3, %v524_v28  ;;  %3878 = vmatmul.msk.bf16.vlgmr.msra.gmra.mxu3 %vm556_vm3, %v525_v31  ;;  %v538_v31 = vpack.c.bf16 %v4616_v34, %v4616_v34 }
 0x164   : > { %1211 = vmatpush.bf16.msra.mxu0 %v4429_v12  ;;  %1227 = vmatpush.bf16.msra.mxu1 %v4429_v12 }
 0x165   : > { %1243 = vmatpush.bf16.msra.mxu2 %v4429_v12  ;;  %1259 = vmatpush.bf16.msra.mxu3 %v4429_v12 }
 0x166   : > { %v4784_v9 = vpop.f32.mrf.mxu2  ;;  %v4786_v10 = vpop.f32.mrf.mxu3 }
 0x167   : > { %v575_v11 = vpop.f32.mrf.mxu0  ;;  %v591_v13 = vpop.f32.mrf.mxu1 }
 0x168   : > { %v539_v11 = vpack.c.bf16 %v4623_v35, %v4623_v35  ;;  %v540_v13 = vpack.c.bf16 %v4626_v36, %v4626_v36 }
 0x16e   : > { %v607_v32 = vpop.f32.mrf.mxu2  ;;  %v623_v55 = vpop.f32.mrf.mxu3 }
 0x16f   : > { %v4788_v57 = vpop.f32.mrf.mxu0  ;;  %v4790_v61 = vpop.f32.mrf.mxu1  ;;  %v541_v32 = vpack.c.bf16 %v4632_v37, %v4632_v37 }
 0x172   : > { %3879 = vmatmul.msk.bf16.vlgmr.msrb.gmra.mxu0 %vm556_vm3, %v526_v63  ;;  %3880 = vmatmul.msk.bf16.vlgmr.msrb.gmra.mxu1 %vm556_vm3, %v527_v1 }
 0x173   : > { %3881 = vmatmul.msk.bf16.vlgmr.msrb.gmra.mxu2 %vm556_vm3, %v528_v18  ;;  %3882 = vmatmul.msk.bf16.vlgmr.msrb.gmra.mxu3 %vm556_vm3, %v529_v20  ;;  %v542_v20 = vpack.c.bf16 %v4638_v38, %v4638_v38 }
 0x174   : > { %1275 = vmatpush.bf16.msrb.mxu0 %v4429_v12  ;;  %1291 = vmatpush.bf16.msrb.mxu1 %v4429_v12 }
 0x175   : > { %1307 = vmatpush.bf16.msrb.mxu2 %v4429_v12  ;;  %1323 = vmatpush.bf16.msrb.mxu3 %v4429_v12 }
 0x176   : > { %v4808_v14 = vpop.f32.mrf.mxu2  ;;  %v4810_v15 = vpop.f32.mrf.mxu3 }
 0x177   : > { %v639_v16 = vpop.f32.mrf.mxu0  ;;  %v655_v17 = vpop.f32.mrf.mxu1 }
 0x178   : > { %v543_v16 = vpack.c.bf16 %v4643_v41, %v4643_v41  ;;  %v544_v17 = vpack.c.bf16 %v4646_v42, %v4646_v42 }
 0x17e   : > { %v671_v23 = vpop.f32.mrf.mxu2  ;;  %v687_v39 = vpop.f32.mrf.mxu3 }
 0x17f   : > { %v4812_v40 = vpop.f32.mrf.mxu0  ;;  %v4814_v24 = vpop.f32.mrf.mxu1  ;;  %v545_v23 = vpack.c.bf16 %v4650_v43, %v4650_v43 }
 0x182   : > { %3883 = vmatmul.msk.bf16.vlgmr.msra.gmra.mxu0 %vm556_vm3, %v530_v26  ;;  %3884 = vmatmul.msk.bf16.vlgmr.msra.gmra.mxu1 %vm556_vm3, %v531_v49 }
 0x183   : > { %3885 = vmatmul.msk.bf16.vlgmr.msra.gmra.mxu2 %vm556_vm3, %v532_v50  ;;  %3886 = vmatmul.msk.bf16.vlgmr.msra.gmra.mxu3 %vm556_vm3, %v533_v51  ;;  %v546_v51 = vpack.c.bf16 %v4654_v44, %v4654_v44  ;;  %v1591_v44 = vld [vmem:[#allocation9 + $0x30] sm:$0xff] }
 0x184   : > { %1339 = vmatpush.bf16.msra.mxu0 %v4429_v12  ;;  %1355 = vmatpush.bf16.msra.mxu1 %v4429_v12 }
 0x185   : > { %1371 = vmatpush.bf16.msra.mxu2 %v4429_v12  ;;  %1387 = vmatpush.bf16.msra.mxu3 %v4429_v12 }
 0x186   : > { %v4832_v19 = vpop.f32.mrf.mxu2  ;;  %v4834_v21 = vpop.f32.mrf.mxu3 }
 0x187   : > { %v703_v22 = vpop.f32.mrf.mxu0  ;;  %v719_v25 = vpop.f32.mrf.mxu1 }
 0x188   : > { %v547_v22 = vpack.c.bf16 %v4660_v45, %v4660_v45  ;;  %v549_v25 = vpack.c.bf16 %v4669_v47, %v4669_v47  ;;  %v1599_v45 = vld [vmem:[#allocation9 + $0x70] sm:$0xff]  ;;  %v1590_v47 = vld [vmem:[#allocation9 + $0x28] sm:$0xff] }
 0x18e   : > { %v735_v54 = vpop.f32.mrf.mxu2  ;;  %v751_v56 = vpop.f32.mrf.mxu3 }
 0x18f   : > { %v4836_v58 = vpop.f32.mrf.mxu0  ;;  %v4838_v59 = vpop.f32.mrf.mxu1  ;;  %v1592_v54 = vld [vmem:[#allocation9 + $0x38] sm:$0xff] }
 0x190   : > { %v1600_v56 = vld [vmem:[#allocation9 + $0x78] sm:$0xff] }
 0x192   : > { %3887 = vmatmul.msk.bf16.vlgmr.msrb.gmra.mxu0 %vm556_vm3, %v534_v62  ;;  %3888 = vmatmul.msk.bf16.vlgmr.msrb.gmra.mxu1 %vm556_vm3, %v535_v0  ;;  %v1608_v62 = vld [vmem:[#allocation9 + $0xb8] sm:$0xff] }
 0x193   : > { %3889 = vmatmul.msk.bf16.vlgmr.msrb.gmra.mxu2 %vm556_vm3, %v536_v2  ;;  %3890 = vmatmul.msk.bf16.vlgmr.msrb.gmra.mxu3 %vm556_vm3, %v537_v3  ;;  %v1616_v0 = vld [vmem:[#allocation9 + $0xf8] sm:$0xff]  ;;  %v1615_v2 = vld [vmem:[#allocation9 + $0xf0] sm:$0xff]  ;;  %v1598_v3 = vld [vmem:[#allocation9 + $0x68] sm:$0xff] }
 0x194   : > { %1403 = vmatpush.bf16.msrb.mxu0 %v4429_v12  ;;  %1419 = vmatpush.bf16.msrb.mxu1 %v4429_v12 }
 0x195   : > { %1435 = vmatpush.bf16.msrb.mxu2 %v4429_v12  ;;  %1451 = vmatpush.bf16.msrb.mxu3 %v4429_v12 }
 0x196   : > { %v4856_v27 = vpop.f32.mrf.mxu2  ;;  %v4858_v29 = vpop.f32.mrf.mxu3 }
 0x197   : > { %v767_v30 = vpop.f32.mrf.mxu0  ;;  %v783_v33 = vpop.f32.mrf.mxu1 }
 0x19e   : > { %v799_v4 = vpop.f32.mrf.mxu2  ;;  %v815_v7 = vpop.f32.mrf.mxu3 }
 0x19f   : > { %v4860_v8 = vpop.f32.mrf.mxu0  ;;  %v4862_v28 = vpop.f32.mrf.mxu1  ;;  %v1606_v4 = vld [vmem:[#allocation9 + $0xa8] sm:$0xff] }
 0x1a0   : > { %v1614_v7 = vld [vmem:[#allocation9 + $0xe8] sm:$0xff] }
 0x1a2   : > { %3891 = vmatmul.msk.bf16.vlgmr.msra.gmra.mxu0 %vm556_vm3, %v538_v31  ;;  %3892 = vmatmul.msk.bf16.vlgmr.msra.gmra.mxu1 %vm556_vm3, %v539_v11 }
 0x1a3   : > { %3893 = vmatmul.msk.bf16.vlgmr.msra.gmra.mxu2 %vm556_vm3, %v540_v13  ;;  %3894 = vmatmul.msk.bf16.vlgmr.msra.gmra.mxu3 %vm556_vm3, %v541_v32  ;;  %v1589_v13 = vld [vmem:[#allocation9 + $0x20] sm:$0xff] }
 0x1a4   : > { %1467 = vmatpush.bf16.msra.mxu0 %v4429_v12  ;;  %1483 = vmatpush.bf16.msra.mxu1 %v4429_v12  ;;  %v1597_v32 = vld [vmem:[#allocation9 + $0x60] sm:$0xff] }
 0x1a5   : > { %1499 = vmatpush.bf16.msra.mxu2 %v4429_v12  ;;  %1515 = vmatpush.bf16.msra.mxu3 %v4429_v12 }
 0x1a6   : > { %v4880_v34 = vpop.f32.mrf.mxu2  ;;  %v4882_v35 = vpop.f32.mrf.mxu3 }
 0x1a7   : > { %v831_v36 = vpop.f32.mrf.mxu0  ;;  %v847_v37 = vpop.f32.mrf.mxu1 }
 0x1a8   : > { %v1605_v36 = vld [vmem:[#allocation9 + $0xa0] sm:$0xff] }
 0x1a9   : > { %v1613_v37 = vld [vmem:[#allocation9 + $0xe0] sm:$0xff] }
 0x1ae   : > { %v863_v55 = vpop.f32.mrf.mxu2  ;;  %v879_v63 = vpop.f32.mrf.mxu3 }
 0x1af   : > { %v4884_v1 = vpop.f32.mrf.mxu0  ;;  %v4886_v18 = vpop.f32.mrf.mxu1  ;;  %v1588_v55 = vld [vmem:[#allocation9 + $0x18] sm:$0xff] }
 0x1b0   : > { %v1596_v63 = vld [vmem:[#allocation9 + $0x58] sm:$0xff] }
 0x1b2   : > { %3895 = vmatmul.msk.bf16.vlgmr.msrb.gmra.mxu0 %vm556_vm3, %v542_v20  ;;  %3896 = vmatmul.msk.bf16.vlgmr.msrb.gmra.mxu1 %vm556_vm3, %v543_v16  ;;  %v1604_v20 = vld [vmem:[#allocation9 + $0x98] sm:$0xff] }
 0x1b3   : > { %3897 = vmatmul.msk.bf16.vlgmr.msrb.gmra.mxu2 %vm556_vm3, %v544_v17  ;;  %3898 = vmatmul.msk.bf16.vlgmr.msrb.gmra.mxu3 %vm556_vm3, %v545_v23  ;;  %v1612_v16 = vld [vmem:[#allocation9 + $0xd8] sm:$0xff]  ;;  %v1587_v17 = vld [vmem:[#allocation9 + $0x10] sm:$0xff] }
 0x1b4   : > { %1531 = vmatpush.bf16.msrb.mxu0 %v4429_v12  ;;  %1547 = vmatpush.bf16.msrb.mxu1 %v4429_v12  ;;  %v1595_v23 = vld [vmem:[#allocation9 + $0x50] sm:$0xff] }
 0x1b5   : > { %1563 = vmatpush.bf16.msrb.mxu2 %v4429_v12  ;;  %1579 = vmatpush.bf16.msrb.mxu3 %v4429_v12  ;;  %v548_v12 = vpack.c.bf16 %v4663_v46, %v4663_v46  ;;  %v1607_v46 = vld [vmem:[#allocation9 + $0xb0] sm:$0xff] }
 0x1b6   : > { %v4904_v38 = vpop.f32.mrf.mxu2  ;;  %v4906_v41 = vpop.f32.mrf.mxu3 }
 0x1b7   : > { %v895_v42 = vpop.f32.mrf.mxu0  ;;  %v911_v43 = vpop.f32.mrf.mxu1 }
 0x1b8   : > { %v1603_v42 = vld [vmem:[#allocation9 + $0x90] sm:$0xff] }
 0x1b9   : > { %v1611_v43 = vld [vmem:[#allocation9 + $0xd0] sm:$0xff] }
 0x1be   : > { %v927_v39 = vpop.f32.mrf.mxu2  ;;  %v943_v26 = vpop.f32.mrf.mxu3 }
 0x1bf   : > { %v4908_v49 = vpop.f32.mrf.mxu0  ;;  %v4910_v50 = vpop.f32.mrf.mxu1  ;;  %v1586_v39 = vld [vmem:[#allocation9 + $0x8] sm:$0xff] }
 0x1c0   : > { %v1594_v26 = vld [vmem:[#allocation9 + $0x48] sm:$0xff] }
 0x1c2   : > { %3899 = vmatmul.msk.bf16.vlgmr.msra.gmra.mxu0 %vm556_vm3, %v546_v51  ;;  %3900 = vmatmul.msk.bf16.vlgmr.msra.gmra.mxu1 %vm556_vm3, %v547_v22 }
 0x1c3   : > { %3901 = vmatmul.msk.bf16.vlgmr.msra.gmra.mxu2 %vm556_vm3, %v548_v12  ;;  %3902 = vmatmul.msk.bf16.vlgmr.msra.gmra.mxu3 %vm556_vm3, %v549_v25  ;;  %v1602_v12 = vld [vmem:[#allocation9 + $0x88] sm:$0xff] }
 0x1c4   : > { %2109 = vmatpush.msra.mxu0 %v1592_v54  ;;  %2132 = vmatpush.msra.mxu1 %v1600_v56  ;;  %v1610_v25 = vld [vmem:[#allocation9 + $0xc8] sm:$0xff] }
 0x1c5   : > { %2155 = vmatpush.msra.mxu2 %v1608_v62  ;;  %2178 = vmatpush.msra.mxu3 %v1616_v0  ;;  %v550_v62 = vpack.c.bf16 %v4674_v48, %v4674_v48  ;;  %v551_v0 = vpack.c.bf16 %v4679_v52, %v4679_v52  ;;  %v1624_v48 = vld [vmem:[#allocation9 + $0x138] sm:$0xff] }
 0x1c6   : > { %v4924_v30 = vpop.f32.mrf.mxu2  ;;  %v4926_v33 = vpop.f32.mrf.mxu3  ;;  %2110 = vmatpush.msra.mxu0 %v1591_v44  ;;  %2133 = vmatpush.msra.mxu1 %v1599_v45  ;;  %v552_v44 = vpack.c.bf16 %v4682_v53, %v4682_v53  ;;  %v553_v45 = vpack.c.bf16 %v4688_v60, %v4688_v60  ;;  %v1632_v52 = vld [vmem:[#allocation9 + $0x178] sm:$0xff]  ;;  %v1623_v60 = vld [vmem:[#allocation9 + $0x130] sm:$0xff] }
 0x1c7   : > { %2156 = vmatpush.msra.mxu2 %v1607_v46  ;;  %2179 = vmatpush.msra.mxu3 %v1615_v2  ;;  %v959_v31 = vpop.f32.mrf.mxu0  ;;  %v975_v11 = vpop.f32.mrf.mxu1  ;;  %v1585_v46 = vld [vmem:[#allocation9] sm:$0xff]  ;;  %v1640_v53 = vld [vmem:[#allocation9 + $0x1b8] sm:$0xff] }
 0x1c8   : > { %2111 = vmatpush.msra.mxu0 %v1590_v47  ;;  %2134 = vmatpush.msra.mxu1 %v1598_v3  ;;  %v1593_v2 = vld [vmem:[#allocation9 + $0x40] sm:$0xff] }
 0x1c9   : > { %2157 = vmatpush.msra.mxu2 %v1606_v4  ;;  %2180 = vmatpush.msra.mxu3 %v1614_v7  ;;  %v1601_v47 = vld [vmem:[#allocation9 + $0x80] sm:$0xff]  ;;  %v1648_v4 = vld [vmem:[#allocation9 + $0x1f8] sm:$0xff]  ;;  %v1631_v7 = vld [vmem:[#allocation9 + $0x170] sm:$0xff] }
 0x1ca   : > { %2112 = vmatpush.msra.mxu0 %v1589_v13  ;;  %2135 = vmatpush.msra.mxu1 %v1597_v32  ;;  %v1609_v3 = vld [vmem:[#allocation9 + $0xc0] sm:$0xff]  ;;  %v1639_v13 = vld [vmem:[#allocation9 + $0x1b0] sm:$0xff] }
 0x1cb   : > { %2158 = vmatpush.msra.mxu2 %v1605_v36  ;;  %2181 = vmatpush.msra.mxu3 %v1613_v37  ;;  %v1647_v32 = vld [vmem:[#allocation9 + $0x1f0] sm:$0xff] }
 0x1cc   : > { %2113 = vmatpush.msra.mxu0 %v1588_v55  ;;  %2136 = vmatpush.msra.mxu1 %v1596_v63  ;;  %v1622_v55 = vld [vmem:[#allocation9 + $0x128] sm:$0xff] }
 0x1cd   : > { %2159 = vmatpush.msra.mxu2 %v1604_v20  ;;  %2182 = vmatpush.msra.mxu3 %v1612_v16  ;;  %v1630_v63 = vld [vmem:[#allocation9 + $0x168] sm:$0xff] }
 0x1ce   : > { %v991_v51 = vpop.f32.mrf.mxu2  ;;  %v1007_v22 = vpop.f32.mrf.mxu3  ;;  %2114 = vmatpush.msra.mxu0 %v1587_v17  ;;  %2137 = vmatpush.msra.mxu1 %v1595_v23  ;;  %v1638_v20 = vld [vmem:[#allocation9 + $0x1a8] sm:$0xff]  ;;  %v1621_v17 = vld [vmem:[#allocation9 + $0x120] sm:$0xff] }
 0x1cf   : > { %2160 = vmatpush.msra.mxu2 %v1603_v42  ;;  %2183 = vmatpush.msra.mxu3 %v1611_v43  ;;  %v4928_v54 = vpop.f32.mrf.mxu0  ;;  %v4930_v56 = vpop.f32.mrf.mxu1  ;;  %v1646_v16 = vld [vmem:[#allocation9 + $0x1e8] sm:$0xff]  ;;  %v1629_v23 = vld [vmem:[#allocation9 + $0x160] sm:$0xff]  ;;  %v1636_v51 = vld [vmem:[#allocation9 + $0x198] sm:$0xff] }
 0x1d0   : > { %2115 = vmatpush.msra.mxu0 %v1586_v39  ;;  %2138 = vmatpush.msra.mxu1 %v1594_v26  ;;  %v1637_v42 = vld [vmem:[#allocation9 + $0x1a0] sm:$0xff]  ;;  %v1620_v39 = vld [vmem:[#allocation9 + $0x118] sm:$0xff] }
 0x1d1   : > { %2161 = vmatpush.msra.mxu2 %v1602_v12  ;;  %2184 = vmatpush.msra.mxu3 %v1610_v25  ;;  %v1645_v43 = vld [vmem:[#allocation9 + $0x1e0] sm:$0xff]  ;;  %v1628_v26 = vld [vmem:[#allocation9 + $0x158] sm:$0xff]  ;;  %v1619_v12 = vld [vmem:[#allocation9 + $0x110] sm:$0xff] }
 0x1d2   : > { %3903 = vmatmul.msk.bf16.vlgmr.msrb.gmra.mxu0 %vm556_vm3, %v550_v62  ;;  %3904 = vmatmul.msk.bf16.vlgmr.msrb.gmra.mxu1 %vm556_vm3, %v551_v0  ;;  %v1644_v22 = vld [vmem:[#allocation9 + $0x1d8] sm:$0xff]  ;;  %v1627_v25 = vld [vmem:[#allocation9 + $0x150] sm:$0xff] }
 0x1d3   : > { %3905 = vmatmul.msk.bf16.vlgmr.msrb.gmra.mxu2 %vm556_vm3, %v552_v44  ;;  %3906 = vmatmul.msk.bf16.vlgmr.msrb.gmra.mxu3 %vm556_vm3, %v553_v45  ;;  %v1635_v44 = vld [vmem:[#allocation9 + $0x190] sm:$0xff]  ;;  %vm2097_vm3 = vcmask 523264  }
 0x1d4   : > { %2116 = vmatpush.msra.mxu0 %v1585_v46  ;;  %2139 = vmatpush.msra.mxu1 %v1593_v2  ;;  %v1643_v45 = vld [vmem:[#allocation9 + $0x1d0] sm:$0xff] }
 0x1d5   : > { %2162 = vmatpush.msra.mxu2 %v1601_v47  ;;  %2185 = vmatpush.msra.mxu3 %v1609_v3  ;;  %v1618_v47 = vld [vmem:[#allocation9 + $0x108] sm:$0xff] }
 0x1d6   : > { %2201 = vmatpush.msrb.mxu0 %v1624_v48  ;;  %2224 = vmatpush.msrb.mxu1 %v1632_v52  ;;  %v4944_v31 = vpop.f32.mrf.mxu2  ;;  %v4946_v11 = vpop.f32.mrf.mxu3  ;;  %v1626_v3 = vld [vmem:[#allocation9 + $0x148] sm:$0xff] }
 0x1d7   : > { %2247 = vmatpush.msrb.mxu2 %v1640_v53  ;;  %2270 = vmatpush.msrb.mxu3 %v1648_v4  ;;  %v1023_v36 = vpop.f32.mrf.mxu0  ;;  %v1039_v37 = vpop.f32.mrf.mxu1  ;;  %v1634_v48 = vld [vmem:[#allocation9 + $0x188] sm:$0xff]  ;;  %v1617_v53 = vld [vmem:[#allocation9 + $0x100] sm:$0xff] }
 0x1d8   : > { %2202 = vmatpush.msrb.mxu0 %v1623_v60  ;;  %2225 = vmatpush.msrb.mxu1 %v1631_v7  ;;  %v1642_v52 = vld [vmem:[#allocation9 + $0x1c8] sm:$0xff]  ;;  %v1625_v4 = vld [vmem:[#allocation9 + $0x140] sm:$0xff]  ;;  %v1672_v36 = vld [vmem:[#allocation9 + $0x2b8] sm:$0xff] }
 0x1d9   : > { %2248 = vmatpush.msrb.mxu2 %v1639_v13  ;;  %2271 = vmatpush.msrb.mxu3 %v1647_v32  ;;  %v1633_v60 = vld [vmem:[#allocation9 + $0x180] sm:$0xff]  ;;  %v1656_v13 = vld [vmem:[#allocation9 + $0x238] sm:$0xff] }
 0x1da   : > { %2203 = vmatpush.msrb.mxu0 %v1622_v55  ;;  %2226 = vmatpush.msrb.mxu1 %v1630_v63  ;;  %v1641_v7 = vld [vmem:[#allocation9 + $0x1c0] sm:$0xff]  ;;  %v1664_v32 = vld [vmem:[#allocation9 + $0x278] sm:$0xff] }
 0x1db   : > { %2249 = vmatpush.msrb.mxu2 %v1638_v20  ;;  %2272 = vmatpush.msrb.mxu3 %v1646_v16  ;;  %v1680_v37 = vld [vmem:[#allocation9 + $0x2f8] sm:$0xff]  ;;  %v1655_v20 = vld [vmem:[#allocation9 + $0x230] sm:$0xff] }
 0x1dc   : > { %2204 = vmatpush.msrb.mxu0 %v1621_v17  ;;  %2227 = vmatpush.msrb.mxu1 %v1629_v23  ;;  %v1663_v16 = vld [vmem:[#allocation9 + $0x270] sm:$0xff] }
 0x1dd   : > { %2250 = vmatpush.msrb.mxu2 %v1637_v42  ;;  %2273 = vmatpush.msrb.mxu3 %v1645_v43  ;;  %v1654_v42 = vld [vmem:[#allocation9 + $0x228] sm:$0xff] }
 0x1de   : > { %2205 = vmatpush.msrb.mxu0 %v1620_v39  ;;  %2228 = vmatpush.msrb.mxu1 %v1628_v26  ;;  %v1055_v62 = vpop.f32.mrf.mxu2  ;;  %v1071_v0 = vpop.f32.mrf.mxu3  ;;  %v1662_v43 = vld [vmem:[#allocation9 + $0x268] sm:$0xff] }
 0x1df   : > { %2251 = vmatpush.msrb.mxu2 %v1636_v51  ;;  %2274 = vmatpush.msrb.mxu3 %v1644_v22  ;;  %v4948_v46 = vpop.f32.mrf.mxu0  ;;  %v4950_v2 = vpop.f32.mrf.mxu1  ;;  %v1670_v39 = vld [vmem:[#allocation9 + $0x2a8] sm:$0xff]  ;;  %v1669_v51 = vld [vmem:[#allocation9 + $0x2a0] sm:$0xff]  ;;  %v1652_v62 = vld [vmem:[#allocation9 + $0x218] sm:$0xff] }
 0x1e0   : > { %2206 = vmatpush.msrb.mxu0 %v1619_v12  ;;  %2229 = vmatpush.msrb.mxu1 %v1627_v25  ;;  %v1678_v26 = vld [vmem:[#allocation9 + $0x2e8] sm:$0xff]  ;;  %v1677_v22 = vld [vmem:[#allocation9 + $0x2e0] sm:$0xff]  ;;  %v1660_v0 = vld [vmem:[#allocation9 + $0x258] sm:$0xff] }
 0x1e1   : > { %2252 = vmatpush.msrb.mxu2 %v1635_v44  ;;  %2275 = vmatpush.msrb.mxu3 %v1643_v45 }
 0x1e2   : > { %2207 = vmatpush.msrb.mxu0 %v1618_v47  ;;  %2230 = vmatpush.msrb.mxu1 %v1626_v3  ;;  %v1668_v47 = vld [vmem:[#allocation9 + $0x298] sm:$0xff] }
 0x1e3   : > { %2253 = vmatpush.msrb.mxu2 %v1634_v48  ;;  %2276 = vmatpush.msrb.mxu3 %v1642_v52  ;;  %v1676_v3 = vld [vmem:[#allocation9 + $0x2d8] sm:$0xff]  ;;  %v1651_v48 = vld [vmem:[#allocation9 + $0x210] sm:$0xff] }
 0x1e4   : > { %2208 = vmatpush.msrb.mxu0 %v1617_v53  ;;  %2231 = vmatpush.msrb.mxu1 %v1625_v4  ;;  %v1659_v52 = vld [vmem:[#allocation9 + $0x250] sm:$0xff] }
 0x1e5   : > { %2254 = vmatpush.msrb.mxu2 %v1633_v60  ;;  %2277 = vmatpush.msrb.mxu3 %v1641_v7  ;;  %v1667_v53 = vld [vmem:[#allocation9 + $0x290] sm:$0xff]  ;;  %v1658_v60 = vld [vmem:[#allocation9 + $0x248] sm:$0xff] }
 0x1e6   : > { %3907 = vmatmul.msk.f32.vlgmr.msra.gmra.mxu0 %vm2097_vm3, %v4764_v5  ;;  %3908 = vmatmul.msk.f32.vlgmr.msra.gmra.mxu1 %vm2097_vm3, %v4766_v6  ;;  %v4956_v55 = vpop.f32.mrf.mxu2  ;;  %v4958_v63 = vpop.f32.mrf.mxu3  ;;  %v1671_v5 = vld [vmem:[#allocation9 + $0x2b0] sm:$0xff]  ;;  %v1674_v7 = vld [vmem:[#allocation9 + $0x2c8] sm:$0xff] }
 0x1e7   : > { %3909 = vmatmul.msk.f32.vlgmr.msra.gmra.mxu2 %vm2097_vm3, %v4784_v9  ;;  %3910 = vmatmul.msk.f32.vlgmr.msra.gmra.mxu3 %vm2097_vm3, %v4786_v10  ;;  %v1087_v17 = vpop.f32.mrf.mxu0  ;;  %v1103_v23 = vpop.f32.mrf.mxu1  ;;  %v1679_v6 = vld [vmem:[#allocation9 + $0x2f0] sm:$0xff]  ;;  %v1653_v9 = vld [vmem:[#allocation9 + $0x220] sm:$0xff] }
 0x1e8   : > { %2293 = vmatpush.msra.mxu0 %v1656_v13  ;;  %2316 = vmatpush.msra.mxu1 %v1664_v32  ;;  %v1661_v10 = vld [vmem:[#allocation9 + $0x260] sm:$0xff]  ;;  %v1675_v4 = vld [vmem:[#allocation9 + $0x2d0] sm:$0xff] }
 0x1e9   : > { %2339 = vmatpush.msra.mxu2 %v1672_v36  ;;  %2362 = vmatpush.msra.mxu3 %v1680_v37  ;;  %v1657_v13 = vld [vmem:[#allocation9 + $0x240] sm:$0xff] }
 0x1ea   : > { %2294 = vmatpush.msra.mxu0 %v1655_v20  ;;  %2317 = vmatpush.msra.mxu1 %v1663_v16  ;;  %v1673_v32 = vld [vmem:[#allocation9 + $0x2c0] sm:$0xff]  ;;  %v1688_v20 = vld [vmem:[#allocation9 + $0x338] sm:$0xff] }
 0x1eb   : > { %2340 = vmatpush.msra.mxu2 %v1671_v5  ;;  %2363 = vmatpush.msra.mxu3 %v1679_v6  ;;  %v1696_v16 = vld [vmem:[#allocation9 + $0x378] sm:$0xff] }
 0x1ec   : > { %2295 = vmatpush.msra.mxu0 %v1654_v42  ;;  %2318 = vmatpush.msra.mxu1 %v1662_v43  ;;  %v1704_v5 = vld [vmem:[#allocation9 + $0x3b8] sm:$0xff]  ;;  %v1687_v42 = vld [vmem:[#allocation9 + $0x330] sm:$0xff] }
 0x1ed   : > { %2341 = vmatpush.msra.mxu2 %v1670_v39  ;;  %2364 = vmatpush.msra.mxu3 %v1678_v26  ;;  %v1712_v6 = vld [vmem:[#allocation9 + $0x3f8] sm:$0xff]  ;;  %v1695_v43 = vld [vmem:[#allocation9 + $0x370] sm:$0xff] }
 0x1ee   : > { %2296 = vmatpush.msra.mxu0 %v1653_v9  ;;  %2319 = vmatpush.msra.mxu1 %v1661_v10  ;;  %v1119_v12 = vpop.f32.mrf.mxu2  ;;  %v1135_v25 = vpop.f32.mrf.mxu3  ;;  %v1703_v39 = vld [vmem:[#allocation9 + $0x3b0] sm:$0xff]  ;;  %v1686_v9 = vld [vmem:[#allocation9 + $0x328] sm:$0xff] }
 0x1ef   : > { %2342 = vmatpush.msra.mxu2 %v1669_v51  ;;  %2365 = vmatpush.msra.mxu3 %v1677_v22  ;;  %v4964_v44 = vpop.f32.mrf.mxu0  ;;  %v4966_v45 = vpop.f32.mrf.mxu1  ;;  %v1711_v26 = vld [vmem:[#allocation9 + $0x3f0] sm:$0xff]  ;;  %v1694_v10 = vld [vmem:[#allocation9 + $0x368] sm:$0xff] }
 0x1f0   : > { %3911 = vmatmul.msk.f32.vlgmr.msrb.gmra.mxu0 %vm2097_vm3, %v4788_v57  ;;  %3912 = vmatmul.msk.f32.vlgmr.msrb.gmra.mxu1 %vm2097_vm3, %v4790_v61  ;;  %v1650_v57 = vld [vmem:[#allocation9 + $0x208] sm:$0xff] }
 0x1f1   : > { %3913 = vmatmul.msk.f32.vlgmr.msrb.gmra.mxu2 %vm2097_vm3, %v4808_v14  ;;  %3914 = vmatmul.msk.f32.vlgmr.msrb.gmra.mxu3 %vm2097_vm3, %v4810_v15  ;;  %v1666_v61 = vld [vmem:[#allocation9 + $0x288] sm:$0xff]  ;;  %v1649_v14 = vld [vmem:[#allocation9 + $0x200] sm:$0xff] }
 0x1f2   : > { %2297 = vmatpush.msra.mxu0 %v1652_v62  ;;  %2320 = vmatpush.msra.mxu1 %v1660_v0  ;;  %v1665_v15 = vld [vmem:[#allocation9 + $0x280] sm:$0xff]  ;;  %v1702_v51 = vld [vmem:[#allocation9 + $0x3a8] sm:$0xff] }
 0x1f3   : > { %2343 = vmatpush.msra.mxu2 %v1668_v47  ;;  %2366 = vmatpush.msra.mxu3 %v1676_v3  ;;  %v1710_v22 = vld [vmem:[#allocation9 + $0x3e8] sm:$0xff]  ;;  %v1684_v47 = vld [vmem:[#allocation9 + $0x318] sm:$0xff] }
 0x1f4   : > { %2298 = vmatpush.msra.mxu0 %v1651_v48  ;;  %2321 = vmatpush.msra.mxu1 %v1659_v52  ;;  %v1692_v3 = vld [vmem:[#allocation9 + $0x358] sm:$0xff] }
 0x1f5   : > { %2344 = vmatpush.msra.mxu2 %v1667_v53  ;;  %2367 = vmatpush.msra.mxu3 %v1675_v4  ;;  %v1700_v48 = vld [vmem:[#allocation9 + $0x398] sm:$0xff]  ;;  %v1683_v53 = vld [vmem:[#allocation9 + $0x310] sm:$0xff] }
 0x1f6   : > { %2299 = vmatpush.msra.mxu0 %v1650_v57  ;;  %2322 = vmatpush.msra.mxu1 %v1658_v60  ;;  %v4976_v36 = vpop.f32.mrf.mxu2  ;;  %v4978_v37 = vpop.f32.mrf.mxu3  ;;  %v1708_v52 = vld [vmem:[#allocation9 + $0x3d8] sm:$0xff]  ;;  %v1691_v4 = vld [vmem:[#allocation9 + $0x350] sm:$0xff] }
 0x1f7   : > { %2345 = vmatpush.msra.mxu2 %v1666_v61  ;;  %2368 = vmatpush.msra.mxu3 %v1674_v7  ;;  %v1151_v17 = vpop.f32.mrf.mxu0  ;;  %v1167_v23 = vpop.f32.mrf.mxu1  ;;  %v1699_v57 = vld [vmem:[#allocation9 + $0x390] sm:$0xff]  ;;  %v1682_v61 = vld [vmem:[#allocation9 + $0x308] sm:$0xff] }
 0x1f8   : > { %2300 = vmatpush.msra.mxu0 %v1649_v14  ;;  %2323 = vmatpush.msra.mxu1 %v1657_v13  ;;  %v1707_v60 = vld [vmem:[#allocation9 + $0x3d0] sm:$0xff]  ;;  %v1690_v7 = vld [vmem:[#allocation9 + $0x348] sm:$0xff] }
 0x1f9   : > { %2346 = vmatpush.msra.mxu2 %v1665_v15  ;;  %2369 = vmatpush.msra.mxu3 %v1673_v32  ;;  %v1698_v14 = vld [vmem:[#allocation9 + $0x388] sm:$0xff] }
 0x1fa   : > { %2385 = vmatpush.msrb.mxu0 %v1688_v20  ;;  %2408 = vmatpush.msrb.mxu1 %v1696_v16  ;;  %v1706_v13 = vld [vmem:[#allocation9 + $0x3c8] sm:$0xff]  ;;  %v1681_v20 = vld [vmem:[#allocation9 + $0x300] sm:$0xff] }
 0x1fb   : > { %2431 = vmatpush.msrb.mxu2 %v1704_v5  ;;  %2454 = vmatpush.msrb.mxu3 %v1712_v6  ;;  %v1689_v16 = vld [vmem:[#allocation9 + $0x340] sm:$0xff] }
 0x1fc   : > { %3915 = vmatmul.msk.f32.vlgmr.msra.gmra.mxu0 %vm2097_vm3, %v4812_v40  ;;  %3916 = vmatmul.msk.f32.vlgmr.msra.gmra.mxu1 %vm2097_vm3, %v4814_v24  ;;  %v1685_v40 = vld [vmem:[#allocation9 + $0x320] sm:$0xff] }
 0x1fd   : > { %3917 = vmatmul.msk.f32.vlgmr.msra.gmra.mxu2 %vm2097_vm3, %v4832_v19  ;;  %3918 = vmatmul.msk.f32.vlgmr.msra.gmra.mxu3 %vm2097_vm3, %v4834_v21  ;;  %v1693_v24 = vld [vmem:[#allocation9 + $0x360] sm:$0xff] }
 0x1fe   : > { %2386 = vmatpush.msrb.mxu0 %v1687_v42  ;;  %2409 = vmatpush.msrb.mxu1 %v1695_v43  ;;  %v1183_v12 = vpop.f32.mrf.mxu2  ;;  %v1199_v25 = vpop.f32.mrf.mxu3  ;;  %v1701_v19 = vld [vmem:[#allocation9 + $0x3a0] sm:$0xff]  ;;  %v1720_v42 = vld [vmem:[#allocation9 + $0x438] sm:$0xff] }
 0x1ff   : > { %2432 = vmatpush.msrb.mxu2 %v1703_v39  ;;  %2455 = vmatpush.msrb.mxu3 %v1711_v26  ;;  %v4988_v62 = vpop.f32.mrf.mxu0  ;;  %v4990_v0 = vpop.f32.mrf.mxu1  ;;  %v1709_v21 = vld [vmem:[#allocation9 + $0x3e0] sm:$0xff]  ;;  %v1728_v43 = vld [vmem:[#allocation9 + $0x478] sm:$0xff] }
 0x200   : > { %2387 = vmatpush.msrb.mxu0 %v1686_v9  ;;  %2410 = vmatpush.msrb.mxu1 %v1694_v10  ;;  %v1697_v5 = vld [vmem:[#allocation9 + $0x380] sm:$0xff]  ;;  %v1736_v39 = vld [vmem:[#allocation9 + $0x4b8] sm:$0xff]  ;;  %v1719_v9 = vld [vmem:[#allocation9 + $0x430] sm:$0xff] }
 0x201   : > { %2433 = vmatpush.msrb.mxu2 %v1702_v51  ;;  %2456 = vmatpush.msrb.mxu3 %v1710_v22  ;;  %v1705_v6 = vld [vmem:[#allocation9 + $0x3c0] sm:$0xff]  ;;  %v1744_v26 = vld [vmem:[#allocation9 + $0x4f8] sm:$0xff]  ;;  %v1727_v10 = vld [vmem:[#allocation9 + $0x470] sm:$0xff] }
 0x202   : > { %2388 = vmatpush.msrb.mxu0 %v1685_v40  ;;  %2411 = vmatpush.msrb.mxu1 %v1693_v24  ;;  %v1735_v51 = vld [vmem:[#allocation9 + $0x4b0] sm:$0xff] }
 0x203   : > { %2434 = vmatpush.msrb.mxu2 %v1701_v19  ;;  %2457 = vmatpush.msrb.mxu3 %v1709_v21  ;;  %v1743_v22 = vld [vmem:[#allocation9 + $0x4f0] sm:$0xff]  ;;  %v1717_v19 = vld [vmem:[#allocation9 + $0x420] sm:$0xff] }
 0x204   : > { %2389 = vmatpush.msrb.mxu0 %v1684_v47  ;;  %2412 = vmatpush.msrb.mxu1 %v1692_v3  ;;  %v1725_v21 = vld [vmem:[#allocation9 + $0x460] sm:$0xff] }
 0x205   : > { %2435 = vmatpush.msrb.mxu2 %v1700_v48  ;;  %2458 = vmatpush.msrb.mxu3 %v1708_v52  ;;  %v1733_v47 = vld [vmem:[#allocation9 + $0x4a0] sm:$0xff]  ;;  %v1716_v48 = vld [vmem:[#allocation9 + $0x418] sm:$0xff] }
 0x206   : > { %2390 = vmatpush.msrb.mxu0 %v1683_v53  ;;  %2413 = vmatpush.msrb.mxu1 %v1691_v4  ;;  %v4992_v15 = vpop.f32.mrf.mxu2  ;;  %v4994_v32 = vpop.f32.mrf.mxu3  ;;  %v1741_v3 = vld [vmem:[#allocation9 + $0x4e0] sm:$0xff]  ;;  %v1724_v52 = vld [vmem:[#allocation9 + $0x458] sm:$0xff] }
 0x207   : > { %2436 = vmatpush.msrb.mxu2 %v1699_v57  ;;  %2459 = vmatpush.msrb.mxu3 %v1707_v60  ;;  %v1215_v17 = vpop.f32.mrf.mxu0  ;;  %v1231_v23 = vpop.f32.mrf.mxu1  ;;  %v1732_v53 = vld [vmem:[#allocation9 + $0x498] sm:$0xff]  ;;  %v1715_v57 = vld [vmem:[#allocation9 + $0x410] sm:$0xff] }
 0x208   : > { %2391 = vmatpush.msrb.mxu0 %v1682_v61  ;;  %2414 = vmatpush.msrb.mxu1 %v1690_v7  ;;  %v1740_v4 = vld [vmem:[#allocation9 + $0x4d8] sm:$0xff]  ;;  %v1723_v60 = vld [vmem:[#allocation9 + $0x450] sm:$0xff] }
 0x209   : > { %2437 = vmatpush.msrb.mxu2 %v1698_v14  ;;  %2460 = vmatpush.msrb.mxu3 %v1706_v13  ;;  %v1731_v61 = vld [vmem:[#allocation9 + $0x490] sm:$0xff] }
 0x20a   : > { %2392 = vmatpush.msrb.mxu0 %v1681_v20  ;;  %2415 = vmatpush.msrb.mxu1 %v1689_v16  ;;  %v1739_v7 = vld [vmem:[#allocation9 + $0x4d0] sm:$0xff]  ;;  %v1714_v20 = vld [vmem:[#allocation9 + $0x408] sm:$0xff] }
 0x20b   : > { %2438 = vmatpush.msrb.mxu2 %v1697_v5  ;;  %2461 = vmatpush.msrb.mxu3 %v1705_v6  ;;  %v1722_v16 = vld [vmem:[#allocation9 + $0x448] sm:$0xff] }
 0x20c   : > { %3919 = vmatmul.msk.f32.vlgmr.msrb.gmra.mxu0 %vm2097_vm3, %v4836_v58  ;;  %3920 = vmatmul.msk.f32.vlgmr.msrb.gmra.mxu1 %vm2097_vm3, %v4838_v59  ;;  %v1718_v58 = vld [vmem:[#allocation9 + $0x428] sm:$0xff] }
 0x20d   : > { %3921 = vmatmul.msk.f32.vlgmr.msrb.gmra.mxu2 %vm2097_vm3, %v4856_v27  ;;  %3922 = vmatmul.msk.f32.vlgmr.msrb.gmra.mxu3 %vm2097_vm3, %v4858_v29  ;;  %v1726_v59 = vld [vmem:[#allocation9 + $0x468] sm:$0xff] }
 0x20e   : > { %2477 = vmatpush.msra.mxu0 %v1720_v42  ;;  %2500 = vmatpush.msra.mxu1 %v1728_v43  ;;  %v1247_v12 = vpop.f32.mrf.mxu2  ;;  %v1263_v25 = vpop.f32.mrf.mxu3  ;;  %v1734_v27 = vld [vmem:[#allocation9 + $0x4a8] sm:$0xff]  ;;  %v1713_v42 = vld [vmem:[#allocation9 + $0x400] sm:$0xff] }
 0x20f   : > { %2523 = vmatpush.msra.mxu2 %v1736_v39  ;;  %2546 = vmatpush.msra.mxu3 %v1744_v26  ;;  %v5004_v40 = vpop.f32.mrf.mxu0  ;;  %v5006_v24 = vpop.f32.mrf.mxu1  ;;  %v1742_v29 = vld [vmem:[#allocation9 + $0x4e8] sm:$0xff]  ;;  %v1721_v43 = vld [vmem:[#allocation9 + $0x440] sm:$0xff] }
 0x210   : > { %2478 = vmatpush.msra.mxu0 %v1719_v9  ;;  %2501 = vmatpush.msra.mxu1 %v1727_v10  ;;  %v1730_v5 = vld [vmem:[#allocation9 + $0x488] sm:$0xff]  ;;  %v1729_v39 = vld [vmem:[#allocation9 + $0x480] sm:$0xff]  ;;  %v1752_v9 = vld [vmem:[#allocation9 + $0x538] sm:$0xff] }
 0x211   : > { %2524 = vmatpush.msra.mxu2 %v1735_v51  ;;  %2547 = vmatpush.msra.mxu3 %v1743_v22  ;;  %v1738_v6 = vld [vmem:[#allocation9 + $0x4c8] sm:$0xff]  ;;  %v1737_v26 = vld [vmem:[#allocation9 + $0x4c0] sm:$0xff]  ;;  %v1760_v10 = vld [vmem:[#allocation9 + $0x578] sm:$0xff] }
 0x212   : > { %2479 = vmatpush.msra.mxu0 %v1718_v58  ;;  %2502 = vmatpush.msra.mxu1 %v1726_v59  ;;  %v1768_v51 = vld [vmem:[#allocation9 + $0x5b8] sm:$0xff]  ;;  %v1751_v58 = vld [vmem:[#allocation9 + $0x530] sm:$0xff] }
 0x213   : > { %2525 = vmatpush.msra.mxu2 %v1734_v27  ;;  %2548 = vmatpush.msra.mxu3 %v1742_v29  ;;  %v1776_v22 = vld [vmem:[#allocation9 + $0x5f8] sm:$0xff]  ;;  %v1759_v59 = vld [vmem:[#allocation9 + $0x570] sm:$0xff] }
 0x214   : > { %2480 = vmatpush.msra.mxu0 %v1717_v19  ;;  %2503 = vmatpush.msra.mxu1 %v1725_v21  ;;  %v1750_v19 = vld [vmem:[#allocation9 + $0x528] sm:$0xff] }
 0x215   : > { %2526 = vmatpush.msra.mxu2 %v1733_v47  ;;  %2549 = vmatpush.msra.mxu3 %v1741_v3  ;;  %v1758_v21 = vld [vmem:[#allocation9 + $0x568] sm:$0xff]  ;;  %v1757_v3 = vld [vmem:[#allocation9 + $0x560] sm:$0xff] }
 0x216   : > { %2481 = vmatpush.msra.mxu0 %v1716_v48  ;;  %2504 = vmatpush.msra.mxu1 %v1724_v52  ;;  %v5008_v14 = vpop.f32.mrf.mxu2  ;;  %v5010_v13 = vpop.f32.mrf.mxu3  ;;  %v1774_v47 = vld [vmem:[#allocation9 + $0x5e8] sm:$0xff]  ;;  %v1765_v48 = vld [vmem:[#allocation9 + $0x5a0] sm:$0xff] }
 0x217   : > { %2527 = vmatpush.msra.mxu2 %v1732_v53  ;;  %2550 = vmatpush.msra.mxu3 %v1740_v4  ;;  %v1279_v17 = vpop.f32.mrf.mxu0  ;;  %v1295_v23 = vpop.f32.mrf.mxu1  ;;  %v1773_v52 = vld [vmem:[#allocation9 + $0x5e0] sm:$0xff]  ;;  %v1748_v53 = vld [vmem:[#allocation9 + $0x518] sm:$0xff] }
 0x218   : > { %2482 = vmatpush.msra.mxu0 %v1715_v57  ;;  %2505 = vmatpush.msra.mxu1 %v1723_v60  ;;  %v1756_v4 = vld [vmem:[#allocation9 + $0x558] sm:$0xff] }
 0x219   : > { %2528 = vmatpush.msra.mxu2 %v1731_v61  ;;  %2551 = vmatpush.msra.mxu3 %v1739_v7  ;;  %v1764_v57 = vld [vmem:[#allocation9 + $0x598] sm:$0xff] }
 0x21a   : > { %2483 = vmatpush.msra.mxu0 %v1714_v20  ;;  %2506 = vmatpush.msra.mxu1 %v1722_v16  ;;  %v1772_v60 = vld [vmem:[#allocation9 + $0x5d8] sm:$0xff]  ;;  %v1747_v20 = vld [vmem:[#allocation9 + $0x510] sm:$0xff] }
 0x21b   : > { %2529 = vmatpush.msra.mxu2 %v1730_v5  ;;  %2552 = vmatpush.msra.mxu3 %v1738_v6  ;;  %v1755_v16 = vld [vmem:[#allocation9 + $0x550] sm:$0xff] }
 0x21c   : > { %2484 = vmatpush.msra.mxu0 %v1713_v42  ;;  %2507 = vmatpush.msra.mxu1 %v1721_v43  ;;  %v1763_v5 = vld [vmem:[#allocation9 + $0x590] sm:$0xff]  ;;  %v1746_v42 = vld [vmem:[#allocation9 + $0x508] sm:$0xff] }
 0x21d   : > { %2530 = vmatpush.msra.mxu2 %v1729_v39  ;;  %2553 = vmatpush.msra.mxu3 %v1737_v26  ;;  %v1771_v6 = vld [vmem:[#allocation9 + $0x5d0] sm:$0xff]  ;;  %v1754_v43 = vld [vmem:[#allocation9 + $0x548] sm:$0xff] }
 0x21e   : > { %3923 = vmatmul.msk.f32.vlgmr.msra.gmra.mxu0 %vm2097_vm3, %v4860_v8  ;;  %3924 = vmatmul.msk.f32.vlgmr.msra.gmra.mxu1 %vm2097_vm3, %v4862_v28  ;;  %v1311_v12 = vpop.f32.mrf.mxu2  ;;  %v1327_v25 = vpop.f32.mrf.mxu3  ;;  %v1767_v8 = vld [vmem:[#allocation9 + $0x5b0] sm:$0xff]  ;;  %v1762_v39 = vld [vmem:[#allocation9 + $0x588] sm:$0xff] }
 0x21f   : > { %3925 = vmatmul.msk.f32.vlgmr.msra.gmra.mxu2 %vm2097_vm3, %v4880_v34  ;;  %3926 = vmatmul.msk.f32.vlgmr.msra.gmra.mxu3 %vm2097_vm3, %v4882_v35  ;;  %v5020_v27 = vpop.f32.mrf.mxu0  ;;  %v5022_v29 = vpop.f32.mrf.mxu1  ;;  %v1775_v28 = vld [vmem:[#allocation9 + $0x5f0] sm:$0xff]  ;;  %v1766_v34 = vld [vmem:[#allocation9 + $0x5a8] sm:$0xff]  ;;  %v1749_v35 = vld [vmem:[#allocation9 + $0x520] sm:$0xff] }
 0x220   : > { %2569 = vmatpush.msrb.mxu0 %v1752_v9  ;;  %2592 = vmatpush.msrb.mxu1 %v1760_v10  ;;  %v1770_v26 = vld [vmem:[#allocation9 + $0x5c8] sm:$0xff]  ;;  %v1745_v9 = vld [vmem:[#allocation9 + $0x500] sm:$0xff] }
 0x221   : > { %2615 = vmatpush.msrb.mxu2 %v1768_v51  ;;  %2638 = vmatpush.msrb.mxu3 %v1776_v22  ;;  %v1753_v10 = vld [vmem:[#allocation9 + $0x540] sm:$0xff] }
 0x222   : > { %2570 = vmatpush.msrb.mxu0 %v1751_v58  ;;  %2593 = vmatpush.msrb.mxu1 %v1759_v59  ;;  %v1761_v51 = vld [vmem:[#allocation9 + $0x580] sm:$0xff]  ;;  %v1784_v58 = vld [vmem:[#allocation9 + $0x638] sm:$0xff] }
 0x223   : > { %2616 = vmatpush.msrb.mxu2 %v1767_v8  ;;  %2639 = vmatpush.msrb.mxu3 %v1775_v28  ;;  %v1769_v22 = vld [vmem:[#allocation9 + $0x5c0] sm:$0xff]  ;;  %v1792_v59 = vld [vmem:[#allocation9 + $0x678] sm:$0xff] }
 0x224   : > { %2571 = vmatpush.msrb.mxu0 %v1750_v19  ;;  %2594 = vmatpush.msrb.mxu1 %v1758_v21  ;;  %v1800_v19 = vld [vmem:[#allocation9 + $0x6b8] sm:$0xff] }
 0x225   : > { %2617 = vmatpush.msrb.mxu2 %v1766_v34  ;;  %2640 = vmatpush.msrb.mxu3 %v1774_v47  ;;  %v1808_v21 = vld [vmem:[#allocation9 + $0x6f8] sm:$0xff]  ;;  %v1783_v34 = vld [vmem:[#allocation9 + $0x630] sm:$0xff] }
 0x226   : > { %2572 = vmatpush.msrb.mxu0 %v1749_v35  ;;  %2595 = vmatpush.msrb.mxu1 %v1757_v3  ;;  %v5024_v61 = vpop.f32.mrf.mxu2  ;;  %v5026_v7 = vpop.f32.mrf.mxu3  ;;  %v1791_v47 = vld [vmem:[#allocation9 + $0x670] sm:$0xff] }
 0x227   : > { %2618 = vmatpush.msrb.mxu2 %v1765_v48  ;;  %2641 = vmatpush.msrb.mxu3 %v1773_v52  ;;  %v1343_v17 = vpop.f32.mrf.mxu0  ;;  %v1359_v23 = vpop.f32.mrf.mxu1  ;;  %v1799_v35 = vld [vmem:[#allocation9 + $0x6b0] sm:$0xff]  ;;  %v1790_v48 = vld [vmem:[#allocation9 + $0x668] sm:$0xff] }
 0x228   : > { %2573 = vmatpush.msrb.mxu0 %v1748_v53  ;;  %2596 = vmatpush.msrb.mxu1 %v1756_v4  ;;  %v1807_v3 = vld [vmem:[#allocation9 + $0x6f0] sm:$0xff]  ;;  %v1806_v52 = vld [vmem:[#allocation9 + $0x6e8] sm:$0xff]  ;;  %v1789_v53 = vld [vmem:[#allocation9 + $0x660] sm:$0xff] }
 0x229   : > { %2619 = vmatpush.msrb.mxu2 %v1764_v57  ;;  %2642 = vmatpush.msrb.mxu3 %v1772_v60  ;;  %v1805_v4 = vld [vmem:[#allocation9 + $0x6e0] sm:$0xff] }
 0x22a   : > { %2574 = vmatpush.msrb.mxu0 %v1747_v20  ;;  %2597 = vmatpush.msrb.mxu1 %v1755_v16  ;;  %v1780_v20 = vld [vmem:[#allocation9 + $0x618] sm:$0xff] }
 0x22b   : > { %2620 = vmatpush.msrb.mxu2 %v1763_v5  ;;  %2643 = vmatpush.msrb.mxu3 %v1771_v6  ;;  %v1788_v16 = vld [vmem:[#allocation9 + $0x658] sm:$0xff] }
 0x22c   : > { %2575 = vmatpush.msrb.mxu0 %v1746_v42  ;;  %2598 = vmatpush.msrb.mxu1 %v1754_v43  ;;  %v1796_v5 = vld [vmem:[#allocation9 + $0x698] sm:$0xff]  ;;  %v1779_v42 = vld [vmem:[#allocation9 + $0x610] sm:$0xff] }
 0x22d   : > { %2621 = vmatpush.msrb.mxu2 %v1762_v39  ;;  %2644 = vmatpush.msrb.mxu3 %v1770_v26  ;;  %v1804_v6 = vld [vmem:[#allocation9 + $0x6d8] sm:$0xff]  ;;  %v1787_v43 = vld [vmem:[#allocation9 + $0x650] sm:$0xff] }
 0x22e   : > { %2576 = vmatpush.msrb.mxu0 %v1745_v9  ;;  %2599 = vmatpush.msrb.mxu1 %v1753_v10  ;;  %v1375_v12 = vpop.f32.mrf.mxu2  ;;  %v1391_v25 = vpop.f32.mrf.mxu3  ;;  %v1795_v39 = vld [vmem:[#allocation9 + $0x690] sm:$0xff]  ;;  %v1778_v9 = vld [vmem:[#allocation9 + $0x608] sm:$0xff] }
 0x22f   : > { %2622 = vmatpush.msrb.mxu2 %v1761_v51  ;;  %2645 = vmatpush.msrb.mxu3 %v1769_v22  ;;  %v5028_v8 = vpop.f32.mrf.mxu0  ;;  %v5030_v28 = vpop.f32.mrf.mxu1  ;;  %v1803_v26 = vld [vmem:[#allocation9 + $0x6d0] sm:$0xff]  ;;  %v1786_v10 = vld [vmem:[#allocation9 + $0x648] sm:$0xff]  ;;  %v1777_v12 = vld [vmem:[#allocation9 + $0x600] sm:$0xff] }
 0x230   : > { %3927 = vmatmul.msk.f32.vlgmr.msrb.gmra.mxu0 %vm2097_vm3, %v4884_v1  ;;  %3928 = vmatmul.msk.f32.vlgmr.msrb.gmra.mxu1 %vm2097_vm3, %v4886_v18  ;;  %v1782_v1 = vld [vmem:[#allocation9 + $0x628] sm:$0xff]  ;;  %v1785_v25 = vld [vmem:[#allocation9 + $0x640] sm:$0xff] }
 0x231   : > { %3929 = vmatmul.msk.f32.vlgmr.msrb.gmra.mxu2 %vm2097_vm3, %v4904_v38  ;;  %3930 = vmatmul.msk.f32.vlgmr.msrb.gmra.mxu3 %vm2097_vm3, %v4906_v41  ;;  %v1798_v18 = vld [vmem:[#allocation9 + $0x6a8] sm:$0xff]  ;;  %v1781_v38 = vld [vmem:[#allocation9 + $0x620] sm:$0xff] }
 0x232   : > { %2661 = vmatpush.msra.mxu0 %v1784_v58  ;;  %2684 = vmatpush.msra.mxu1 %v1792_v59  ;;  %v1797_v41 = vld [vmem:[#allocation9 + $0x6a0] sm:$0xff]  ;;  %v1794_v51 = vld [vmem:[#allocation9 + $0x688] sm:$0xff] }
 0x233   : > { %2707 = vmatpush.msra.mxu2 %v1800_v19  ;;  %2730 = vmatpush.msra.mxu3 %v1808_v21  ;;  %v1802_v22 = vld [vmem:[#allocation9 + $0x6c8] sm:$0xff]  ;;  %v1793_v58 = vld [vmem:[#allocation9 + $0x680] sm:$0xff] }
 0x234   : > { %2662 = vmatpush.msra.mxu0 %v1783_v34  ;;  %2685 = vmatpush.msra.mxu1 %v1791_v47  ;;  %v1801_v59 = vld [vmem:[#allocation9 + $0x6c0] sm:$0xff] }
 0x235   : > { %2708 = vmatpush.msra.mxu2 %v1799_v35  ;;  %2731 = vmatpush.msra.mxu3 %v1807_v3  ;;  %v1816_v35 = vld [vmem:[#allocation9 + $0x738] sm:$0xff] }
 0x236   : > { %2663 = vmatpush.msra.mxu0 %v1782_v1  ;;  %2686 = vmatpush.msra.mxu1 %v1790_v48  ;;  %v5040_v57 = vpop.f32.mrf.mxu2  ;;  %v5042_v60 = vpop.f32.mrf.mxu3  ;;  %v1824_v3 = vld [vmem:[#allocation9 + $0x778] sm:$0xff] }
 0x237   : > { %2709 = vmatpush.msra.mxu2 %v1798_v18  ;;  %2732 = vmatpush.msra.mxu3 %v1806_v52  ;;  %v1407_v17 = vpop.f32.mrf.mxu0  ;;  %v1423_v23 = vpop.f32.mrf.mxu1  ;;  %v1832_v1 = vld [vmem:[#allocation9 + $0x7b8] sm:$0xff]  ;;  %v1815_v18 = vld [vmem:[#allocation9 + $0x730] sm:$0xff] }
 0x238   : > { %2664 = vmatpush.msra.mxu0 %v1781_v38  ;;  %2687 = vmatpush.msra.mxu1 %v1789_v53  ;;  %v1840_v48 = vld [vmem:[#allocation9 + $0x7f8] sm:$0xff]  ;;  %v1823_v52 = vld [vmem:[#allocation9 + $0x770] sm:$0xff] }
 0x239   : > { %2710 = vmatpush.msra.mxu2 %v1797_v41  ;;  %2733 = vmatpush.msra.mxu3 %v1805_v4  ;;  %v1831_v38 = vld [vmem:[#allocation9 + $0x7b0] sm:$0xff]  ;;  %v1822_v41 = vld [vmem:[#allocation9 + $0x768] sm:$0xff] }
 0x23a   : > { %2665 = vmatpush.msra.mxu0 %v1780_v20  ;;  %2688 = vmatpush.msra.mxu1 %v1788_v16  ;;  %v1839_v53 = vld [vmem:[#allocation9 + $0x7f0] sm:$0xff]  ;;  %v1838_v4 = vld [vmem:[#allocation9 + $0x7e8] sm:$0xff]  ;;  %v1821_v16 = vld [vmem:[#allocation9 + $0x760] sm:$0xff] }
 0x23b   : > { %2711 = vmatpush.msra.mxu2 %v1796_v5  ;;  %2734 = vmatpush.msra.mxu3 %v1804_v6  ;;  %v1829_v5 = vld [vmem:[#allocation9 + $0x7a0] sm:$0xff] }
 0x23c   : > { %2666 = vmatpush.msra.mxu0 %v1779_v42  ;;  %2689 = vmatpush.msra.mxu1 %v1787_v43  ;;  %v1837_v6 = vld [vmem:[#allocation9 + $0x7e0] sm:$0xff]  ;;  %v1812_v42 = vld [vmem:[#allocation9 + $0x718] sm:$0xff] }
 0x23d   : > { %2712 = vmatpush.msra.mxu2 %v1795_v39  ;;  %2735 = vmatpush.msra.mxu3 %v1803_v26  ;;  %v1820_v43 = vld [vmem:[#allocation9 + $0x758] sm:$0xff] }
 0x23e   : > { %2667 = vmatpush.msra.mxu0 %v1778_v9  ;;  %2690 = vmatpush.msra.mxu1 %v1786_v10  ;;  %v1439_v19 = vpop.f32.mrf.mxu2  ;;  %v1455_v21 = vpop.f32.mrf.mxu3  ;;  %v1828_v39 = vld [vmem:[#allocation9 + $0x798] sm:$0xff]  ;;  %v1811_v9 = vld [vmem:[#allocation9 + $0x710] sm:$0xff] }
 0x23f   : > { %2713 = vmatpush.msra.mxu2 %v1794_v51  ;;  %2736 = vmatpush.msra.mxu3 %v1802_v22  ;;  %v5044_v34 = vpop.f32.mrf.mxu0  ;;  %v5046_v47 = vpop.f32.mrf.mxu1  ;;  %v1836_v26 = vld [vmem:[#allocation9 + $0x7d8] sm:$0xff]  ;;  %v1819_v10 = vld [vmem:[#allocation9 + $0x750] sm:$0xff] }
 0x240   : > { %2668 = vmatpush.msra.mxu0 %v1777_v12  ;;  %2691 = vmatpush.msra.mxu1 %v1785_v25  ;;  %v1827_v51 = vld [vmem:[#allocation9 + $0x790] sm:$0xff]  ;;  %v1810_v12 = vld [vmem:[#allocation9 + $0x708] sm:$0xff] }
 0x241   : > { %2714 = vmatpush.msra.mxu2 %v1793_v58  ;;  %2737 = vmatpush.msra.mxu3 %v1801_v59  ;;  %v1835_v22 = vld [vmem:[#allocation9 + $0x7d0] sm:$0xff]  ;;  %v1818_v25 = vld [vmem:[#allocation9 + $0x748] sm:$0xff] }
 0x242   : > { %3931 = vmatmul.msk.f32.vlgmr.msra.gmra.mxu0 %vm2097_vm3, %v4908_v49  ;;  %3932 = vmatmul.msk.f32.vlgmr.msra.gmra.mxu1 %vm2097_vm3, %v4910_v50  ;;  %v1814_v49 = vld [vmem:[#allocation9 + $0x728] sm:$0xff] }
 0x243   : > { %3933 = vmatmul.msk.f32.vlgmr.msra.gmra.mxu2 %vm2097_vm3, %v4924_v30  ;;  %3934 = vmatmul.msk.f32.vlgmr.msra.gmra.mxu3 %vm2097_vm3, %v4926_v33  ;;  %v1830_v50 = vld [vmem:[#allocation9 + $0x7a8] sm:$0xff]  ;;  %v1813_v33 = vld [vmem:[#allocation9 + $0x720] sm:$0xff] }
 0x244   : > { %2753 = vmatpush.msrb.mxu0 %v1816_v35  ;;  %2776 = vmatpush.msrb.mxu1 %v1824_v3  ;;  %v1826_v58 = vld [vmem:[#allocation9 + $0x788] sm:$0xff]  ;;  %v1809_v35 = vld [vmem:[#allocation9 + $0x700] sm:$0xff] }
 0x245   : > { %2799 = vmatpush.msrb.mxu2 %v1832_v1  ;;  %2822 = vmatpush.msrb.mxu3 %v1840_v48  ;;  %v1834_v59 = vld [vmem:[#allocation9 + $0x7c8] sm:$0xff]  ;;  %v1817_v3 = vld [vmem:[#allocation9 + $0x740] sm:$0xff] }
 0x246   : > { %2754 = vmatpush.msrb.mxu0 %v1815_v18  ;;  %2777 = vmatpush.msrb.mxu1 %v1823_v52  ;;  %v5056_v20 = vpop.f32.mrf.mxu2  ;;  %v5058_v30 = vpop.f32.mrf.mxu3  ;;  %v1825_v18 = vld [vmem:[#allocation9 + $0x780] sm:$0xff] }
 0x247   : > { %2800 = vmatpush.msrb.mxu2 %v1831_v38  ;;  %2823 = vmatpush.msrb.mxu3 %v1839_v53  ;;  %v1471_v17 = vpop.f32.mrf.mxu0  ;;  %v1487_v23 = vpop.f32.mrf.mxu1  ;;  %v1833_v52 = vld [vmem:[#allocation9 + $0x7c0] sm:$0xff]  ;;  %v1848_v38 = vld [vmem:[#allocation9 + $0x838] sm:$0xff] }
 0x248   : > { %2755 = vmatpush.msrb.mxu0 %v1814_v49  ;;  %2778 = vmatpush.msrb.mxu1 %v1822_v41  ;;  %v1856_v53 = vld [vmem:[#allocation9 + $0x878] sm:$0xff]  ;;  %v1854_v23 = vld [vmem:[#allocation9 + $0x868] sm:$0xff] }
 0x249   : > { %2801 = vmatpush.msrb.mxu2 %v1830_v50  ;;  %2824 = vmatpush.msrb.mxu3 %v1838_v4  ;;  %v1864_v49 = vld [vmem:[#allocation9 + $0x8b8] sm:$0xff]  ;;  %v1847_v50 = vld [vmem:[#allocation9 + $0x830] sm:$0xff] }
 0x24a   : > { %2756 = vmatpush.msrb.mxu0 %v1813_v33  ;;  %2779 = vmatpush.msrb.mxu1 %v1821_v16  ;;  %v1872_v41 = vld [vmem:[#allocation9 + $0x8f8] sm:$0xff]  ;;  %v1855_v4 = vld [vmem:[#allocation9 + $0x870] sm:$0xff] }
 0x24b   : > { %2802 = vmatpush.msrb.mxu2 %v1829_v5  ;;  %2825 = vmatpush.msrb.mxu3 %v1837_v6  ;;  %v1863_v33 = vld [vmem:[#allocation9 + $0x8b0] sm:$0xff] }
 0x24c   : > { %2757 = vmatpush.msrb.mxu0 %v1812_v42  ;;  %2780 = vmatpush.msrb.mxu1 %v1820_v43  ;;  %v1871_v16 = vld [vmem:[#allocation9 + $0x8f0] sm:$0xff]  ;;  %v1845_v42 = vld [vmem:[#allocation9 + $0x820] sm:$0xff] }
 0x24d   : > { %2803 = vmatpush.msrb.mxu2 %v1828_v39  ;;  %2826 = vmatpush.msrb.mxu3 %v1836_v26  ;;  %v1853_v43 = vld [vmem:[#allocation9 + $0x860] sm:$0xff] }
 0x24e   : > { %2758 = vmatpush.msrb.mxu0 %v1811_v9  ;;  %2781 = vmatpush.msrb.mxu1 %v1819_v10  ;;  %v1503_v19 = vpop.f32.mrf.mxu2  ;;  %v1519_v21 = vpop.f32.mrf.mxu3  ;;  %v1861_v39 = vld [vmem:[#allocation9 + $0x8a0] sm:$0xff]  ;;  %v1844_v9 = vld [vmem:[#allocation9 + $0x818] sm:$0xff] }
 0x24f   : > { %2804 = vmatpush.msrb.mxu2 %v1827_v51  ;;  %2827 = vmatpush.msrb.mxu3 %v1835_v22  ;;  %v5060_v1 = vpop.f32.mrf.mxu0  ;;  %v5062_v48 = vpop.f32.mrf.mxu1  ;;  %v1869_v26 = vld [vmem:[#allocation9 + $0x8e0] sm:$0xff]  ;;  %v1852_v10 = vld [vmem:[#allocation9 + $0x858] sm:$0xff] }
 0x250   : > { %2759 = vmatpush.msrb.mxu0 %v1810_v12  ;;  %2782 = vmatpush.msrb.mxu1 %v1818_v25  ;;  %v1860_v51 = vld [vmem:[#allocation9 + $0x898] sm:$0xff]  ;;  %v1843_v12 = vld [vmem:[#allocation9 + $0x810] sm:$0xff] }
 0x251   : > { %2805 = vmatpush.msrb.mxu2 %v1826_v58  ;;  %2828 = vmatpush.msrb.mxu3 %v1834_v59  ;;  %v1868_v22 = vld [vmem:[#allocation9 + $0x8d8] sm:$0xff]  ;;  %v1851_v25 = vld [vmem:[#allocation9 + $0x850] sm:$0xff] }
 0x252   : > { %2760 = vmatpush.msrb.mxu0 %v1809_v35  ;;  %2783 = vmatpush.msrb.mxu1 %v1817_v3  ;;  %v1859_v58 = vld [vmem:[#allocation9 + $0x890] sm:$0xff]  ;;  %v1842_v35 = vld [vmem:[#allocation9 + $0x808] sm:$0xff] }
 0x253   : > { %2806 = vmatpush.msrb.mxu2 %v1825_v18  ;;  %2829 = vmatpush.msrb.mxu3 %v1833_v52  ;;  %v1867_v59 = vld [vmem:[#allocation9 + $0x8d0] sm:$0xff]  ;;  %v1850_v3 = vld [vmem:[#allocation9 + $0x848] sm:$0xff] }
 0x254   : > { %3935 = vmatmul.msk.f32.vlgmr.msrb.gmra.mxu0 %vm2097_vm3, %v4928_v54  ;;  %3936 = vmatmul.msk.f32.vlgmr.msrb.gmra.mxu1 %vm2097_vm3, %v4930_v56  ;;  %v1846_v56 = vld [vmem:[#allocation9 + $0x828] sm:$0xff] }
 0x255   : > { %3937 = vmatmul.msk.f32.vlgmr.msrb.gmra.mxu2 %vm2097_vm3, %v4944_v31  ;;  %3938 = vmatmul.msk.f32.vlgmr.msrb.gmra.mxu3 %vm2097_vm3, %v4946_v11  ;;  %v1862_v31 = vld [vmem:[#allocation9 + $0x8a8] sm:$0xff] }
 0x256   : > { %2845 = vmatpush.msra.mxu0 %v1848_v38  ;;  %2868 = vmatpush.msra.mxu1 %v1856_v53  ;;  %v5072_v17 = vpop.f32.mrf.mxu2  ;;  %v5074_v54 = vpop.f32.mrf.mxu3  ;;  %v1870_v11 = vld [vmem:[#allocation9 + $0x8e8] sm:$0xff]  ;;  %v1841_v38 = vld [vmem:[#allocation9 + $0x800] sm:$0xff] }
 0x257   : > { %2891 = vmatpush.msra.mxu2 %v1864_v49  ;;  %2914 = vmatpush.msra.mxu3 %v1872_v41  ;;  %v1535_v5 = vpop.f32.mrf.mxu0  ;;  %v1551_v6 = vpop.f32.mrf.mxu1  ;;  %v1858_v18 = vld [vmem:[#allocation9 + $0x888] sm:$0xff]  ;;  %v1849_v53 = vld [vmem:[#allocation9 + $0x840] sm:$0xff] }
 0x258   : > { %2846 = vmatpush.msra.mxu0 %v1847_v50  ;;  %2869 = vmatpush.msra.mxu1 %v1855_v4  ;;  %v1866_v52 = vld [vmem:[#allocation9 + $0x8c8] sm:$0xff]  ;;  %v1857_v49 = vld [vmem:[#allocation9 + $0x880] sm:$0xff]  ;;  %v1880_v50 = vld [vmem:[#allocation9 + $0x938] sm:$0xff] }
 0x259   : > { %2892 = vmatpush.msra.mxu2 %v1863_v33  ;;  %2915 = vmatpush.msra.mxu3 %v1871_v16  ;;  %v1865_v41 = vld [vmem:[#allocation9 + $0x8c0] sm:$0xff]  ;;  %v1888_v4 = vld [vmem:[#allocation9 + $0x978] sm:$0xff]  ;;  %v1895_v5 = vld [vmem:[#allocation9 + $0x9b0] sm:$0xff] }
 0x25a   : > { %2847 = vmatpush.msra.mxu0 %v1846_v56  ;;  %2870 = vmatpush.msra.mxu1 %v1854_v23  ;;  %v1896_v33 = vld [vmem:[#allocation9 + $0x9b8] sm:$0xff]  ;;  %v1879_v56 = vld [vmem:[#allocation9 + $0x930] sm:$0xff] }
 0x25b   : > { %2893 = vmatpush.msra.mxu2 %v1862_v31  ;;  %2916 = vmatpush.msra.mxu3 %v1870_v11  ;;  %v1904_v16 = vld [vmem:[#allocation9 + $0x9f8] sm:$0xff]  ;;  %v1887_v23 = vld [vmem:[#allocation9 + $0x970] sm:$0xff]  ;;  %v1886_v31 = vld [vmem:[#allocation9 + $0x968] sm:$0xff] }
 0x25c   : > { %2848 = vmatpush.msra.mxu0 %v1845_v42  ;;  %2871 = vmatpush.msra.mxu1 %v1853_v43  ;;  %v1903_v6 = vld [vmem:[#allocation9 + $0x9f0] sm:$0xff]  ;;  %v1902_v11 = vld [vmem:[#allocation9 + $0x9e8] sm:$0xff]  ;;  %v1885_v42 = vld [vmem:[#allocation9 + $0x960] sm:$0xff] }
 0x25d   : > { %2894 = vmatpush.msra.mxu2 %v1861_v39  ;;  %2917 = vmatpush.msra.mxu3 %v1869_v26  ;;  %v1901_v43 = vld [vmem:[#allocation9 + $0x9e0] sm:$0xff]  ;;  %v1876_v39 = vld [vmem:[#allocation9 + $0x918] sm:$0xff] }
 0x25e   : > { %2849 = vmatpush.msra.mxu0 %v1844_v9  ;;  %2872 = vmatpush.msra.mxu1 %v1852_v10  ;;  %v1567_v19 = vpop.f32.mrf.mxu2  ;;  %v1583_v21 = vpop.f32.mrf.mxu3  ;;  %v1884_v26 = vld [vmem:[#allocation9 + $0x958] sm:$0xff] }
 0x25f   : > { %2895 = vmatpush.msra.mxu2 %v1860_v51  ;;  %2918 = vmatpush.msra.mxu3 %v1868_v22  ;;  %v1892_v9 = vld [vmem:[#allocation9 + $0x998] sm:$0xff]  ;;  %v1875_v51 = vld [vmem:[#allocation9 + $0x910] sm:$0xff]  ;;  %v1890_v19 = vld [vmem:[#allocation9 + $0x988] sm:$0xff] }
 0x260   : > { %2850 = vmatpush.msra.mxu0 %v1843_v12  ;;  %2873 = vmatpush.msra.mxu1 %v1851_v25  ;;  %v1900_v10 = vld [vmem:[#allocation9 + $0x9d8] sm:$0xff]  ;;  %v1883_v22 = vld [vmem:[#allocation9 + $0x950] sm:$0xff]  ;;  %v1898_v21 = vld [vmem:[#allocation9 + $0x9c8] sm:$0xff] }
 0x261   : > { %2896 = vmatpush.msra.mxu2 %v1859_v58  ;;  %2919 = vmatpush.msra.mxu3 %v1867_v59  ;;  %v1891_v12 = vld [vmem:[#allocation9 + $0x990] sm:$0xff]  ;;  %v1874_v58 = vld [vmem:[#allocation9 + $0x908] sm:$0xff] }
 0x262   : > { %2851 = vmatpush.msra.mxu0 %v1842_v35  ;;  %2874 = vmatpush.msra.mxu1 %v1850_v3  ;;  %v1899_v25 = vld [vmem:[#allocation9 + $0x9d0] sm:$0xff]  ;;  %v1882_v59 = vld [vmem:[#allocation9 + $0x948] sm:$0xff]  ;;  %v1873_v35 = vld [vmem:[#allocation9 + $0x900] sm:$0xff] }
 0x263   : > { %2897 = vmatpush.msra.mxu2 %v1858_v18  ;;  %2920 = vmatpush.msra.mxu3 %v1866_v52  ;;  %v1881_v3 = vld [vmem:[#allocation9 + $0x940] sm:$0xff] }
 0x264   : > { %2852 = vmatpush.msra.mxu0 %v1841_v38  ;;  %2875 = vmatpush.msra.mxu1 %v1849_v53  ;;  %v1889_v18 = vld [vmem:[#allocation9 + $0x980] sm:$0xff]  ;;  %v1912_v38 = vld [vmem:[#allocation9 + $0xa38] sm:$0xff] }
 0x265   : > { %2898 = vmatpush.msra.mxu2 %v1857_v49  ;;  %2921 = vmatpush.msra.mxu3 %v1865_v41  ;;  %v1897_v52 = vld [vmem:[#allocation9 + $0x9c0] sm:$0xff]  ;;  %v1920_v53 = vld [vmem:[#allocation9 + $0xa78] sm:$0xff] }
 0x266   : > { %3939 = vmatmul.msk.f32.vlgmr.msra.gmra.mxu0 %vm2097_vm3, %v4948_v46  ;;  %3940 = vmatmul.msk.f32.vlgmr.msra.gmra.mxu1 %vm2097_vm3, %v4950_v2  ;;  %v1878_v46 = vld [vmem:[#allocation9 + $0x928] sm:$0xff]  ;;  %v1928_v49 = vld [vmem:[#allocation9 + $0xab8] sm:$0xff] }
 0x267   : > { %3941 = vmatmul.msk.f32.vlgmr.msra.gmra.mxu2 %vm2097_vm3, %v4956_v55  ;;  %3942 = vmatmul.msk.f32.vlgmr.msra.gmra.mxu3 %vm2097_vm3, %v4958_v63  ;;  %v1894_v2 = vld [vmem:[#allocation9 + $0x9a8] sm:$0xff]  ;;  %v1877_v55 = vld [vmem:[#allocation9 + $0x920] sm:$0xff]  ;;  %v1936_v41 = vld [vmem:[#allocation9 + $0xaf8] sm:$0xff] }
 0x268   : > { %2937 = vmatpush.msrb.mxu0 %v1880_v50  ;;  %2960 = vmatpush.msrb.mxu1 %v1888_v4  ;;  %v1893_v63 = vld [vmem:[#allocation9 + $0x9a0] sm:$0xff]  ;;  %v1911_v50 = vld [vmem:[#allocation9 + $0xa30] sm:$0xff] }
 0x269   : > { %2983 = vmatpush.msrb.mxu2 %v1896_v33  ;;  %3006 = vmatpush.msrb.mxu3 %v1904_v16  ;;  %v1919_v4 = vld [vmem:[#allocation9 + $0xa70] sm:$0xff] }
 0x26a   : > { %2938 = vmatpush.msrb.mxu0 %v1879_v56  ;;  %2961 = vmatpush.msrb.mxu1 %v1887_v23  ;;  %v1927_v33 = vld [vmem:[#allocation9 + $0xab0] sm:$0xff]  ;;  %v1918_v56 = vld [vmem:[#allocation9 + $0xa68] sm:$0xff] }
 0x26b   : > { %2984 = vmatpush.msrb.mxu2 %v1895_v5  ;;  %3007 = vmatpush.msrb.mxu3 %v1903_v6  ;;  %v1935_v16 = vld [vmem:[#allocation9 + $0xaf0] sm:$0xff]  ;;  %v1934_v23 = vld [vmem:[#allocation9 + $0xae8] sm:$0xff]  ;;  %v1917_v5 = vld [vmem:[#allocation9 + $0xa60] sm:$0xff] }
 0x26c   : > { %2939 = vmatpush.msrb.mxu0 %v1878_v46  ;;  %2962 = vmatpush.msrb.mxu1 %v1886_v31  ;;  %v1933_v6 = vld [vmem:[#allocation9 + $0xae0] sm:$0xff]  ;;  %v1908_v46 = vld [vmem:[#allocation9 + $0xa18] sm:$0xff] }
 0x26d   : > { %2985 = vmatpush.msrb.mxu2 %v1894_v2  ;;  %3008 = vmatpush.msrb.mxu3 %v1902_v11  ;;  %v1916_v31 = vld [vmem:[#allocation9 + $0xa58] sm:$0xff] }
 0x26e   : > { %2940 = vmatpush.msrb.mxu0 %v1877_v55  ;;  %2963 = vmatpush.msrb.mxu1 %v1885_v42  ;;  %v1924_v2 = vld [vmem:[#allocation9 + $0xa98] sm:$0xff]  ;;  %v1907_v55 = vld [vmem:[#allocation9 + $0xa10] sm:$0xff] }
 0x26f   : > { %2986 = vmatpush.msrb.mxu2 %v1893_v63  ;;  %3009 = vmatpush.msrb.mxu3 %v1901_v43  ;;  %v1932_v11 = vld [vmem:[#allocation9 + $0xad8] sm:$0xff]  ;;  %v1915_v42 = vld [vmem:[#allocation9 + $0xa50] sm:$0xff] }
 0x270   : > { %2941 = vmatpush.msrb.mxu0 %v1876_v39  ;;  %2964 = vmatpush.msrb.mxu1 %v1884_v26  ;;  %v1923_v63 = vld [vmem:[#allocation9 + $0xa90] sm:$0xff]  ;;  %v1906_v39 = vld [vmem:[#allocation9 + $0xa08] sm:$0xff] }
 0x271   : > { %2987 = vmatpush.msrb.mxu2 %v1892_v9  ;;  %3010 = vmatpush.msrb.mxu3 %v1900_v10  ;;  %v1931_v43 = vld [vmem:[#allocation9 + $0xad0] sm:$0xff]  ;;  %v1914_v26 = vld [vmem:[#allocation9 + $0xa48] sm:$0xff] }
 0x272   : > { %2942 = vmatpush.msrb.mxu0 %v1875_v51  ;;  %2965 = vmatpush.msrb.mxu1 %v1883_v22  ;;  %v1922_v9 = vld [vmem:[#allocation9 + $0xa88] sm:$0xff]  ;;  %v1905_v51 = vld [vmem:[#allocation9 + $0xa00] sm:$0xff] }
 0x273   : > { %2988 = vmatpush.msrb.mxu2 %v1891_v12  ;;  %3011 = vmatpush.msrb.mxu3 %v1899_v25  ;;  %v1930_v10 = vld [vmem:[#allocation9 + $0xac8] sm:$0xff]  ;;  %v1913_v22 = vld [vmem:[#allocation9 + $0xa40] sm:$0xff] }
 0x274   : > { %2943 = vmatpush.msrb.mxu0 %v1874_v58  ;;  %2966 = vmatpush.msrb.mxu1 %v1882_v59  ;;  %v1921_v12 = vld [vmem:[#allocation9 + $0xa80] sm:$0xff]  ;;  %v1944_v58 = vld [vmem:[#allocation9 + $0xb38] sm:$0xff] }
 0x275   : > { %2989 = vmatpush.msrb.mxu2 %v1890_v19  ;;  %3012 = vmatpush.msrb.mxu3 %v1898_v21  ;;  %v1929_v25 = vld [vmem:[#allocation9 + $0xac0] sm:$0xff]  ;;  %v1952_v59 = vld [vmem:[#allocation9 + $0xb78] sm:$0xff] }
 0x276   : > { %2944 = vmatpush.msrb.mxu0 %v1873_v35  ;;  %2967 = vmatpush.msrb.mxu1 %v1881_v3  ;;  %v1960_v19 = vld [vmem:[#allocation9 + $0xbb8] sm:$0xff]  ;;  %v1943_v35 = vld [vmem:[#allocation9 + $0xb30] sm:$0xff] }
 0x277   : > { %2990 = vmatpush.msrb.mxu2 %v1889_v18  ;;  %3013 = vmatpush.msrb.mxu3 %v1897_v52  ;;  %v1968_v21 = vld [vmem:[#allocation9 + $0xbf8] sm:$0xff]  ;;  %v1951_v3 = vld [vmem:[#allocation9 + $0xb70] sm:$0xff] }
 0x278   : > { %3943 = vmatmul.msk.f32.vlgmr.msrb.gmra.mxu0 %vm2097_vm3, %v4964_v44  ;;  %3944 = vmatmul.msk.f32.vlgmr.msrb.gmra.mxu1 %vm2097_vm3, %v4966_v45  ;;  %v1910_v44 = vld [vmem:[#allocation9 + $0xa28] sm:$0xff]  ;;  %v1959_v18 = vld [vmem:[#allocation9 + $0xbb0] sm:$0xff] }
 0x279   : > { %3945 = vmatmul.msk.f32.vlgmr.msrb.gmra.mxu2 %vm2097_vm3, %v4976_v36  ;;  %3946 = vmatmul.msk.f32.vlgmr.msrb.gmra.mxu3 %vm2097_vm3, %v4978_v37  ;;  %v1926_v45 = vld [vmem:[#allocation9 + $0xaa8] sm:$0xff]  ;;  %v1909_v36 = vld [vmem:[#allocation9 + $0xa20] sm:$0xff]  ;;  %v1967_v52 = vld [vmem:[#allocation9 + $0xbf0] sm:$0xff] }
 0x27a   : > { %3029 = vmatpush.msra.mxu0 %v1912_v38  ;;  %3052 = vmatpush.msra.mxu1 %v1920_v53  ;;  %v1925_v37 = vld [vmem:[#allocation9 + $0xaa0] sm:$0xff]  ;;  %v1950_v38 = vld [vmem:[#allocation9 + $0xb68] sm:$0xff] }
 0x27b   : > { %3075 = vmatpush.msra.mxu2 %v1928_v49  ;;  %3098 = vmatpush.msra.mxu3 %v1936_v41  ;;  %v1966_v53 = vld [vmem:[#allocation9 + $0xbe8] sm:$0xff]  ;;  %v1949_v49 = vld [vmem:[#allocation9 + $0xb60] sm:$0xff] }
 0x27c   : > { %3030 = vmatpush.msra.mxu0 %v1911_v50  ;;  %3053 = vmatpush.msra.mxu1 %v1919_v4  ;;  %v1965_v41 = vld [vmem:[#allocation9 + $0xbe0] sm:$0xff]  ;;  %v1940_v50 = vld [vmem:[#allocation9 + $0xb18] sm:$0xff] }
 0x27d   : > { %3076 = vmatpush.msra.mxu2 %v1927_v33  ;;  %3099 = vmatpush.msra.mxu3 %v1935_v16  ;;  %v1948_v4 = vld [vmem:[#allocation9 + $0xb58] sm:$0xff] }
 0x27e   : > { %3031 = vmatpush.msra.mxu0 %v1910_v44  ;;  %3054 = vmatpush.msra.mxu1 %v1918_v56  ;;  %v1956_v33 = vld [vmem:[#allocation9 + $0xb98] sm:$0xff]  ;;  %v1939_v44 = vld [vmem:[#allocation9 + $0xb10] sm:$0xff] }
 0x27f   : > { %3077 = vmatpush.msra.mxu2 %v1926_v45  ;;  %3100 = vmatpush.msra.mxu3 %v1934_v23  ;;  %v1964_v16 = vld [vmem:[#allocation9 + $0xbd8] sm:$0xff]  ;;  %v1947_v56 = vld [vmem:[#allocation9 + $0xb50] sm:$0xff] }
 0x280   : > { %3032 = vmatpush.msra.mxu0 %v1909_v36  ;;  %3055 = vmatpush.msra.mxu1 %v1917_v5  ;;  %v1955_v45 = vld [vmem:[#allocation9 + $0xb90] sm:$0xff]  ;;  %v1938_v36 = vld [vmem:[#allocation9 + $0xb08] sm:$0xff] }
 0x281   : > { %3078 = vmatpush.msra.mxu2 %v1925_v37  ;;  %3101 = vmatpush.msra.mxu3 %v1933_v6  ;;  %v1963_v23 = vld [vmem:[#allocation9 + $0xbd0] sm:$0xff]  ;;  %v1946_v5 = vld [vmem:[#allocation9 + $0xb48] sm:$0xff] }
 0x282   : > { %3033 = vmatpush.msra.mxu0 %v1908_v46  ;;  %3056 = vmatpush.msra.mxu1 %v1916_v31  ;;  %v1954_v37 = vld [vmem:[#allocation9 + $0xb88] sm:$0xff]  ;;  %v1937_v46 = vld [vmem:[#allocation9 + $0xb00] sm:$0xff] }
 0x283   : > { %3079 = vmatpush.msra.mxu2 %v1924_v2  ;;  %3102 = vmatpush.msra.mxu3 %v1932_v11  ;;  %v1962_v6 = vld [vmem:[#allocation9 + $0xbc8] sm:$0xff]  ;;  %v1945_v31 = vld [vmem:[#allocation9 + $0xb40] sm:$0xff] }
 0x284   : > { %3034 = vmatpush.msra.mxu0 %v1907_v55  ;;  %3057 = vmatpush.msra.mxu1 %v1915_v42  ;;  %v1953_v2 = vld [vmem:[#allocation9 + $0xb80] sm:$0xff]  ;;  %v1976_v55 = vld [vmem:[#allocation9 + $0xc38] sm:$0xff] }
 0x285   : > { %3080 = vmatpush.msra.mxu2 %v1923_v63  ;;  %3103 = vmatpush.msra.mxu3 %v1931_v43  ;;  %v1961_v11 = vld [vmem:[#allocation9 + $0xbc0] sm:$0xff]  ;;  %v1984_v42 = vld [vmem:[#allocation9 + $0xc78] sm:$0xff] }
 0x286   : > { %3035 = vmatpush.msra.mxu0 %v1906_v39  ;;  %3058 = vmatpush.msra.mxu1 %v1914_v26  ;;  %v1992_v63 = vld [vmem:[#allocation9 + $0xcb8] sm:$0xff]  ;;  %v1975_v39 = vld [vmem:[#allocation9 + $0xc30] sm:$0xff] }
 0x287   : > { %3081 = vmatpush.msra.mxu2 %v1922_v9  ;;  %3104 = vmatpush.msra.mxu3 %v1930_v10  ;;  %v2000_v43 = vld [vmem:[#allocation9 + $0xcf8] sm:$0xff]  ;;  %v1983_v26 = vld [vmem:[#allocation9 + $0xc70] sm:$0xff] }
 0x288   : > { %3036 = vmatpush.msra.mxu0 %v1905_v51  ;;  %3059 = vmatpush.msra.mxu1 %v1913_v22  ;;  %v1991_v9 = vld [vmem:[#allocation9 + $0xcb0] sm:$0xff]  ;;  %v1982_v51 = vld [vmem:[#allocation9 + $0xc68] sm:$0xff] }
 0x289   : > { %3082 = vmatpush.msra.mxu2 %v1921_v12  ;;  %3105 = vmatpush.msra.mxu3 %v1929_v25  ;;  %v1999_v10 = vld [vmem:[#allocation9 + $0xcf0] sm:$0xff]  ;;  %v1998_v22 = vld [vmem:[#allocation9 + $0xce8] sm:$0xff]  ;;  %v1981_v12 = vld [vmem:[#allocation9 + $0xc60] sm:$0xff] }
 0x28a   : > { %3947 = vmatmul.msk.f32.vlgmr.msra.gmra.mxu0 %vm2097_vm3, %v4988_v62  ;;  %3948 = vmatmul.msk.f32.vlgmr.msra.gmra.mxu1 %vm2097_vm3, %v4990_v0  ;;  %v1942_v62 = vld [vmem:[#allocation9 + $0xb28] sm:$0xff]  ;;  %v1997_v25 = vld [vmem:[#allocation9 + $0xce0] sm:$0xff] }
 0x28b   : > { %3949 = vmatmul.msk.f32.vlgmr.msra.gmra.mxu2 %vm2097_vm3, %v4992_v15  ;;  %3950 = vmatmul.msk.f32.vlgmr.msra.gmra.mxu3 %vm2097_vm3, %v4994_v32  ;;  %v1958_v0 = vld [vmem:[#allocation9 + $0xba8] sm:$0xff]  ;;  %v1941_v15 = vld [vmem:[#allocation9 + $0xb20] sm:$0xff] }
 0x28c   : > { %3121 = vmatpush.msrb.mxu0 %v1944_v58  ;;  %3144 = vmatpush.msrb.mxu1 %v1952_v59  ;;  %v1957_v32 = vld [vmem:[#allocation9 + $0xba0] sm:$0xff]  ;;  %v1972_v58 = vld [vmem:[#allocation9 + $0xc18] sm:$0xff] }
 0x28d   : > { %3167 = vmatpush.msrb.mxu2 %v1960_v19  ;;  %3190 = vmatpush.msrb.mxu3 %v1968_v21  ;;  %v1980_v59 = vld [vmem:[#allocation9 + $0xc58] sm:$0xff] }
 0x28e   : > { %3122 = vmatpush.msrb.mxu0 %v1943_v35  ;;  %3145 = vmatpush.msrb.mxu1 %v1951_v3  ;;  %v1988_v19 = vld [vmem:[#allocation9 + $0xc98] sm:$0xff]  ;;  %v1971_v35 = vld [vmem:[#allocation9 + $0xc10] sm:$0xff] }
 0x28f   : > { %3168 = vmatpush.msrb.mxu2 %v1959_v18  ;;  %3191 = vmatpush.msrb.mxu3 %v1967_v52  ;;  %v1996_v21 = vld [vmem:[#allocation9 + $0xcd8] sm:$0xff]  ;;  %v1979_v3 = vld [vmem:[#allocation9 + $0xc50] sm:$0xff]  ;;  %v2118_v18 = vpop.f32.mrf.mxu0  ;;  %v2141_v52 = vpop.f32.mrf.mxu1 }
 0x290   : > { %3123 = vmatpush.msrb.mxu0 %v1942_v62  ;;  %3146 = vmatpush.msrb.mxu1 %v1950_v38  ;;  %v1987_v62 = vld [vmem:[#allocation9 + $0xc90] sm:$0xff] }
 0x291   : > { %3169 = vmatpush.msrb.mxu2 %v1958_v0  ;;  %3192 = vmatpush.msrb.mxu3 %v1966_v53  ;;  %v1995_v38 = vld [vmem:[#allocation9 + $0xcd0] sm:$0xff]  ;;  %v1970_v0 = vld [vmem:[#allocation9 + $0xc08] sm:$0xff] }
 0x292   : > { %3124 = vmatpush.msrb.mxu0 %v1941_v15  ;;  %3147 = vmatpush.msrb.mxu1 %v1949_v49  ;;  %v1978_v53 = vld [vmem:[#allocation9 + $0xc48] sm:$0xff]  ;;  %v2164_v15 = vpop.f32.mrf.mxu2 }
 0x293   : > { %3170 = vmatpush.msrb.mxu2 %v1957_v32  ;;  %3193 = vmatpush.msrb.mxu3 %v1965_v41  ;;  %v1986_v49 = vld [vmem:[#allocation9 + $0xc88] sm:$0xff]  ;;  %v3570_v41 = vsel %vm2097_vm3, %v2118_v18, 0.0 }
 0x294   : > { %3125 = vmatpush.msrb.mxu0 %v1940_v50  ;;  %3148 = vmatpush.msrb.mxu1 %v1948_v4  ;;  %v1994_v32 = vld [vmem:[#allocation9 + $0xcc8] sm:$0xff]  ;;  %v3571_v50 = vsel %vm2097_vm3, %v2141_v52, 0.0  ;;  %v1969_v4 = vld [vmem:[#allocation9 + $0xc00] sm:$0xff] }
 0x295   : > { %3171 = vmatpush.msrb.mxu2 %v1956_v33  ;;  %3194 = vmatpush.msrb.mxu3 %v1964_v16  ;;  %v1977_v33 = vld [vmem:[#allocation9 + $0xc40] sm:$0xff]  ;;  %v2010_v18 = vld [vmem:[#allocation9 + $0xd48] sm:$0xff] }
 0x296   : > { %3126 = vmatpush.msrb.mxu0 %v1939_v44  ;;  %3149 = vmatpush.msrb.mxu1 %v1947_v56  ;;  %v1985_v16 = vld [vmem:[#allocation9 + $0xc80] sm:$0xff]  ;;  %v3573_v56 = vsel %vm2097_vm3, %v2164_v15, 0.0 }
 0x297   : > { %3172 = vmatpush.msrb.mxu2 %v1955_v45  ;;  %3195 = vmatpush.msrb.mxu3 %v1963_v23  ;;  %v1993_v44 = vld [vmem:[#allocation9 + $0xcc0] sm:$0xff]  ;;  %v3572_v45 = vadd.f32 %v3571_v50, %v3570_v41  ;;  %v2008_v23 = vld [vmem:[#allocation9 + $0xd38] sm:$0xff] }
 0x298   : > { %3127 = vmatpush.msrb.mxu0 %v1938_v36  ;;  %3150 = vmatpush.msrb.mxu1 %v1946_v5  ;;  %v2016_v36 = vld [vmem:[#allocation9 + $0xd78] sm:$0xff]  ;;  %v2009_v15 = vld [vmem:[#allocation9 + $0xd40] sm:$0xff] }
 0x299   : > { %3173 = vmatpush.msrb.mxu2 %v1954_v37  ;;  %3196 = vmatpush.msrb.mxu3 %v1962_v6  ;;  %v3574_v5 = vadd.f32 %v3573_v56, %v3572_v45  ;;  %v2187_v37 = vpop.f32.mrf.mxu3  ;;  %v2024_v6 = vld [vmem:[#allocation9 + $0xdb8] sm:$0xff]  ;;  %v2039_v45 = vld [vmem:[#allocation9 + $0xe30] sm:$0xff] }
 0x29a   : > { %3128 = vmatpush.msrb.mxu0 %v1937_v46  ;;  %3151 = vmatpush.msrb.mxu1 %v1945_v31  ;;  %v2032_v46 = vld [vmem:[#allocation9 + $0xdf8] sm:$0xff]  ;;  %v2007_v31 = vld [vmem:[#allocation9 + $0xd30] sm:$0xff] }
 0x29b   : > { %3174 = vmatpush.msrb.mxu2 %v1953_v2  ;;  %3197 = vmatpush.msrb.mxu3 %v1961_v11  ;;  %v2015_v2 = vld [vmem:[#allocation9 + $0xd70] sm:$0xff] }
 0x29c   : > { %3951 = vmatmul.msk.f32.vlgmr.msrb.gmra.mxu0 %vm2097_vm3, %v5004_v40  ;;  %3952 = vmatmul.msk.f32.vlgmr.msrb.gmra.mxu1 %vm2097_vm3, %v5006_v24  ;;  %v1974_v40 = vld [vmem:[#allocation9 + $0xc28] sm:$0xff]  ;;  %v2023_v11 = vld [vmem:[#allocation9 + $0xdb0] sm:$0xff] }
 0x29d   : > { %3953 = vmatmul.msk.f32.vlgmr.msrb.gmra.mxu2 %vm2097_vm3, %v5008_v14  ;;  %3954 = vmatmul.msk.f32.vlgmr.msrb.gmra.mxu3 %vm2097_vm3, %v5010_v13  ;;  %v1990_v24 = vld [vmem:[#allocation9 + $0xca8] sm:$0xff]  ;;  %v1973_v14 = vld [vmem:[#allocation9 + $0xc20] sm:$0xff] }
 0x29e   : > { %3213 = vmatpush.msra.mxu0 %v1976_v55  ;;  %3236 = vmatpush.msra.mxu1 %v1984_v42  ;;  %v1989_v13 = vld [vmem:[#allocation9 + $0xca0] sm:$0xff]  ;;  %v2031_v55 = vld [vmem:[#allocation9 + $0xdf0] sm:$0xff]  ;;  %v3575_v42 = vsel %vm2097_vm3, %v2187_v37, 0.0 }
 0x29f   : > { %3259 = vmatpush.msra.mxu2 %v1992_v63  ;;  %3282 = vmatpush.msra.mxu3 %v2000_v43  ;;  %v3576_v63 = vadd.f32 %v3575_v42, %v3574_v5  ;;  %v2210_v43 = vpop.f32.mrf.mxu0  ;;  %v2063_v37 = vld [vmem:[#allocation9 + $0xef0] sm:$0xff]  ;;  %v2053_v42 = vld [vmem:[#allocation9 + $0xea0] sm:$0xff] }
 0x2a0   : > { %3214 = vmatpush.msra.mxu0 %v1975_v39  ;;  %3237 = vmatpush.msra.mxu1 %v1983_v26  ;;  %v2030_v39 = vld [vmem:[#allocation9 + $0xde8] sm:$0xff]  ;;  %v2013_v26 = vld [vmem:[#allocation9 + $0xd60] sm:$0xff] }
 0x2a1   : > { %3260 = vmatpush.msra.mxu2 %v1991_v9  ;;  %3283 = vmatpush.msra.mxu3 %v1999_v10  ;;  %v2021_v9 = vld [vmem:[#allocation9 + $0xda0] sm:$0xff]  ;;  %v2279_v50 = vpop.f32.mrf.mxu3 }
 0x2a2   : > { %3215 = vmatpush.msra.mxu0 %v1974_v40  ;;  %3238 = vmatpush.msra.mxu1 %v1982_v51  ;;  %v2029_v10 = vld [vmem:[#allocation9 + $0xde0] sm:$0xff]  ;;  %v3577_v40 = vsel %vm2097_vm3, %v2210_v43, 0.0  ;;  %v2004_v51 = vld [vmem:[#allocation9 + $0xd18] sm:$0xff]  ;;  %v3583_v56 = vsel %vm2097_vm3, %v2279_v50, 0.0 }
 0x2a3   : > { %3261 = vmatpush.msra.mxu2 %v1990_v24  ;;  %3284 = vmatpush.msra.mxu3 %v1998_v22  ;;  %v2012_v24 = vld [vmem:[#allocation9 + $0xd58] sm:$0xff]  ;;  %v3578_v22 = vadd.f32 %v3577_v40, %v3576_v63  ;;  %v2051_v40 = vld [vmem:[#allocation9 + $0xe90] sm:$0xff] }
 0x2a4   : > { %3216 = vmatpush.msra.mxu0 %v1973_v14  ;;  %3239 = vmatpush.msra.mxu1 %v1981_v12  ;;  %v2233_v14 = vpop.f32.mrf.mxu1  ;;  %v2020_v12 = vld [vmem:[#allocation9 + $0xd98] sm:$0xff] }
 0x2a5   : > { %3262 = vmatpush.msra.mxu2 %v1989_v13  ;;  %3285 = vmatpush.msra.mxu3 %v1997_v25  ;;  %v2028_v13 = vld [vmem:[#allocation9 + $0xdd8] sm:$0xff]  ;;  %v2003_v25 = vld [vmem:[#allocation9 + $0xd10] sm:$0xff] }
 0x2a6   : > { %3217 = vmatpush.msra.mxu0 %v1972_v58  ;;  %3240 = vmatpush.msra.mxu1 %v1980_v59  ;;  %v2011_v58 = vld [vmem:[#allocation9 + $0xd50] sm:$0xff]  ;;  %v2256_v59 = vpop.f32.mrf.mxu2  ;;  %v2044_v63 = vld [vmem:[#allocation9 + $0xe58] sm:$0xff] }
 0x2a7   : > { %3263 = vmatpush.msra.mxu2 %v1988_v19  ;;  %3286 = vmatpush.msra.mxu3 %v1996_v21  ;;  %v2019_v19 = vld [vmem:[#allocation9 + $0xd90] sm:$0xff]  ;;  %v2302_v5 = vpop.f32.mrf.mxu0 }
 0x2a8   : > { %3218 = vmatpush.msra.mxu0 %v1971_v35  ;;  %3241 = vmatpush.msra.mxu1 %v1979_v3  ;;  %v2027_v21 = vld [vmem:[#allocation9 + $0xdd0] sm:$0xff]  ;;  %v3579_v35 = vsel %vm2097_vm3, %v2233_v14, 0.0  ;;  %v2002_v3 = vld [vmem:[#allocation9 + $0xd08] sm:$0xff] }
 0x2a9   : > { %3264 = vmatpush.msra.mxu2 %v1987_v62  ;;  %3287 = vmatpush.msra.mxu3 %v1995_v38  ;;  %v3580_v52 = vadd.f32 %v3579_v35, %v3578_v22  ;;  %v2018_v62 = vld [vmem:[#allocation9 + $0xd88] sm:$0xff]  ;;  %v2049_v35 = vld [vmem:[#allocation9 + $0xe80] sm:$0xff] }
 0x2aa   : > { %3219 = vmatpush.msra.mxu0 %v1970_v0  ;;  %3242 = vmatpush.msra.mxu1 %v1978_v53  ;;  %v2026_v38 = vld [vmem:[#allocation9 + $0xdc8] sm:$0xff]  ;;  %v3581_v0 = vsel %vm2097_vm3, %v2256_v59, 0.0  ;;  %v2001_v53 = vld [vmem:[#allocation9 + $0xd00] sm:$0xff] }
 0x2ab   : > { %3265 = vmatpush.msra.mxu2 %v1986_v49  ;;  %3288 = vmatpush.msra.mxu3 %v1994_v32  ;;  %v2017_v49 = vld [vmem:[#allocation9 + $0xd80] sm:$0xff]  ;;  %v3582_v41 = vadd.f32 %v3581_v0, %v3580_v52  ;;  %v2034_v22 = vld [vmem:[#allocation9 + $0xe08] sm:$0xff] }
 0x2ac   : > { %3220 = vmatpush.msra.mxu0 %v1969_v4  ;;  %3243 = vmatpush.msra.mxu1 %v1977_v33  ;;  %v2025_v32 = vld [vmem:[#allocation9 + $0xdc0] sm:$0xff]  ;;  %v2040_v4 = vld [vmem:[#allocation9 + $0xe38] sm:$0xff]  ;;  %v2042_v14 = vld [vmem:[#allocation9 + $0xe48] sm:$0xff] }
 0x2ad   : > { %3266 = vmatpush.msra.mxu2 %v1985_v16  ;;  %3289 = vmatpush.msra.mxu3 %v1993_v44  ;;  %v2048_v33 = vld [vmem:[#allocation9 + $0xe78] sm:$0xff] }
 0x2ae   : > { %3955 = vmatmul.msk.f32.vlgmr.msra.gmra.mxu0 %vm2097_vm3, %v5020_v27  ;;  %3956 = vmatmul.msk.f32.vlgmr.msra.gmra.mxu1 %vm2097_vm3, %v5022_v29  ;;  %v2006_v27 = vld [vmem:[#allocation9 + $0xd28] sm:$0xff]  ;;  %v2056_v16 = vld [vmem:[#allocation9 + $0xeb8] sm:$0xff]  ;;  %v2348_v43 = vpop.f32.mrf.mxu2 }
 0x2af   : > { %3957 = vmatmul.msk.f32.vlgmr.msra.gmra.mxu2 %vm2097_vm3, %v5024_v61  ;;  %3958 = vmatmul.msk.f32.vlgmr.msra.gmra.mxu3 %vm2097_vm3, %v5026_v7  ;;  %v2014_v29 = vld [vmem:[#allocation9 + $0xd68] sm:$0xff]  ;;  %v2005_v7 = vld [vmem:[#allocation9 + $0xd20] sm:$0xff]  ;;  %v2064_v44 = vld [vmem:[#allocation9 + $0xef8] sm:$0xff] }
 0x2b0   : > { %3305 = vmatpush.msrb.mxu0 %v2008_v23  ;;  %3328 = vmatpush.msrb.mxu1 %v2016_v36  ;;  %v2022_v61 = vld [vmem:[#allocation9 + $0xda8] sm:$0xff]  ;;  %v2047_v23 = vld [vmem:[#allocation9 + $0xe70] sm:$0xff]  ;;  %v3584_v36 = vadd.f32 %v3583_v56, %v3582_v41 }
 0x2b1   : > { %3351 = vmatpush.msrb.mxu2 %v2024_v6  ;;  %3374 = vmatpush.msrb.mxu3 %v2032_v46  ;;  %v2046_v6 = vld [vmem:[#allocation9 + $0xe68] sm:$0xff] }
 0x2b2   : > { %3306 = vmatpush.msrb.mxu0 %v2007_v31  ;;  %3329 = vmatpush.msrb.mxu1 %v2015_v2  ;;  %v2054_v46 = vld [vmem:[#allocation9 + $0xea8] sm:$0xff]  ;;  %v2045_v2 = vld [vmem:[#allocation9 + $0xe60] sm:$0xff] }
 0x2b3   : > { %3352 = vmatpush.msrb.mxu2 %v2023_v11  ;;  %3375 = vmatpush.msrb.mxu3 %v2031_v55  ;;  %v2062_v31 = vld [vmem:[#allocation9 + $0xee8] sm:$0xff]  ;;  %v2325_v55 = vpop.f32.mrf.mxu1 }
 0x2b4   : > { %3307 = vmatpush.msrb.mxu0 %v2006_v27  ;;  %3330 = vmatpush.msrb.mxu1 %v2014_v29  ;;  %v2061_v27 = vld [vmem:[#allocation9 + $0xee0] sm:$0xff]  ;;  %v2036_v29 = vld [vmem:[#allocation9 + $0xe18] sm:$0xff] }
 0x2b5   : > { %3353 = vmatpush.msrb.mxu2 %v2022_v61  ;;  %3376 = vmatpush.msrb.mxu3 %v2030_v39  ;;  %v2052_v61 = vld [vmem:[#allocation9 + $0xe98] sm:$0xff] }
 0x2b6   : > { %3308 = vmatpush.msrb.mxu0 %v2005_v7  ;;  %3331 = vmatpush.msrb.mxu1 %v2013_v26  ;;  %v2060_v39 = vld [vmem:[#allocation9 + $0xed8] sm:$0xff]  ;;  %v3587_v7 = vsel %vm2097_vm3, %v2325_v55, 0.0  ;;  %v2035_v26 = vld [vmem:[#allocation9 + $0xe10] sm:$0xff] }
 0x2b7   : > { %3354 = vmatpush.msrb.mxu2 %v2021_v9  ;;  %3377 = vmatpush.msrb.mxu3 %v2029_v10  ;;  %v2043_v9 = vld [vmem:[#allocation9 + $0xe50] sm:$0xff] }
 0x2b8   : > { %3309 = vmatpush.msrb.mxu0 %v2004_v51  ;;  %3332 = vmatpush.msrb.mxu1 %v2012_v24  ;;  %v2059_v51 = vld [vmem:[#allocation9 + $0xed0] sm:$0xff]  ;;  %v3589_v24 = vsel %vm2097_vm3, %v2348_v43, 0.0  ;;  %v2074_v43 = vld [vmem:[#allocation9 + $0xf48] sm:$0xff] }
 0x2b9   : > { %3355 = vmatpush.msrb.mxu2 %v2020_v12  ;;  %3378 = vmatpush.msrb.mxu3 %v2028_v13  ;;  %v2050_v12 = vld [vmem:[#allocation9 + $0xe88] sm:$0xff]  ;;  %v2083_v55 = vld [vmem:[#allocation9 + $0xf90] sm:$0xff] }
 0x2ba   : > { %3310 = vmatpush.msrb.mxu0 %v2003_v25  ;;  %3333 = vmatpush.msrb.mxu1 %v2011_v58  ;;  %v2058_v13 = vld [vmem:[#allocation9 + $0xec8] sm:$0xff]  ;;  %v2033_v25 = vld [vmem:[#allocation9 + $0xe00] sm:$0xff] }
 0x2bb   : > { %3356 = vmatpush.msrb.mxu2 %v2019_v19  ;;  %3379 = vmatpush.msrb.mxu3 %v2027_v21  ;;  %v2041_v58 = vld [vmem:[#allocation9 + $0xe40] sm:$0xff]  ;;  %v2371_v19 = vpop.f32.mrf.mxu3  ;;  %v2394_v21 = vpop.f32.mrf.mxu0 }
 0x2bc   : > { %3311 = vmatpush.msrb.mxu0 %v2002_v3  ;;  %3334 = vmatpush.msrb.mxu1 %v2010_v18  ;;  %v2057_v3 = vld [vmem:[#allocation9 + $0xec0] sm:$0xff]  ;;  %v3591_v18 = vsel %vm2097_vm3, %v2371_v19, 0.0  ;;  %v3593_v52 = vsel %vm2097_vm3, %v2394_v21, 0.0  ;;  %v2417_v50 = vpop.f32.mrf.mxu1 }
 0x2bd   : > { %3357 = vmatpush.msrb.mxu2 %v2018_v62  ;;  %3380 = vmatpush.msrb.mxu3 %v2026_v38  ;;  %v2072_v62 = vld [vmem:[#allocation9 + $0xf38] sm:$0xff]  ;;  %v3595_v56 = vsel %vm2097_vm3, %v2417_v50, 0.0 }
 0x2be   : > { %3312 = vmatpush.msrb.mxu0 %v2001_v53  ;;  %3335 = vmatpush.msrb.mxu1 %v2009_v15  ;;  %v2080_v38 = vld [vmem:[#allocation9 + $0xf78] sm:$0xff] }
 0x2bf   : > { %3358 = vmatpush.msrb.mxu2 %v2017_v49  ;;  %3381 = vmatpush.msrb.mxu3 %v2025_v32  ;;  %v2088_v53 = vld [vmem:[#allocation9 + $0xfb8] sm:$0xff]  ;;  %v2071_v49 = vld [vmem:[#allocation9 + $0xf30] sm:$0xff] }
 0x2c0   : > { %3959 = vmatmul.msk.f32.vlgmr.msrb.gmra.mxu0 %vm2097_vm3, %v5028_v8  ;;  %3960 = vmatmul.msk.f32.vlgmr.msrb.gmra.mxu1 %vm2097_vm3, %v5030_v28  ;;  %v2055_v8 = vld [vmem:[#allocation9 + $0xeb0] sm:$0xff]  ;;  %v2038_v28 = vld [vmem:[#allocation9 + $0xe28] sm:$0xff]  ;;  %v2096_v15 = vld [vmem:[#allocation9 + $0xff8] sm:$0xff] }
 0x2c1   : > { %3961 = vmatmul.msk.f32.vlgmr.msrb.gmra.mxu2 %vm2097_vm3, %v5040_v57  ;;  %3962 = vmatmul.msk.f32.vlgmr.msrb.gmra.mxu3 %vm2097_vm3, %v5042_v60  ;;  %v3585_v57 = vsel %vm2097_vm3, %v2302_v5, 0.0  ;;  %v2037_v60 = vld [vmem:[#allocation9 + $0xe20] sm:$0xff]  ;;  %v2079_v32 = vld [vmem:[#allocation9 + $0xf70] sm:$0xff] }
 0x2c2   : > { %3397 = vmatpush.msra.mxu0 %v2040_v4  ;;  %3420 = vmatpush.msra.mxu1 %v2048_v33  ;;  %v3586_v11 = vadd.f32 %v3585_v57, %v3584_v36  ;;  %v2440_v4 = vpop.f32.mrf.mxu2  ;;  %v2087_v33 = vld [vmem:[#allocation9 + $0xfb0] sm:$0xff]  ;;  %v2085_v5 = vld [vmem:[#allocation9 + $0xfa0] sm:$0xff]  ;;  %v2084_v57 = vld [vmem:[#allocation9 + $0xf98] sm:$0xff] }
 0x2c3   : > { %3443 = vmatpush.msra.mxu2 %v2056_v16  ;;  %3466 = vmatpush.msra.mxu3 %v2064_v44  ;;  %v2078_v16 = vld [vmem:[#allocation9 + $0xf68] sm:$0xff] }
 0x2c4   : > { %3398 = vmatpush.msra.mxu0 %v2039_v45  ;;  %3421 = vmatpush.msra.mxu1 %v2047_v23  ;;  %v3588_v10 = vadd.f32 %v3587_v7, %v3586_v11  ;;  %v2086_v44 = vld [vmem:[#allocation9 + $0xfa8] sm:$0xff]  ;;  %v2069_v45 = vld [vmem:[#allocation9 + $0xf20] sm:$0xff]  ;;  %v2075_v11 = vld [vmem:[#allocation9 + $0xf50] sm:$0xff] }
 0x2c5   : > { %3444 = vmatpush.msra.mxu2 %v2055_v8  ;;  %3467 = vmatpush.msra.mxu3 %v2063_v37  ;;  %v2077_v23 = vld [vmem:[#allocation9 + $0xf60] sm:$0xff]  ;;  %v2068_v37 = vld [vmem:[#allocation9 + $0xf18] sm:$0xff]  ;;  %v2090_v7 = vld [vmem:[#allocation9 + $0xfc8] sm:$0xff] }
 0x2c6   : > { %3399 = vmatpush.msra.mxu0 %v2038_v28  ;;  %3422 = vmatpush.msra.mxu1 %v2046_v6  ;;  %v3590_v59 = vadd.f32 %v3589_v24, %v3588_v10  ;;  %v2093_v8 = vld [vmem:[#allocation9 + $0xfe0] sm:$0xff]  ;;  %v2076_v28 = vld [vmem:[#allocation9 + $0xf58] sm:$0xff] }
 0x2c7   : > { %3445 = vmatpush.msra.mxu2 %v2054_v46  ;;  %3468 = vmatpush.msra.mxu3 %v2062_v31  ;;  %v2463_v46 = vpop.f32.mrf.mxu3  ;;  %v2486_v31 = vpop.f32.mrf.mxu0  ;;  %v2081_v24 = vld [vmem:[#allocation9 + $0xf80] sm:$0xff] }
 0x2c8   : > { %3400 = vmatpush.msra.mxu0 %v2037_v60  ;;  %3423 = vmatpush.msra.mxu1 %v2045_v2  ;;  %v3592_v0 = vadd.f32 %v3591_v18, %v3590_v59  ;;  %v2092_v60 = vld [vmem:[#allocation9 + $0xfd8] sm:$0xff]  ;;  %v2067_v2 = vld [vmem:[#allocation9 + $0xf10] sm:$0xff] }
 0x2c9   : > { %3446 = vmatpush.msra.mxu2 %v2053_v42  ;;  %3469 = vmatpush.msra.mxu3 %v2061_v27  ;;  %v2091_v42 = vld [vmem:[#allocation9 + $0xfd0] sm:$0xff]  ;;  %v3599_v27 = vsel %vm2097_vm3, %v2463_v46, 0.0 }
 0x2ca   : > { %3401 = vmatpush.msra.mxu0 %v2036_v29  ;;  %3424 = vmatpush.msra.mxu1 %v2044_v63  ;;  %v3594_v41 = vadd.f32 %v3593_v52, %v3592_v0  ;;  %v3601_v29 = vsel %vm2097_vm3, %v2486_v31, 0.0  ;;  %v2066_v63 = vld [vmem:[#allocation9 + $0xf08] sm:$0xff] }
 0x2cb   : > { %3447 = vmatpush.msra.mxu2 %v2052_v61  ;;  %3470 = vmatpush.msra.mxu3 %v2060_v39  ;;  %v2082_v39 = vld [vmem:[#allocation9 + $0xf88] sm:$0xff] }
 0x2cc   : > { %3402 = vmatpush.msra.mxu0 %v2035_v26  ;;  %3425 = vmatpush.msra.mxu1 %v2043_v9  ;;  %v3596_v36 = vadd.f32 %v3595_v56, %v3594_v41  ;;  %v2065_v26 = vld [vmem:[#allocation9 + $0xf00] sm:$0xff] }
 0x2cd   : > { %3448 = vmatpush.msra.mxu2 %v2051_v40  ;;  %3471 = vmatpush.msra.mxu3 %v2059_v51  ;;  %v2073_v9 = vld [vmem:[#allocation9 + $0xf40] sm:$0xff]  ;;  %v2509_v40 = vpop.f32.mrf.mxu1  ;;  %v2532_v51 = vpop.f32.mrf.mxu2 }
 0x2ce   : > { %3403 = vmatpush.msra.mxu0 %v2034_v22  ;;  %3426 = vmatpush.msra.mxu1 %v2042_v14  ;;  %v2089_v22 = vld [vmem:[#allocation9 + $0xfc0] sm:$0xff]  ;;  %v3603_v14 = vsel %vm2097_vm3, %v2509_v40, 0.0 }
 0x2cf   : > { %3449 = vmatpush.msra.mxu2 %v2050_v12  ;;  %3472 = vmatpush.msra.mxu3 %v2058_v13  ;;  %v3605_v12 = vsel %vm2097_vm3, %v2532_v51, 0.0  ;;  %v2578_v59 = vpop.f32.mrf.mxu0 }
 0x2d0   : > { %3404 = vmatpush.msra.mxu0 %v2033_v25  ;;  %3427 = vmatpush.msra.mxu1 %v2041_v58  ;;  %v2555_v58 = vpop.f32.mrf.mxu3  ;;  %v3609_v21 = vsel %vm2097_vm3, %v2578_v59, 0.0 }
 0x2d1   : > { %3450 = vmatpush.msra.mxu2 %v2049_v35  ;;  %3473 = vmatpush.msra.mxu3 %v2057_v3  ;;  %v3607_v19 = vsel %vm2097_vm3, %v2555_v58, 0.0 }
 0x2d2   : > { %3963 = vmatmul.msk.f32.vlgmr.msra.gmra.mxu0 %vm2097_vm3, %v5044_v34  ;;  %3964 = vmatmul.msk.f32.vlgmr.msra.gmra.mxu1 %vm2097_vm3, %v5046_v47  ;;  %v2095_v34 = vld [vmem:[#allocation9 + $0xff0] sm:$0xff]  ;;  %v2070_v47 = vld [vmem:[#allocation9 + $0xf28] sm:$0xff] }
 0x2d3   : > { %3965 = vmatmul.msk.f32.vlgmr.msra.gmra.mxu2 %vm2097_vm3, %v5056_v20  ;;  %3966 = vmatmul.msk.f32.vlgmr.msra.gmra.mxu3 %vm2097_vm3, %v5058_v30  ;;  %v2094_v20 = vld [vmem:[#allocation9 + $0xfe8] sm:$0xff]  ;;  %v3597_v30 = vsel %vm2097_vm3, %v2440_v4, 0.0 }
 0x2d4   : > { %3489 = vmatpush.msrb.mxu0 %v2072_v62  ;;  %3512 = vmatpush.msrb.mxu1 %v2080_v38  ;;  %v3598_v6 = vadd.f32 %v3597_v30, %v3596_v36 }
 0x2d5   : > { %3535 = vmatpush.msrb.mxu2 %v2088_v53  ;;  %3558 = vmatpush.msrb.mxu3 %v2096_v15  ;;  %v2601_v18 = vpop.f32.mrf.mxu1 }
 0x2d6   : > { %3490 = vmatpush.msrb.mxu0 %v2071_v49  ;;  %3513 = vmatpush.msrb.mxu1 %v2079_v32  ;;  %v3600_v61 = vadd.f32 %v3599_v27, %v3598_v6  ;;  %v3611_v52 = vsel %vm2097_vm3, %v2601_v18, 0.0 }
 0x2d7   : > { %3536 = vmatpush.msrb.mxu2 %v2087_v33  ;;  %3559 = vmatpush.msrb.mxu3 %v2095_v34  ;;  %v2670_v0 = vpop.f32.mrf.mxu0 }
 0x2d8   : > { %3491 = vmatpush.msrb.mxu0 %v2070_v47  ;;  %3514 = vmatpush.msrb.mxu1 %v2078_v16  ;;  %v3602_v10 = vadd.f32 %v3601_v29, %v3600_v61  ;;  %v2647_v38 = vpop.f32.mrf.mxu3  ;;  %v3617_v53 = vsel %vm2097_vm3, %v2670_v0, 0.0 }
 0x2d9   : > { %3537 = vmatpush.msrb.mxu2 %v2086_v44  ;;  %3560 = vmatpush.msrb.mxu3 %v2094_v20 }
 0x2da   : > { %3492 = vmatpush.msrb.mxu0 %v2069_v45  ;;  %3515 = vmatpush.msrb.mxu1 %v2077_v23  ;;  %v3604_v13 = vadd.f32 %v3603_v14, %v3602_v10 }
 0x2db   : > { %3538 = vmatpush.msrb.mxu2 %v2085_v5  ;;  %3561 = vmatpush.msrb.mxu3 %v2093_v8 }
 0x2dc   : > { %3493 = vmatpush.msrb.mxu0 %v2068_v37  ;;  %3516 = vmatpush.msrb.mxu1 %v2076_v28  ;;  %v3606_v25 = vadd.f32 %v3605_v12, %v3604_v13 }
 0x2dd   : > { %3539 = vmatpush.msrb.mxu2 %v2084_v57  ;;  %3562 = vmatpush.msrb.mxu3 %v2092_v60  ;;  %v2693_v32 = vpop.f32.mrf.mxu1 }
 0x2de   : > { %3494 = vmatpush.msrb.mxu0 %v2067_v2  ;;  %3517 = vmatpush.msrb.mxu1 %v2075_v11  ;;  %v3608_v35 = vadd.f32 %v3607_v19, %v3606_v25  ;;  %v3619_v50 = vsel %vm2097_vm3, %v2693_v32, 0.0 }
 0x2df   : > { %3540 = vmatpush.msrb.mxu2 %v2083_v55  ;;  %3563 = vmatpush.msrb.mxu3 %v2091_v42  ;;  %v2762_v16 = vpop.f32.mrf.mxu0 }
 0x2e0   : > { %3495 = vmatpush.msrb.mxu0 %v2066_v63  ;;  %3518 = vmatpush.msrb.mxu1 %v2074_v43  ;;  %v3610_v3 = vadd.f32 %v3609_v21, %v3608_v35  ;;  %v2739_v47 = vpop.f32.mrf.mxu3  ;;  %v3625_v20 = vsel %vm2097_vm3, %v2762_v16, 0.0 }
 0x2e1   : > { %3541 = vmatpush.msrb.mxu2 %v2082_v39  ;;  %3564 = vmatpush.msrb.mxu3 %v2090_v7  ;;  %v3623_v44 = vsel %vm2097_vm3, %v2739_v47, 0.0 }
 0x2e2   : > { %3496 = vmatpush.msrb.mxu0 %v2065_v26  ;;  %3519 = vmatpush.msrb.mxu1 %v2073_v9  ;;  %v3612_v62 = vadd.f32 %v3611_v52, %v3610_v3 }
 0x2e3   : > { %3542 = vmatpush.msrb.mxu2 %v2081_v24  ;;  %3565 = vmatpush.msrb.mxu3 %v2089_v22 }
 0x2e4   : > { %3967 = vmatmul.msk.f32.vlgmr.msrb.gmra.mxu0 %vm2097_vm3, %v5060_v1  ;;  %3968 = vmatmul.msk.f32.vlgmr.msrb.gmra.mxu1 %vm2097_vm3, %v5062_v48  ;;  %v2624_v1 = vpop.f32.mrf.mxu2 }
 0x2e5   : > { %3969 = vmatmul.msk.f32.vlgmr.msrb.gmra.mxu2 %vm2097_vm3, %v5072_v17  ;;  %3970 = vmatmul.msk.f32.vlgmr.msrb.gmra.mxu3 %vm2097_vm3, %v5074_v54  ;;  %v3613_v48 = vsel %vm2097_vm3, %v2624_v1, 0.0  ;;  %v3615_v54 = vsel %vm2097_vm3, %v2647_v38, 0.0  ;;  %v2785_v45 = vpop.f32.mrf.mxu1 }
 0x2e6   : > { %v3614_v17 = vadd.f32 %v3613_v48, %v3612_v62  ;;  %v3627_v36 = vsel %vm2097_vm3, %v2785_v45, 0.0 }
 0x2e7   : > { %v2854_v6 = vpop.f32.mrf.mxu0 }
 0x2e8   : > { %v3616_v15 = vadd.f32 %v3615_v54, %v3614_v17  ;;  %v2831_v28 = vpop.f32.mrf.mxu3  ;;  %v3633_v31 = vsel %vm2097_vm3, %v2854_v6, 0.0 }
 0x2e9   : > { %v3631_v46 = vsel %vm2097_vm3, %v2831_v28, 0.0 }
 0x2ea   : > { %v3618_v49 = vadd.f32 %v3617_v53, %v3616_v15 }
 0x2ec   : > { %v2716_v41 = vpop.f32.mrf.mxu2  ;;  %v3620_v33 = vadd.f32 %v3619_v50, %v3618_v49 }
 0x2ed   : > { %v3621_v4 = vsel %vm2097_vm3, %v2716_v41, 0.0  ;;  %v2877_v2 = vpop.f32.mrf.mxu1 }
 0x2ee   : > { %v3622_v34 = vadd.f32 %v3621_v4, %v3620_v33  ;;  %v3635_v55 = vsel %vm2097_vm3, %v2877_v2, 0.0 }
 0x2f0   : > { %v3624_v56 = vadd.f32 %v3623_v44, %v3622_v34  ;;  %v2923_v63 = vpop.f32.mrf.mxu3 }
 0x2f1   : > { %v3639_v61 = vsel %vm2097_vm3, %v2923_v63, 0.0 }
 0x2f2   : > { %v3626_v30 = vadd.f32 %v3625_v20, %v3624_v56 }
 0x2f4   : > { %v2808_v23 = vpop.f32.mrf.mxu2  ;;  %v3628_v8 = vadd.f32 %v3627_v36, %v3626_v30 }
 0x2f5   : > { %v3629_v5 = vsel %vm2097_vm3, %v2808_v23, 0.0  ;;  %v2946_v43 = vpop.f32.mrf.mxu0  ;;  %v2969_v9 = vpop.f32.mrf.mxu1 }
 0x2f6   : > { %v3630_v37 = vadd.f32 %v3629_v5, %v3628_v8  ;;  %v3641_v39 = vsel %vm2097_vm3, %v2946_v43, 0.0  ;;  %v3643_v40 = vsel %vm2097_vm3, %v2969_v9, 0.0 }
 0x2f8   : > { %v3632_v57 = vadd.f32 %v3631_v46, %v3630_v37 }
 0x2fa   : > { %v3634_v60 = vadd.f32 %v3633_v31, %v3632_v57 }
 0x2fc   : > { %v2900_v11 = vpop.f32.mrf.mxu2  ;;  %v3636_v27 = vadd.f32 %v3635_v55, %v3634_v60  ;;  %v3015_v14 = vpop.f32.mrf.mxu3 }
 0x2fd   : > { %v3637_v42 = vsel %vm2097_vm3, %v2900_v11, 0.0  ;;  %v3647_v13 = vsel %vm2097_vm3, %v3015_v14, 0.0 }
 0x2fe   : > { %v3638_v29 = vadd.f32 %v3637_v42, %v3636_v27 }
 0x300   : > { %v3640_v7 = vadd.f32 %v3639_v61, %v3638_v29 }
 0x302   : > { %v3642_v26 = vadd.f32 %v3641_v39, %v3640_v7 }
 0x304   : > { %v2992_v10 = vpop.f32.mrf.mxu2  ;;  %v3644_v24 = vadd.f32 %v3643_v40, %v3642_v26 }
 0x305   : > { %v3645_v51 = vsel %vm2097_vm3, %v2992_v10, 0.0 }
 0x306   : > { %v3646_v22 = vadd.f32 %v3645_v51, %v3644_v24 }
 0x307   : > { %v3038_v12 = vpop.f32.mrf.mxu0  ;;  %v3061_v19 = vpop.f32.mrf.mxu1 }
 0x308   : > { %v3649_v25 = vsel %vm2097_vm3, %v3038_v12, 0.0  ;;  %v3648_v58 = vadd.f32 %v3647_v13, %v3646_v22  ;;  %v3651_v35 = vsel %vm2097_vm3, %v3061_v19, 0.0 }
 0x30a   : > { %v3650_v59 = vadd.f32 %v3649_v25, %v3648_v58 }
 0x30c   : > { %v3652_v18 = vadd.f32 %v3651_v35, %v3650_v59 }
 0x30e   : > { %v3084_v21 = vpop.f32.mrf.mxu2  ;;  %v3107_v52 = vpop.f32.mrf.mxu3 }
 0x30f   : > { %v3653_v3 = vsel %vm2097_vm3, %v3084_v21, 0.0  ;;  %v3655_v62 = vsel %vm2097_vm3, %v3107_v52, 0.0 }
 0x310   : > { %v3654_v1 = vadd.f32 %v3653_v3, %v3652_v18 }
 0x312   : > { %v3656_v38 = vadd.f32 %v3655_v62, %v3654_v1 }
 0x319   : > { %v3130_v48 = vpop.f32.mrf.mxu0  ;;  %v3153_v54 = vpop.f32.mrf.mxu1 }
 0x31a   : > { %v3657_v17 = vsel %vm2097_vm3, %v3130_v48, 0.0  ;;  %v3659_v15 = vsel %vm2097_vm3, %v3153_v54, 0.0 }
 0x31b   : > { %v3658_v0 = vadd.f32 %v3657_v17, %v3656_v38 }
 0x31d   : > { %v3660_v32 = vadd.f32 %v3659_v15, %v3658_v0 }
 0x320   : > { %v3176_v53 = vpop.f32.mrf.mxu2  ;;  %v3199_v50 = vpop.f32.mrf.mxu3 }
 0x321   : > { %v3661_v49 = vsel %vm2097_vm3, %v3176_v53, 0.0  ;;  %v3663_v33 = vsel %vm2097_vm3, %v3199_v50, 0.0 }
 0x322   : > { %v3662_v41 = vadd.f32 %v3661_v49, %v3660_v32 }
 0x324   : > { %v3664_v47 = vadd.f32 %v3663_v33, %v3662_v41 }
 0x32b   : > { %v3222_v4 = vpop.f32.mrf.mxu0  ;;  %v3245_v44 = vpop.f32.mrf.mxu1 }
 0x32c   : > { %v3665_v34 = vsel %vm2097_vm3, %v3222_v4, 0.0  ;;  %v3667_v56 = vsel %vm2097_vm3, %v3245_v44, 0.0 }
 0x32d   : > { %v3666_v16 = vadd.f32 %v3665_v34, %v3664_v47 }
 0x32f   : > { %v3668_v45 = vadd.f32 %v3667_v56, %v3666_v16 }
 0x332   : > { %v3268_v20 = vpop.f32.mrf.mxu2  ;;  %v3291_v36 = vpop.f32.mrf.mxu3 }
 0x333   : > { %v3669_v30 = vsel %vm2097_vm3, %v3268_v20, 0.0  ;;  %v3671_v8 = vsel %vm2097_vm3, %v3291_v36, 0.0 }
 0x334   : > { %v3670_v23 = vadd.f32 %v3669_v30, %v3668_v45 }
 0x336   : > { %v3672_v28 = vadd.f32 %v3671_v8, %v3670_v23 }
 0x33d   : > { %v3314_v5 = vpop.f32.mrf.mxu0  ;;  %v3337_v46 = vpop.f32.mrf.mxu1 }
 0x33e   : > { %v3673_v37 = vsel %vm2097_vm3, %v3314_v5, 0.0  ;;  %v3675_v57 = vsel %vm2097_vm3, %v3337_v46, 0.0 }
 0x33f   : > { %v3674_v6 = vadd.f32 %v3673_v37, %v3672_v28 }
 0x341   : > { %v3676_v2 = vadd.f32 %v3675_v57, %v3674_v6 }
 0x344   : > { %v3360_v31 = vpop.f32.mrf.mxu2  ;;  %v3383_v55 = vpop.f32.mrf.mxu3 }
 0x345   : > { %v3677_v60 = vsel %vm2097_vm3, %v3360_v31, 0.0  ;;  %v3679_v27 = vsel %vm2097_vm3, %v3383_v55, 0.0 }
 0x346   : > { %v3678_v11 = vadd.f32 %v3677_v60, %v3676_v2 }
 0x348   : > { %v3680_v63 = vadd.f32 %v3679_v27, %v3678_v11 }
 0x34f   : > { %v3406_v42 = vpop.f32.mrf.mxu0  ;;  %v3429_v61 = vpop.f32.mrf.mxu1 }
 0x350   : > { %v3681_v29 = vsel %vm2097_vm3, %v3406_v42, 0.0  ;;  %v3683_v7 = vsel %vm2097_vm3, %v3429_v61, 0.0 }
 0x351   : > { %v3682_v43 = vadd.f32 %v3681_v29, %v3680_v63 }
 0x353   : > { %v3684_v9 = vadd.f32 %v3683_v7, %v3682_v43 }
 0x356   : > { %v3452_v39 = vpop.f32.mrf.mxu2  ;;  %v3475_v40 = vpop.f32.mrf.mxu3 }
 0x357   : > { %v3685_v26 = vsel %vm2097_vm3, %v3452_v39, 0.0  ;;  %v3687_v51 = vsel %vm2097_vm3, %v3475_v40, 0.0 }
 0x358   : > { %v3686_v10 = vadd.f32 %v3685_v26, %v3684_v9 }
 0x35a   : > { %v3688_v22 = vadd.f32 %v3687_v51, %v3686_v10 }
 0x361   : > { %v3498_v24 = vpop.f32.mrf.mxu0  ;;  %v3521_v13 = vpop.f32.mrf.mxu1 }
 0x362   : > { %v3689_v14 = vsel %vm2097_vm3, %v3498_v24, 0.0  ;;  %v3691_v25 = vsel %vm2097_vm3, %v3521_v13, 0.0 }
 0x363   : > { %v3690_v12 = vadd.f32 %v3689_v14, %v3688_v22 }
 0x365   : > { %v3692_v58 = vadd.f32 %v3691_v25, %v3690_v12 }
 0x368   : > { %v3544_v59 = vpop.f32.mrf.mxu2  ;;  %v3567_v19 = vpop.f32.mrf.mxu3 }
 0x369   : > { %v3693_v21 = vsel %vm2097_vm3, %v3544_v59, 0.0  ;;  %v3695_v3 = vsel %vm2097_vm3, %v3567_v19, 0.0 }
 0x36a   : > { %v3694_v35 = vadd.f32 %v3693_v21, %v3692_v58 }
 0x36c   : > { %v3696_v18 = vadd.f32 %v3695_v3, %v3694_v35 }
 0x36e   : > { %3697 = vst.msk [vmem:[%s291_s11] sm:$0xff] %vm2097_vm3, %v3696_v18 }
 0x36f   : > { %4188 = shalt.err (!%p4185_p10)
}
 0x370   : > { %3988 = dma.vmem_to_hbm [thread:$0]  (%p4345_p0), %s3712_s21, 128, %s3714_s13, %s3699_s28  }
 0x371 PF: > { %s3725_s24 = sand.u32 1, %s4225_s22   ;;  %p5257_p11 = scmp.ge.s32.totalorder %s4237_s25, 2 }
 0x372   : > { %s3726_s14 = scalar_lea.sflag [#allocation6], %s3725_s24 }
 0x373   : > { %p4002_p12 = pnand %p5257_p11, %p4353_p6 }
 0x375   : > { %p4003_p2 = pneg %p4002_p12 }
 0x377   : > { %4220 = dma.done.wait (%p4003_p2), %s3726_s14, 128  }
 0x378   : > { %4222 = vsyncadd (%p4003_p2), %s3726_s14, 4294967168  ;;  %s5258_s19 = sld [smem:[#allocation16_spill]]  ;;  %p29_p4 = scmp.ge.s32.totalorder %s4321_s10, 4  }
 0x379   : > { %s5259_s24 = sld [smem:[#allocation17_spill]]  ;;  %s5260_s22 = smov %s4229_s23 }
 0x37a   : > { %s5262_s25 = smov %s4321_s10  ;;  %31 = sbr.rel (!%p29_p4) target bundleno = 13 (0xd), region = 101 }
 0x37e   : > { %s5261_s23 = smov %s5258_s19 }
 0x37f   :  { %3732 = vsyncpa [#allocation5], 1 }
 0x380   :  { %3734 = vsyncpa [#allocation5 + $0x1], 1 }
 0x381   :  { %3735 = vsyncpa [#allocation8], 1 }
 0x382   :  { %3737 = vsyncpa [#allocation8 + $0x1], 1 }
 0x383   :  { %3738 = vsyncpa [#allocation6], 1 }
 0x384   :  { %3740 = vsyncpa [#allocation6 + $0x1], 1 }

</bundles_post_ra>
